<compile_context>
chip_gen: v7x
topology: tpu7x:2x2x1
jax: 0.10.0
libtpu: 0.0.40
codegen_flags: <defaults>
</compile_context>

<pallas_src>
import numpy as np
import jax
import jax.numpy as jnp
from jax.experimental import pallas as pl
from jax.experimental.pallas import tpu as pltpu

# ----------------------------------------------------------------------------
# Synthetic SMPL dimensions (small but structurally faithful).
# Real SMPL: V=6890 (pad to 6912), J=24, NB=10, NP=207.
# ----------------------------------------------------------------------------
V = 512                  # synthetic vertex count (multiple of 128)
J = 24                   # global orient + 23 body joints
NB = 10                  # shape (betas) coefficients
NP = (J - 1) * 9         # 207 pose-blend features (natural layout)
NPF = 9 * J              # 216 = pose features padded with a zero joint-0 slot
NC = NB + 1 + NPF        # 227 combined blend coefficients [betas | 1 | pose_feat]

PARENTS = np.array([-1, 0, 0, 0, 1, 2, 3, 4, 5, 6, 7, 8,
                    9, 9, 9, 12, 13, 14, 16, 17, 18, 19, 20, 21], dtype=np.int32)


def _compute_depth(parents):
    depth = np.zeros(len(parents), dtype=np.int64)
    for i in range(1, len(parents)):
        depth[i] = depth[parents[i]] + 1
    return depth


DEPTH = _compute_depth(PARENTS)
LEVELS = [np.nonzero(DEPTH == d)[0] for d in range(int(DEPTH.max()) + 1)]
NL = len(LEVELS)         # 9 kinematic-tree levels (root + 8)


# ----------------------------------------------------------------------------
# Single fused kernel: Rodrigues + rest joints + FK + blend shapes + LBS.
# Everything lane-dense; per-joint quantities are (1, J) rows, vertices live as
# lane-blocks of a (., 3*V) / (3, V) layout.
# ----------------------------------------------------------------------------
def _smpl_fused_kernel(pose_ref, betas1_ref, cdirs_ref, jd_ref, pg_ref, lmask_ref,
                       lbsw_ref, transl_ref, scale_ref, verts_ref, joints_ref):
    # ---------------- Rodrigues (matches smplx: angle = ||rot_vec + 1e-8||) ----
    rx = pose_ref[0:1, :]
    ry = pose_ref[1:2, :]
    rz = pose_ref[2:3, :]
    angle = jnp.sqrt((rx + 1e-8) ** 2 + (ry + 1e-8) ** 2 + (rz + 1e-8) ** 2)
    inv = 1.0 / angle
    ux = rx * inv
    uy = ry * inv
    uz = rz * inv
    cs = jnp.cos(angle)
    sn = jnp.sin(angle)
    oc = 1.0 - cs
    # R = I + sin*K + (1-cos)*K@K, K = skew(u)
    r00 = 1.0 - oc * (uy * uy + uz * uz)
    r01 = -sn * uz + oc * ux * uy
    r02 = sn * uy + oc * ux * uz
    r10 = sn * uz + oc * ux * uy
    r11 = 1.0 - oc * (ux * ux + uz * uz)
    r12 = -sn * ux + oc * uy * uz
    r20 = -sn * uy + oc * ux * uz
    r21 = sn * ux + oc * uy * uz
    r22 = 1.0 - oc * (ux * ux + uy * uy)

    betas1 = betas1_ref[...]                                   # (1, NB+1) = [betas | 1]

    # ------------- rest joints: J_regressor folded at init into jd_ref -------
    jx = jnp.dot(betas1, jd_ref[0], preferred_element_type=jnp.float32)   # (1, J)
    jy = jnp.dot(betas1, jd_ref[1], preferred_element_type=jnp.float32)
    jz = jnp.dot(betas1, jd_ref[2], preferred_element_type=jnp.float32)

    # parent-relative joints; root column of PG is zero -> rel(root) = joint
    pg = pg_ref[...]                                           # (J, J)
    jmat = jnp.concatenate([jx, jy, jz], axis=0)               # (3, J)
    relj = jmat - jnp.dot(jmat, pg, preferred_element_type=jnp.float32)
    rjx = relj[0:1, :]
    rjy = relj[1:2, :]
    rjz = relj[2:3, :]

    # ------------- forward kinematics, statically unrolled over tree levels ---
    # chain rows: [c00 c01 c02 c10 c11 c12 c20 c21 c22 ct0 ct1 ct2], each (1,J).
    # Initialized to the local transforms; only the root column is final, the
    # rest are overwritten level by level (parents always have smaller depth).
    cm = jnp.concatenate([r00, r01, r02, r10, r11, r12, r20, r21, r22,
                          rjx, rjy, rjz], axis=0)              # (12, J)
    lmask = lmask_ref[...]                                     # (NL-1, J)
    for lvl in range(1, NL):
        # gather parent transforms for every joint with one tiny MXU dot
        p = jnp.dot(cm, pg, preferred_element_type=jnp.float32)  # (12, J)
        p00 = p[0:1]
        p01 = p[1:2]
        p02 = p[2:3]
        p10 = p[3:4]
        p11 = p[4:5]
        p12 = p[5:6]
        p20 = p[6:7]
        p21 = p[7:8]
        p22 = p[8:9]
        pt0 = p[9:10]
        pt1 = p[10:11]
        pt2 = p[11:12]
        # chain_child = chain_parent @ [R_local | rel_joint]
        new = jnp.concatenate([
            p00 * r00 + p01 * r10 + p02 * r20,
            p00 * r01 + p01 * r11 + p02 * r21,
            p00 * r02 + p01 * r12 + p02 * r22,
            p10 * r00 + p11 * r10 + p12 * r20,
            p10 * r01 + p11 * r11 + p12 * r21,
            p10 * r02 + p11 * r12 + p12 * r22,
            p20 * r00 + p21 * r10 + p22 * r20,
            p20 * r01 + p21 * r11 + p22 * r21,
            p20 * r02 + p21 * r12 + p22 * r22,
            p00 * rjx + p01 * rjy + p02 * rjz + pt0,
            p10 * rjx + p11 * rjy + p12 * rjz + pt1,
            p20 * rjx + p21 * rjy + p22 * rjz + pt2,
        ], axis=0)                                             # (12, J)
        m = lmask[lvl - 1:lvl, :]                              # (1, J) 1.0 at depth==lvl
        cm = jnp.where(m > 0.0, new, cm)

    # ------------- posed joints, relative transforms A (bottom row dropped) ---
    tx = transl_ref[0]
    ty = transl_ref[1]
    tz = transl_ref[2]
    s = scale_ref[0]

    pjx = cm[9:10]
    pjy = cm[10:11]
    pjz = cm[11:12]
    joints_ref[0:1, :] = (pjx + tx) * s
    joints_ref[1:2, :] = (pjy + ty) * s
    joints_ref[2:3, :] = (pjz + tz) * s

    # A translation = chain_t - R_chain @ j_rest
    a_t0 = pjx - (cm[0:1] * jx + cm[1:2] * jy + cm[2:3] * jz)
    a_t1 = pjy - (cm[3:4] * jx + cm[4:5] * jy + cm[5:6] * jz)
    a_t2 = pjz - (cm[6:7] * jx + cm[7:8] * jy + cm[8:9] * jz)

    # A^T with only the 12 useful rows, COLUMN-major rotation order, and
    # transl/scale folded in (exact: lbs weights sum to 1):
    #   rows 0..2  : s*A[:,0]   (coefficients of px)
    #   rows 3..5  : s*A[:,1]   (coefficients of py)
    #   rows 6..8  : s*A[:,2]   (coefficients of pz)
    #   rows 9..11 : s*(A_t + transl)
    a_mat = jnp.concatenate([
        cm[0:1] * s, cm[3:4] * s, cm[6:7] * s,
        cm[1:2] * s, cm[4:5] * s, cm[7:8] * s,
        cm[2:3] * s, cm[5:6] * s, cm[8:9] * s,
        (a_t0 + tx) * s, (a_t1 + ty) * s, (a_t2 + tz) * s,
    ], axis=0)                                                 # (12, J)

    # ------------- blend shapes: ONE matmul for shape + pose + template -------
    # pose feature in component-major order (column = k*J + j); joint-0 slots of
    # the combined dirs are zero so including joint 0 contributes nothing.
    pf = jnp.concatenate([r00 - 1.0, r01, r02, r10, r11 - 1.0, r12,
                          r20, r21, r22 - 1.0], axis=1)        # (1, NPF)
    coeff = jnp.concatenate([betas1, pf], axis=1)              # (1, NC)
    vp = jnp.dot(coeff, cdirs_ref[...],
                 preferred_element_type=jnp.float32)           # (1, 3*V): x|y|z blocks
    px = vp[:, 0:V]
    py = vp[:, V:2 * V]
    pz = vp[:, 2 * V:3 * V]

    # ------------- LBS skinning: T^T = A^T @ W^T, three (3,V) FMAs ------------
    Tt = jnp.dot(a_mat, lbsw_ref[...],
                 preferred_element_type=jnp.float32)           # (12, V)
    verts_ref[...] = (Tt[0:3, :] * px + Tt[3:6, :] * py
                      + Tt[6:9, :] * pz + Tt[9:12, :])         # (3, V) unmasked store


def _fused_call(pose_t, betas1, cdirs_flat, jd_ext_t, pg, lmask, lbsw_t,
                transl_vec, scale_vec):
    # Single untiled launch: all operands (~1.5 MB) fit VMEM comfortably.
    # TODO(synk): real-SMPL sizes need a V-tiled "parallel" grid + bf16 weights.
    return pl.pallas_call(
        _smpl_fused_kernel,
        out_shape=(jax.ShapeDtypeStruct((3, V), jnp.float32),    # vertices^T
                   jax.ShapeDtypeStruct((3, J), jnp.float32)),   # joints^T
        in_specs=[
            pl.BlockSpec(memory_space=pltpu.MemorySpace.VMEM),   # pose_t   (3, J)
            pl.BlockSpec(memory_space=pltpu.MemorySpace.VMEM),   # betas1   (1, NB+1)
            pl.BlockSpec(memory_space=pltpu.MemorySpace.VMEM),   # cdirs    (NC, 3V)
            pl.BlockSpec(memory_space=pltpu.MemorySpace.VMEM),   # jd_ext   (3, NB+1, J)
            pl.BlockSpec(memory_space=pltpu.MemorySpace.VMEM),   # PG       (J, J)
            pl.BlockSpec(memory_space=pltpu.MemorySpace.VMEM),   # LMASK    (NL-1, J)
            pl.BlockSpec(memory_space=pltpu.MemorySpace.VMEM),   # W^T      (J, V)
            pl.BlockSpec(memory_space=pltpu.MemorySpace.SMEM),   # transl   (3,)
            pl.BlockSpec(memory_space=pltpu.MemorySpace.SMEM),   # scale    (1,)
        ],
    )(pose_t, betas1, cdirs_flat, jd_ext_t, pg, lmask, lbsw_t, transl_vec, scale_vec)


# ----------------------------------------------------------------------------
# Plain-JAX FK (level-batched) -- used only by the pure-JAX reference check.
# ----------------------------------------------------------------------------
def batch_rigid_transform(rot_mats, joints, parents):
    """rot_mats (J,3,3), joints (J,3) -> (posed_joints (J,3), rel_transforms (J,4,4))"""
    rel_joints = joints.at[1:].add(-joints[parents[1:]])
    tmats = jnp.concatenate([rot_mats, rel_joints[:, :, None]], axis=2)    # (J,3,4)
    bottom = jnp.broadcast_to(
        jnp.array([0.0, 0.0, 0.0, 1.0], jnp.float32), (J, 1, 4))
    tmats = jnp.concatenate([tmats, bottom], axis=1)                       # (J,4,4)
    chain = jnp.zeros((J, 4, 4), jnp.float32).at[0].set(tmats[0])
    for lvl in LEVELS[1:]:
        par = parents[lvl]
        chain = chain.at[lvl].set(
            jnp.einsum('nij,njk->nik', chain[par], tmats[lvl]))
    posed_joints = chain[:, :3, 3]
    joints_h = jnp.concatenate(
        [joints, jnp.zeros((J, 1), jnp.float32)], axis=1)[:, :, None]      # (J,4,1)
    corr = chain @ joints_h                                                # (J,4,1)
    rel_transforms = chain - jnp.pad(corr, ((0, 0), (0, 0), (3, 0)))
    return posed_joints, rel_transforms


# ----------------------------------------------------------------------------
# The wrapper (synthetic stand-in for LightSMPLWrapper.forward, model_type='smpl')
# ----------------------------------------------------------------------------
class LightSMPLWrapperPallas:
    def __init__(self, smpl_conf, seed=0):
        self.smpl_conf = smpl_conf
        self.vertex_mapper = np.asarray(
            [[332, 9120], [6260, 9929], [2800, 9448], [4071, 616], [583, 6],
             [3216, 5770], [3226, 5780], [3387, 8846], [6617, 8463],
             [6624, 8474], [6787, 8635]])   # unused in forward (as in the original)
        key = jax.random.PRNGKey(seed)
        k = jax.random.split(key, 5)
        # Synthetic, deterministic "SMPL" parameters (natural layouts).
        self.v_template = 0.5 * jax.random.normal(k[0], (V, 3), jnp.float32)
        self.shapedirs = 0.01 * jax.random.normal(k[1], (V, 3, NB), jnp.float32)
        self.posedirs = 0.01 * jax.random.normal(k[2], (NP, V, 3), jnp.float32)
        self.J_regressor = jax.nn.softmax(
            jax.random.normal(k[3], (J, V), jnp.float32), axis=1)
        self.lbs_weights = jax.nn.softmax(
            4.0 * jax.random.normal(k[4], (V, J), jnp.float32), axis=1)
        self.parents = PARENTS

        # ---- kernel-friendly (lane-dense) layouts, precomputed once ----------
        # NOTE: for real-SMPL sizes these would be stored in bf16 to halve the
        # HBM stream; kept f32 here for bit-faithful comparison to the reference.

        # Combined blend dirs per coordinate: rows = [shapedirs | template | posedirs]
        sd = jnp.transpose(self.shapedirs, (1, 2, 0))                     # (3, NB, V)
        tpl = jnp.transpose(self.v_template)[:, None, :]                  # (3, 1, V)
        pd = self.posedirs.reshape(J - 1, 9, V, 3)                        # (23,9,V,3)
        pd = jnp.transpose(pd, (3, 1, 0, 2))                              # (3,9,23,V)
        pd = jnp.pad(pd, ((0, 0), (0, 0), (1, 0), (0, 0)))                # (3,9,24,V)
        pd = pd.reshape(3, NPF, V)                                        # (3,216,V)
        cdirs = jnp.concatenate([sd, tpl, pd], axis=1)                    # (3, NC, V)
        # flatten coordinates into lanes:   (NC, 3*V)  =  [ x-block | y-block | z-block ]
        self.cdirs_flat = jnp.concatenate([cdirs[0], cdirs[1], cdirs[2]], axis=1)

        # J_regressor folded into rest-joint dirs: j_c = [Jreg@sdirs | Jreg@templ] . [betas;1]
        jreg_sd = jnp.einsum('jv,vcb->cbj', self.J_regressor, self.shapedirs)   # (3,NB,J)
        jreg_tpl = jnp.einsum('jv,vc->cj', self.J_regressor, self.v_template)   # (3,J)
        self.jd_ext_t = jnp.concatenate([jreg_sd, jreg_tpl[:, None, :]], axis=1)  # (3,NB+1,J)

        # LBS weights transposed (J, V)
        self.lbsw_t = jnp.transpose(self.lbs_weights)

        # Kinematic-tree constants for the in-kernel FK.
        pg = np.zeros((J, J), np.float32)
        for j in range(1, J):
            pg[PARENTS[j], j] = 1.0            # column j selects parent(j)
        self.pg = jnp.asarray(pg)
        lmask = np.zeros((NL - 1, J), np.float32)
        for lvl in range(1, NL):
            lmask[lvl - 1, LEVELS[lvl]] = 1.0
        self.lmask = jnp.asarray(lmask)

        # jit the whole forward (dispatch overhead dominated un-jitted version)
        self._jit_forward = jax.jit(self._forward_impl)

    # -------------------------------------------------------------------------
    def _forward_impl(self, global_orient, body_pose69, betas, transl, scale):
        full_pose = jnp.concatenate(
            [global_orient, body_pose69], axis=1).astype(jnp.float32)     # (1, 72)
        pose_t = full_pose.reshape(J, 3).T                                # (3, J)
        betas1 = jnp.concatenate(
            [betas.astype(jnp.float32).reshape(1, NB),
             jnp.ones((1, 1), jnp.float32)], axis=1)                      # (1, NB+1)
        transl_vec = transl.astype(jnp.float32).reshape(3)
        scale_vec = scale.astype(jnp.float32).reshape(1)

        verts_t, joints_t = _fused_call(
            pose_t, betas1, self.cdirs_flat, self.jd_ext_t, self.pg,
            self.lmask, self.lbsw_t, transl_vec, scale_vec)

        vertices = verts_t.T[None]                                        # (1, V, 3)
        joints = joints_t.T[None]                                         # (1, J, 3)
        return vertices, joints

    # -------------------------------------------------------------------------
    def forward(self, smpl_params):
        body_pose = smpl_params['body_pose']
        if body_pose.shape[1] == 63:
            body_pose = jnp.concatenate([body_pose, body_pose[:, :6]], axis=1)
        scale = smpl_params['scale'] if ('scale' in smpl_params and
                                         smpl_params['scale'] is not None) else None
        scale = (jnp.ones((1, 1), jnp.float32) if scale is None
                 else jnp.asarray(scale, jnp.float32))
        vertices, joints = self._jit_forward(
            smpl_params['global_orient'], body_pose, smpl_params['betas'],
            smpl_params['transl'], scale)
        # TODO(synk): smplx VertexJointSelector extra joints / joint_mapper and
        # the optional ezmocap global-rotation branch are not modeled here.
        return {'vertices': vertices, 'joints': joints}


# ----------------------------------------------------------------------------
# Pure-JAX reference (natural layouts) for a correctness self-check.
# ----------------------------------------------------------------------------
def _reference_forward(model, global_orient, body_pose, betas, transl, scale):
    if body_pose.shape[1] == 63:
        body_pose = jnp.concatenate([body_pose, body_pose[:, :6]], axis=1)
    full_pose = jnp.concatenate([global_orient, body_pose], axis=1)
    rv = full_pose.reshape(J, 3)
    angle = jnp.sqrt(jnp.sum((rv + 1e-8) ** 2, axis=1, keepdims=True))
    u = rv / angle
    ux, uy, uz = u[:, 0], u[:, 1], u[:, 2]
    zeros = jnp.zeros_like(ux)
    K = jnp.stack([zeros, -uz, uy, uz, zeros, -ux, -uy, ux, zeros],
                  axis=1).reshape(J, 3, 3)
    cs = jnp.cos(angle)[:, :, None]
    sn = jnp.sin(angle)[:, :, None]
    rot = jnp.eye(3, dtype=jnp.float32)[None] + sn * K + (1.0 - cs) * (K @ K)

    b = betas.reshape(NB)
    v_shaped = model.v_template + jnp.einsum('b,vcb->vc', b, model.shapedirs)
    j_rest = model.J_regressor @ v_shaped
    pf = (rot[1:] - jnp.eye(3, dtype=jnp.float32)).reshape(-1)            # (207,)
    v_posed = v_shaped + jnp.einsum('p,pvc->vc', pf, model.posedirs)

    posed_joints, A = batch_rigid_transform(rot, j_rest, model.parents)
    T = jnp.einsum('vj,jab->vab', model.lbs_weights, A)
    vh = jnp.concatenate([v_posed, jnp.ones((V, 1), jnp.float32)], axis=1)
    verts = jnp.einsum('vab,vb->va', T, vh)[:, :3]
    vertices = (verts + transl) * scale
    joints = (posed_joints + transl) * scale
    return vertices[None], joints[None]


# ----------------------------------------------------------------------------
if __name__ == "__main__":
    smpl_conf = {'model_type': 'smpl', 'gender': 'neutral',
                 'num_betas': NB, 'ext': 'pkl'}
    model = LightSMPLWrapperPallas(smpl_conf, seed=0)

    key = jax.random.PRNGKey(0)
    k = jax.random.split(key, 4)
    smpl_params = {
        'global_orient': 0.1 * jax.random.normal(k[0], (1, 3), jnp.float32),
        'body_pose':     0.1 * jax.random.normal(k[1], (1, 63), jnp.float32),
        'betas':         0.5 * jax.random.normal(k[2], (1, NB), jnp.float32),
        'transl':        0.1 * jax.random.normal(k[3], (1, 3), jnp.float32),
        'scale':         jnp.asarray([[1.2]], jnp.float32),
    }

    out = model.forward(smpl_params)
    jax.block_until_ready(out['vertices'])
    jax.block_until_ready(out['joints'])

    assert out['vertices'].shape == (1, V, 3)
    assert out['joints'].shape == (1, J, 3)
    assert bool(jnp.all(jnp.isfinite(out['vertices'])))
    assert bool(jnp.all(jnp.isfinite(out['joints'])))

    # numerical self-check against the pure-JAX reference (loose tolerance to
    # absorb MXU/XLA matmul precision differences; catches layout/permutation bugs)
    ref_v, ref_j = _reference_forward(
        model, smpl_params['global_orient'], smpl_params['body_pose'],
        smpl_params['betas'], smpl_params['transl'], smpl_params['scale'])
    np.testing.assert_allclose(np.asarray(out['vertices']), np.asarray(ref_v),
                               rtol=5e-2, atol=5e-2)
    np.testing.assert_allclose(np.asarray(out['joints']), np.asarray(ref_j),
                               rtol=5e-2, atol=5e-2)

    print("KERNEL_OK")
</pallas_src>

<mosaic_0001>
module attributes {stable_mosaic.version = 11 : i64} {
  func.func @_smpl_fused_kernel(%arg0: memref<3x24xf32, #tpu.memory_space<vmem>>, %arg1: memref<1x11xf32, #tpu.memory_space<vmem>>, %arg2: memref<227x1536xf32, #tpu.memory_space<vmem>>, %arg3: memref<3x11x24xf32, #tpu.memory_space<vmem>>, %arg4: memref<24x24xf32, #tpu.memory_space<vmem>>, %arg5: memref<8x24xf32, #tpu.memory_space<vmem>>, %arg6: memref<24x512xf32, #tpu.memory_space<vmem>>, %arg7: memref<3xf32, #tpu.memory_space<smem>>, %arg8: memref<1xf32, #tpu.memory_space<smem>>, %arg9: memref<3x512xf32, #tpu.memory_space<vmem>>, %arg10: memref<3x24xf32, #tpu.memory_space<vmem>>) attributes {dimension_semantics = [], scalar_prefetch = 0 : i64, scratch_operands = 0 : i64, tpu.core_type = #tpu.core_type<tc>} {
    %c0 = arith.constant 0 : index
    %c0_0 = arith.constant 0 : index
    %0 = vector.load %arg0[%c0, %c0_0] : memref<3x24xf32, #tpu.memory_space<vmem>>, vector<1x24xf32>
    %c1 = arith.constant 1 : index
    %c0_1 = arith.constant 0 : index
    %1 = vector.load %arg0[%c1, %c0_1] : memref<3x24xf32, #tpu.memory_space<vmem>>, vector<1x24xf32>
    %c2 = arith.constant 2 : index
    %c0_2 = arith.constant 0 : index
    %2 = vector.load %arg0[%c2, %c0_2] : memref<3x24xf32, #tpu.memory_space<vmem>>, vector<1x24xf32>
    %cst = arith.constant 9.99999993E-9 : f32
    %3 = vector.broadcast %cst : f32 to vector<1x24xf32>
    %4 = arith.addf %0, %3 : vector<1x24xf32>
    %5 = arith.mulf %4, %4 : vector<1x24xf32>
    %cst_3 = arith.constant 9.99999993E-9 : f32
    %6 = vector.broadcast %cst_3 : f32 to vector<1x24xf32>
    %7 = arith.addf %1, %6 : vector<1x24xf32>
    %8 = arith.mulf %7, %7 : vector<1x24xf32>
    %9 = arith.addf %5, %8 : vector<1x24xf32>
    %cst_4 = arith.constant 9.99999993E-9 : f32
    %10 = vector.broadcast %cst_4 : f32 to vector<1x24xf32>
    %11 = arith.addf %2, %10 : vector<1x24xf32>
    %12 = arith.mulf %11, %11 : vector<1x24xf32>
    %13 = arith.addf %9, %12 : vector<1x24xf32>
    %14 = math.sqrt %13 : vector<1x24xf32>
    %cst_5 = arith.constant 1.000000e+00 : f32
    %15 = vector.broadcast %cst_5 : f32 to vector<1x24xf32>
    %16 = arith.divf %15, %14 : vector<1x24xf32>
    %17 = arith.mulf %0, %16 : vector<1x24xf32>
    %18 = arith.mulf %1, %16 : vector<1x24xf32>
    %19 = arith.mulf %2, %16 : vector<1x24xf32>
    %20 = math.cos %14 : vector<1x24xf32>
    %21 = math.sin %14 : vector<1x24xf32>
    %cst_6 = arith.constant 1.000000e+00 : f32
    %22 = vector.broadcast %cst_6 : f32 to vector<1x24xf32>
    %23 = arith.subf %22, %20 : vector<1x24xf32>
    %24 = arith.mulf %18, %18 : vector<1x24xf32>
    %25 = arith.mulf %19, %19 : vector<1x24xf32>
    %26 = arith.addf %24, %25 : vector<1x24xf32>
    %27 = arith.mulf %23, %26 : vector<1x24xf32>
    %cst_7 = arith.constant 1.000000e+00 : f32
    %28 = vector.broadcast %cst_7 : f32 to vector<1x24xf32>
    %29 = arith.subf %28, %27 : vector<1x24xf32>
    %cst_8 = arith.constant 0.000000e+00 : f32
    %30 = vector.broadcast %cst_8 : f32 to vector<1x24xf32>
    %31 = arith.subf %30, %21 : vector<1x24xf32>
    %32 = arith.mulf %31, %19 : vector<1x24xf32>
    %33 = arith.mulf %23, %17 : vector<1x24xf32>
    %34 = arith.mulf %33, %18 : vector<1x24xf32>
    %35 = arith.addf %32, %34 : vector<1x24xf32>
    %36 = arith.mulf %21, %18 : vector<1x24xf32>
    %37 = arith.mulf %23, %17 : vector<1x24xf32>
    %38 = arith.mulf %37, %19 : vector<1x24xf32>
    %39 = arith.addf %36, %38 : vector<1x24xf32>
    %40 = arith.mulf %21, %19 : vector<1x24xf32>
    %41 = arith.mulf %23, %17 : vector<1x24xf32>
    %42 = arith.mulf %41, %18 : vector<1x24xf32>
    %43 = arith.addf %40, %42 : vector<1x24xf32>
    %44 = arith.mulf %17, %17 : vector<1x24xf32>
    %45 = arith.mulf %19, %19 : vector<1x24xf32>
    %46 = arith.addf %44, %45 : vector<1x24xf32>
    %47 = arith.mulf %23, %46 : vector<1x24xf32>
    %cst_9 = arith.constant 1.000000e+00 : f32
    %48 = vector.broadcast %cst_9 : f32 to vector<1x24xf32>
    %49 = arith.subf %48, %47 : vector<1x24xf32>
    %cst_10 = arith.constant 0.000000e+00 : f32
    %50 = vector.broadcast %cst_10 : f32 to vector<1x24xf32>
    %51 = arith.subf %50, %21 : vector<1x24xf32>
    %52 = arith.mulf %51, %17 : vector<1x24xf32>
    %53 = arith.mulf %23, %18 : vector<1x24xf32>
    %54 = arith.mulf %53, %19 : vector<1x24xf32>
    %55 = arith.addf %52, %54 : vector<1x24xf32>
    %cst_11 = arith.constant 0.000000e+00 : f32
    %56 = vector.broadcast %cst_11 : f32 to vector<1x24xf32>
    %57 = arith.subf %56, %21 : vector<1x24xf32>
    %58 = arith.mulf %57, %18 : vector<1x24xf32>
    %59 = arith.mulf %23, %17 : vector<1x24xf32>
    %60 = arith.mulf %59, %19 : vector<1x24xf32>
    %61 = arith.addf %58, %60 : vector<1x24xf32>
    %62 = arith.mulf %21, %17 : vector<1x24xf32>
    %63 = arith.mulf %23, %18 : vector<1x24xf32>
    %64 = arith.mulf %63, %19 : vector<1x24xf32>
    %65 = arith.addf %62, %64 : vector<1x24xf32>
    %66 = arith.mulf %17, %17 : vector<1x24xf32>
    %67 = arith.mulf %18, %18 : vector<1x24xf32>
    %68 = arith.addf %66, %67 : vector<1x24xf32>
    %69 = arith.mulf %23, %68 : vector<1x24xf32>
    %cst_12 = arith.constant 1.000000e+00 : f32
    %70 = vector.broadcast %cst_12 : f32 to vector<1x24xf32>
    %71 = arith.subf %70, %69 : vector<1x24xf32>
    %c0_13 = arith.constant 0 : index
    %c0_14 = arith.constant 0 : index
    %72 = vector.load %arg1[%c0_13, %c0_14] : memref<1x11xf32, #tpu.memory_space<vmem>>, vector<1x11xf32>
    %c0_15 = arith.constant 0 : index
    %c0_16 = arith.constant 0 : index
    %c0_17 = arith.constant 0 : index
    %73 = vector.load %arg3[%c0_15, %c0_16, %c0_17] : memref<3x11x24xf32, #tpu.memory_space<vmem>>, vector<1x11x24xf32>
    %74 = vector.shape_cast %73 : vector<1x11x24xf32> to vector<11x24xf32>
    %cst_18 = arith.constant dense<0.000000e+00> : vector<1x24xf32>
    %75 = tpu.matmul %72, %74, %cst_18 {dimension_numbers = #tpu.dot_dimension_numbers<[1], [0], [0], [1], [0, 0, 1, 1], [], []>} : vector<1x11xf32>, vector<11x24xf32>, vector<1x24xf32> -> vector<1x24xf32>
    %c1_19 = arith.constant 1 : index
    %c0_20 = arith.constant 0 : index
    %c0_21 = arith.constant 0 : index
    %76 = vector.load %arg3[%c1_19, %c0_20, %c0_21] : memref<3x11x24xf32, #tpu.memory_space<vmem>>, vector<1x11x24xf32>
    %77 = vector.shape_cast %76 : vector<1x11x24xf32> to vector<11x24xf32>
    %cst_22 = arith.constant dense<0.000000e+00> : vector<1x24xf32>
    %78 = tpu.matmul %72, %77, %cst_22 {dimension_numbers = #tpu.dot_dimension_numbers<[1], [0], [0], [1], [0, 0, 1, 1], [], []>} : vector<1x11xf32>, vector<11x24xf32>, vector<1x24xf32> -> vector<1x24xf32>
    %c2_23 = arith.constant 2 : index
    %c0_24 = arith.constant 0 : index
    %c0_25 = arith.constant 0 : index
    %79 = vector.load %arg3[%c2_23, %c0_24, %c0_25] : memref<3x11x24xf32, #tpu.memory_space<vmem>>, vector<1x11x24xf32>
    %80 = vector.shape_cast %79 : vector<1x11x24xf32> to vector<11x24xf32>
    %cst_26 = arith.constant dense<0.000000e+00> : vector<1x24xf32>
    %81 = tpu.matmul %72, %80, %cst_26 {dimension_numbers = #tpu.dot_dimension_numbers<[1], [0], [0], [1], [0, 0, 1, 1], [], []>} : vector<1x11xf32>, vector<11x24xf32>, vector<1x24xf32> -> vector<1x24xf32>
    %c0_27 = arith.constant 0 : index
    %c0_28 = arith.constant 0 : index
    %82 = vector.load %arg4[%c0_27, %c0_28] : memref<24x24xf32, #tpu.memory_space<vmem>>, vector<24x24xf32>
    %83 = tpu.concatenate %75, %78, %81 in 0 : vector<1x24xf32>, vector<1x24xf32>, vector<1x24xf32> -> vector<3x24xf32>
    %cst_29 = arith.constant dense<0.000000e+00> : vector<3x24xf32>
    %84 = tpu.matmul %83, %82, %cst_29 {dimension_numbers = #tpu.dot_dimension_numbers<[1], [0], [0], [1], [0, 0, 1, 1], [], []>} : vector<3x24xf32>, vector<24x24xf32>, vector<3x24xf32> -> vector<3x24xf32>
    %85 = arith.subf %83, %84 : vector<3x24xf32>
    %86 = vector.extract_strided_slice %85 {offsets = [0, 0], sizes = [1, 24], strides = [1, 1]} : vector<3x24xf32> to vector<1x24xf32>
    %87 = vector.extract_strided_slice %85 {offsets = [1, 0], sizes = [1, 24], strides = [1, 1]} : vector<3x24xf32> to vector<1x24xf32>
    %88 = vector.extract_strided_slice %85 {offsets = [2, 0], sizes = [1, 24], strides = [1, 1]} : vector<3x24xf32> to vector<1x24xf32>
    %89 = tpu.concatenate %29, %35, %39, %43, %49, %55, %61, %65, %71, %86, %87, %88 in 0 : vector<1x24xf32>, vector<1x24xf32>, vector<1x24xf32>, vector<1x24xf32>, vector<1x24xf32>, vector<1x24xf32>, vector<1x24xf32>, vector<1x24xf32>, vector<1x24xf32>, vector<1x24xf32>, vector<1x24xf32>, vector<1x24xf32> -> vector<12x24xf32>
    %c0_30 = arith.constant 0 : index
    %c0_31 = arith.constant 0 : index
    %90 = vector.load %arg5[%c0_30, %c0_31] : memref<8x24xf32, #tpu.memory_space<vmem>>, vector<8x24xf32>
    %cst_32 = arith.constant dense<0.000000e+00> : vector<12x24xf32>
    %91 = tpu.matmul %89, %82, %cst_32 {dimension_numbers = #tpu.dot_dimension_numbers<[1], [0], [0], [1], [0, 0, 1, 1], [], []>} : vector<12x24xf32>, vector<24x24xf32>, vector<12x24xf32> -> vector<12x24xf32>
    %92 = vector.extract_strided_slice %91 {offsets = [0, 0], sizes = [1, 24], strides = [1, 1]} : vector<12x24xf32> to vector<1x24xf32>
    %93 = vector.extract_strided_slice %91 {offsets = [1, 0], sizes = [1, 24], strides = [1, 1]} : vector<12x24xf32> to vector<1x24xf32>
    %94 = vector.extract_strided_slice %91 {offsets = [2, 0], sizes = [1, 24], strides = [1, 1]} : vector<12x24xf32> to vector<1x24xf32>
    %95 = vector.extract_strided_slice %91 {offsets = [3, 0], sizes = [1, 24], strides = [1, 1]} : vector<12x24xf32> to vector<1x24xf32>
    %96 = vector.extract_strided_slice %91 {offsets = [4, 0], sizes = [1, 24], strides = [1, 1]} : vector<12x24xf32> to vector<1x24xf32>
    %97 = vector.extract_strided_slice %91 {offsets = [5, 0], sizes = [1, 24], strides = [1, 1]} : vector<12x24xf32> to vector<1x24xf32>
    %98 = vector.extract_strided_slice %91 {offsets = [6, 0], sizes = [1, 24], strides = [1, 1]} : vector<12x24xf32> to vector<1x24xf32>
    %99 = vector.extract_strided_slice %91 {offsets = [7, 0], sizes = [1, 24], strides = [1, 1]} : vector<12x24xf32> to vector<1x24xf32>
    %100 = vector.extract_strided_slice %91 {offsets = [8, 0], sizes = [1, 24], strides = [1, 1]} : vector<12x24xf32> to vector<1x24xf32>
    %101 = vector.extract_strided_slice %91 {offsets = [9, 0], sizes = [1, 24], strides = [1, 1]} : vector<12x24xf32> to vector<1x24xf32>
    %102 = vector.extract_strided_slice %91 {offsets = [10, 0], sizes = [1, 24], strides = [1, 1]} : vector<12x24xf32> to vector<1x24xf32>
    %103 = vector.extract_strided_slice %91 {offsets = [11, 0], sizes = [1, 24], strides = [1, 1]} : vector<12x24xf32> to vector<1x24xf32>
    %104 = arith.mulf %92, %29 : vector<1x24xf32>
    %105 = arith.mulf %93, %43 : vector<1x24xf32>
    %106 = arith.addf %104, %105 : vector<1x24xf32>
    %107 = arith.mulf %94, %61 : vector<1x24xf32>
    %108 = arith.addf %106, %107 : vector<1x24xf32>
    %109 = arith.mulf %92, %35 : vector<1x24xf32>
    %110 = arith.mulf %93, %49 : vector<1x24xf32>
    %111 = arith.addf %109, %110 : vector<1x24xf32>
    %112 = arith.mulf %94, %65 : vector<1x24xf32>
    %113 = arith.addf %111, %112 : vector<1x24xf32>
    %114 = arith.mulf %92, %39 : vector<1x24xf32>
    %115 = arith.mulf %93, %55 : vector<1x24xf32>
    %116 = arith.addf %114, %115 : vector<1x24xf32>
    %117 = arith.mulf %94, %71 : vector<1x24xf32>
    %118 = arith.addf %116, %117 : vector<1x24xf32>
    %119 = arith.mulf %95, %29 : vector<1x24xf32>
    %120 = arith.mulf %96, %43 : vector<1x24xf32>
    %121 = arith.addf %119, %120 : vector<1x24xf32>
    %122 = arith.mulf %97, %61 : vector<1x24xf32>
    %123 = arith.addf %121, %122 : vector<1x24xf32>
    %124 = arith.mulf %95, %35 : vector<1x24xf32>
    %125 = arith.mulf %96, %49 : vector<1x24xf32>
    %126 = arith.addf %124, %125 : vector<1x24xf32>
    %127 = arith.mulf %97, %65 : vector<1x24xf32>
    %128 = arith.addf %126, %127 : vector<1x24xf32>
    %129 = arith.mulf %95, %39 : vector<1x24xf32>
    %130 = arith.mulf %96, %55 : vector<1x24xf32>
    %131 = arith.addf %129, %130 : vector<1x24xf32>
    %132 = arith.mulf %97, %71 : vector<1x24xf32>
    %133 = arith.addf %131, %132 : vector<1x24xf32>
    %134 = arith.mulf %98, %29 : vector<1x24xf32>
    %135 = arith.mulf %99, %43 : vector<1x24xf32>
    %136 = arith.addf %134, %135 : vector<1x24xf32>
    %137 = arith.mulf %100, %61 : vector<1x24xf32>
    %138 = arith.addf %136, %137 : vector<1x24xf32>
    %139 = arith.mulf %98, %35 : vector<1x24xf32>
    %140 = arith.mulf %99, %49 : vector<1x24xf32>
    %141 = arith.addf %139, %140 : vector<1x24xf32>
    %142 = arith.mulf %100, %65 : vector<1x24xf32>
    %143 = arith.addf %141, %142 : vector<1x24xf32>
    %144 = arith.mulf %98, %39 : vector<1x24xf32>
    %145 = arith.mulf %99, %55 : vector<1x24xf32>
    %146 = arith.addf %144, %145 : vector<1x24xf32>
    %147 = arith.mulf %100, %71 : vector<1x24xf32>
    %148 = arith.addf %146, %147 : vector<1x24xf32>
    %149 = arith.mulf %92, %86 : vector<1x24xf32>
    %150 = arith.mulf %93, %87 : vector<1x24xf32>
    %151 = arith.addf %149, %150 : vector<1x24xf32>
    %152 = arith.mulf %94, %88 : vector<1x24xf32>
    %153 = arith.addf %151, %152 : vector<1x24xf32>
    %154 = arith.addf %153, %101 : vector<1x24xf32>
    %155 = arith.mulf %95, %86 : vector<1x24xf32>
    %156 = arith.mulf %96, %87 : vector<1x24xf32>
    %157 = arith.addf %155, %156 : vector<1x24xf32>
    %158 = arith.mulf %97, %88 : vector<1x24xf32>
    %159 = arith.addf %157, %158 : vector<1x24xf32>
    %160 = arith.addf %159, %102 : vector<1x24xf32>
    %161 = arith.mulf %98, %86 : vector<1x24xf32>
    %162 = arith.mulf %99, %87 : vector<1x24xf32>
    %163 = arith.addf %161, %162 : vector<1x24xf32>
    %164 = arith.mulf %100, %88 : vector<1x24xf32>
    %165 = arith.addf %163, %164 : vector<1x24xf32>
    %166 = arith.addf %165, %103 : vector<1x24xf32>
    %167 = tpu.concatenate %108, %113, %118, %123, %128, %133, %138, %143, %148, %154, %160, %166 in 0 : vector<1x24xf32>, vector<1x24xf32>, vector<1x24xf32>, vector<1x24xf32>, vector<1x24xf32>, vector<1x24xf32>, vector<1x24xf32>, vector<1x24xf32>, vector<1x24xf32>, vector<1x24xf32>, vector<1x24xf32>, vector<1x24xf32> -> vector<12x24xf32>
    %168 = vector.extract_strided_slice %90 {offsets = [0, 0], sizes = [1, 24], strides = [1, 1]} : vector<8x24xf32> to vector<1x24xf32>
    %cst_33 = arith.constant 0.000000e+00 : f32
    %169 = vector.broadcast %cst_33 : f32 to vector<1x24xf32>
    %170 = arith.cmpf ogt, %168, %169 : vector<1x24xf32>
    %171 = vector.shape_cast %170 : vector<1x24xi1> to vector<1x24xi1>
    %172 = vector.broadcast %171 : vector<1x24xi1> to vector<12x24xi1>
    %173 = arith.select %172, %167, %89 : vector<12x24xi1>, vector<12x24xf32>
    %cst_34 = arith.constant dense<0.000000e+00> : vector<12x24xf32>
    %174 = tpu.matmul %173, %82, %cst_34 {dimension_numbers = #tpu.dot_dimension_numbers<[1], [0], [0], [1], [0, 0, 1, 1], [], []>} : vector<12x24xf32>, vector<24x24xf32>, vector<12x24xf32> -> vector<12x24xf32>
    %175 = vector.extract_strided_slice %174 {offsets = [0, 0], sizes = [1, 24], strides = [1, 1]} : vector<12x24xf32> to vector<1x24xf32>
    %176 = vector.extract_strided_slice %174 {offsets = [1, 0], sizes = [1, 24], strides = [1, 1]} : vector<12x24xf32> to vector<1x24xf32>
    %177 = vector.extract_strided_slice %174 {offsets = [2, 0], sizes = [1, 24], strides = [1, 1]} : vector<12x24xf32> to vector<1x24xf32>
    %178 = vector.extract_strided_slice %174 {offsets = [3, 0], sizes = [1, 24], strides = [1, 1]} : vector<12x24xf32> to vector<1x24xf32>
    %179 = vector.extract_strided_slice %174 {offsets = [4, 0], sizes = [1, 24], strides = [1, 1]} : vector<12x24xf32> to vector<1x24xf32>
    %180 = vector.extract_strided_slice %174 {offsets = [5, 0], sizes = [1, 24], strides = [1, 1]} : vector<12x24xf32> to vector<1x24xf32>
    %181 = vector.extract_strided_slice %174 {offsets = [6, 0], sizes = [1, 24], strides = [1, 1]} : vector<12x24xf32> to vector<1x24xf32>
    %182 = vector.extract_strided_slice %174 {offsets = [7, 0], sizes = [1, 24], strides = [1, 1]} : vector<12x24xf32> to vector<1x24xf32>
    %183 = vector.extract_strided_slice %174 {offsets = [8, 0], sizes = [1, 24], strides = [1, 1]} : vector<12x24xf32> to vector<1x24xf32>
    %184 = vector.extract_strided_slice %174 {offsets = [9, 0], sizes = [1, 24], strides = [1, 1]} : vector<12x24xf32> to vector<1x24xf32>
    %185 = vector.extract_strided_slice %174 {offsets = [10, 0], sizes = [1, 24], strides = [1, 1]} : vector<12x24xf32> to vector<1x24xf32>
    %186 = vector.extract_strided_slice %174 {offsets = [11, 0], sizes = [1, 24], strides = [1, 1]} : vector<12x24xf32> to vector<1x24xf32>
    %187 = arith.mulf %175, %29 : vector<1x24xf32>
    %188 = arith.mulf %176, %43 : vector<1x24xf32>
    %189 = arith.addf %187, %188 : vector<1x24xf32>
    %190 = arith.mulf %177, %61 : vector<1x24xf32>
    %191 = arith.addf %189, %190 : vector<1x24xf32>
    %192 = arith.mulf %175, %35 : vector<1x24xf32>
    %193 = arith.mulf %176, %49 : vector<1x24xf32>
    %194 = arith.addf %192, %193 : vector<1x24xf32>
    %195 = arith.mulf %177, %65 : vector<1x24xf32>
    %196 = arith.addf %194, %195 : vector<1x24xf32>
    %197 = arith.mulf %175, %39 : vector<1x24xf32>
    %198 = arith.mulf %176, %55 : vector<1x24xf32>
    %199 = arith.addf %197, %198 : vector<1x24xf32>
    %200 = arith.mulf %177, %71 : vector<1x24xf32>
    %201 = arith.addf %199, %200 : vector<1x24xf32>
    %202 = arith.mulf %178, %29 : vector<1x24xf32>
    %203 = arith.mulf %179, %43 : vector<1x24xf32>
    %204 = arith.addf %202, %203 : vector<1x24xf32>
    %205 = arith.mulf %180, %61 : vector<1x24xf32>
    %206 = arith.addf %204, %205 : vector<1x24xf32>
    %207 = arith.mulf %178, %35 : vector<1x24xf32>
    %208 = arith.mulf %179, %49 : vector<1x24xf32>
    %209 = arith.addf %207, %208 : vector<1x24xf32>
    %210 = arith.mulf %180, %65 : vector<1x24xf32>
    %211 = arith.addf %209, %210 : vector<1x24xf32>
    %212 = arith.mulf %178, %39 : vector<1x24xf32>
    %213 = arith.mulf %179, %55 : vector<1x24xf32>
    %214 = arith.addf %212, %213 : vector<1x24xf32>
    %215 = arith.mulf %180, %71 : vector<1x24xf32>
    %216 = arith.addf %214, %215 : vector<1x24xf32>
    %217 = arith.mulf %181, %29 : vector<1x24xf32>
    %218 = arith.mulf %182, %43 : vector<1x24xf32>
    %219 = arith.addf %217, %218 : vector<1x24xf32>
    %220 = arith.mulf %183, %61 : vector<1x24xf32>
    %221 = arith.addf %219, %220 : vector<1x24xf32>
    %222 = arith.mulf %181, %35 : vector<1x24xf32>
    %223 = arith.mulf %182, %49 : vector<1x24xf32>
    %224 = arith.addf %222, %223 : vector<1x24xf32>
    %225 = arith.mulf %183, %65 : vector<1x24xf32>
    %226 = arith.addf %224, %225 : vector<1x24xf32>
    %227 = arith.mulf %181, %39 : vector<1x24xf32>
    %228 = arith.mulf %182, %55 : vector<1x24xf32>
    %229 = arith.addf %227, %228 : vector<1x24xf32>
    %230 = arith.mulf %183, %71 : vector<1x24xf32>
    %231 = arith.addf %229, %230 : vector<1x24xf32>
    %232 = arith.mulf %175, %86 : vector<1x24xf32>
    %233 = arith.mulf %176, %87 : vector<1x24xf32>
    %234 = arith.addf %232, %233 : vector<1x24xf32>
    %235 = arith.mulf %177, %88 : vector<1x24xf32>
    %236 = arith.addf %234, %235 : vector<1x24xf32>
    %237 = arith.addf %236, %184 : vector<1x24xf32>
    %238 = arith.mulf %178, %86 : vector<1x24xf32>
    %239 = arith.mulf %179, %87 : vector<1x24xf32>
    %240 = arith.addf %238, %239 : vector<1x24xf32>
    %241 = arith.mulf %180, %88 : vector<1x24xf32>
    %242 = arith.addf %240, %241 : vector<1x24xf32>
    %243 = arith.addf %242, %185 : vector<1x24xf32>
    %244 = arith.mulf %181, %86 : vector<1x24xf32>
    %245 = arith.mulf %182, %87 : vector<1x24xf32>
    %246 = arith.addf %244, %245 : vector<1x24xf32>
    %247 = arith.mulf %183, %88 : vector<1x24xf32>
    %248 = arith.addf %246, %247 : vector<1x24xf32>
    %249 = arith.addf %248, %186 : vector<1x24xf32>
    %250 = tpu.concatenate %191, %196, %201, %206, %211, %216, %221, %226, %231, %237, %243, %249 in 0 : vector<1x24xf32>, vector<1x24xf32>, vector<1x24xf32>, vector<1x24xf32>, vector<1x24xf32>, vector<1x24xf32>, vector<1x24xf32>, vector<1x24xf32>, vector<1x24xf32>, vector<1x24xf32>, vector<1x24xf32>, vector<1x24xf32> -> vector<12x24xf32>
    %251 = vector.extract_strided_slice %90 {offsets = [1, 0], sizes = [1, 24], strides = [1, 1]} : vector<8x24xf32> to vector<1x24xf32>
    %cst_35 = arith.constant 0.000000e+00 : f32
    %252 = vector.broadcast %cst_35 : f32 to vector<1x24xf32>
    %253 = arith.cmpf ogt, %251, %252 : vector<1x24xf32>
    %254 = vector.shape_cast %253 : vector<1x24xi1> to vector<1x24xi1>
    %255 = vector.broadcast %254 : vector<1x24xi1> to vector<12x24xi1>
    %256 = arith.select %255, %250, %173 : vector<12x24xi1>, vector<12x24xf32>
    %cst_36 = arith.constant dense<0.000000e+00> : vector<12x24xf32>
    %257 = tpu.matmul %256, %82, %cst_36 {dimension_numbers = #tpu.dot_dimension_numbers<[1], [0], [0], [1], [0, 0, 1, 1], [], []>} : vector<12x24xf32>, vector<24x24xf32>, vector<12x24xf32> -> vector<12x24xf32>
    %258 = vector.extract_strided_slice %257 {offsets = [0, 0], sizes = [1, 24], strides = [1, 1]} : vector<12x24xf32> to vector<1x24xf32>
    %259 = vector.extract_strided_slice %257 {offsets = [1, 0], sizes = [1, 24], strides = [1, 1]} : vector<12x24xf32> to vector<1x24xf32>
    %260 = vector.extract_strided_slice %257 {offsets = [2, 0], sizes = [1, 24], strides = [1, 1]} : vector<12x24xf32> to vector<1x24xf32>
    %261 = vector.extract_strided_slice %257 {offsets = [3, 0], sizes = [1, 24], strides = [1, 1]} : vector<12x24xf32> to vector<1x24xf32>
    %262 = vector.extract_strided_slice %257 {offsets = [4, 0], sizes = [1, 24], strides = [1, 1]} : vector<12x24xf32> to vector<1x24xf32>
    %263 = vector.extract_strided_slice %257 {offsets = [5, 0], sizes = [1, 24], strides = [1, 1]} : vector<12x24xf32> to vector<1x24xf32>
    %264 = vector.extract_strided_slice %257 {offsets = [6, 0], sizes = [1, 24], strides = [1, 1]} : vector<12x24xf32> to vector<1x24xf32>
    %265 = vector.extract_strided_slice %257 {offsets = [7, 0], sizes = [1, 24], strides = [1, 1]} : vector<12x24xf32> to vector<1x24xf32>
    %266 = vector.extract_strided_slice %257 {offsets = [8, 0], sizes = [1, 24], strides = [1, 1]} : vector<12x24xf32> to vector<1x24xf32>
    %267 = vector.extract_strided_slice %257 {offsets = [9, 0], sizes = [1, 24], strides = [1, 1]} : vector<12x24xf32> to vector<1x24xf32>
    %268 = vector.extract_strided_slice %257 {offsets = [10, 0], sizes = [1, 24], strides = [1, 1]} : vector<12x24xf32> to vector<1x24xf32>
    %269 = vector.extract_strided_slice %257 {offsets = [11, 0], sizes = [1, 24], strides = [1, 1]} : vector<12x24xf32> to vector<1x24xf32>
    %270 = arith.mulf %258, %29 : vector<1x24xf32>
    %271 = arith.mulf %259, %43 : vector<1x24xf32>
    %272 = arith.addf %270, %271 : vector<1x24xf32>
    %273 = arith.mulf %260, %61 : vector<1x24xf32>
    %274 = arith.addf %272, %273 : vector<1x24xf32>
    %275 = arith.mulf %258, %35 : vector<1x24xf32>
    %276 = arith.mulf %259, %49 : vector<1x24xf32>
    %277 = arith.addf %275, %276 : vector<1x24xf32>
    %278 = arith.mulf %260, %65 : vector<1x24xf32>
    %279 = arith.addf %277, %278 : vector<1x24xf32>
    %280 = arith.mulf %258, %39 : vector<1x24xf32>
    %281 = arith.mulf %259, %55 : vector<1x24xf32>
    %282 = arith.addf %280, %281 : vector<1x24xf32>
    %283 = arith.mulf %260, %71 : vector<1x24xf32>
    %284 = arith.addf %282, %283 : vector<1x24xf32>
    %285 = arith.mulf %261, %29 : vector<1x24xf32>
    %286 = arith.mulf %262, %43 : vector<1x24xf32>
    %287 = arith.addf %285, %286 : vector<1x24xf32>
    %288 = arith.mulf %263, %61 : vector<1x24xf32>
    %289 = arith.addf %287, %288 : vector<1x24xf32>
    %290 = arith.mulf %261, %35 : vector<1x24xf32>
    %291 = arith.mulf %262, %49 : vector<1x24xf32>
    %292 = arith.addf %290, %291 : vector<1x24xf32>
    %293 = arith.mulf %263, %65 : vector<1x24xf32>
    %294 = arith.addf %292, %293 : vector<1x24xf32>
    %295 = arith.mulf %261, %39 : vector<1x24xf32>
    %296 = arith.mulf %262, %55 : vector<1x24xf32>
    %297 = arith.addf %295, %296 : vector<1x24xf32>
    %298 = arith.mulf %263, %71 : vector<1x24xf32>
    %299 = arith.addf %297, %298 : vector<1x24xf32>
    %300 = arith.mulf %264, %29 : vector<1x24xf32>
    %301 = arith.mulf %265, %43 : vector<1x24xf32>
    %302 = arith.addf %300, %301 : vector<1x24xf32>
    %303 = arith.mulf %266, %61 : vector<1x24xf32>
    %304 = arith.addf %302, %303 : vector<1x24xf32>
    %305 = arith.mulf %264, %35 : vector<1x24xf32>
    %306 = arith.mulf %265, %49 : vector<1x24xf32>
    %307 = arith.addf %305, %306 : vector<1x24xf32>
    %308 = arith.mulf %266, %65 : vector<1x24xf32>
    %309 = arith.addf %307, %308 : vector<1x24xf32>
    %310 = arith.mulf %264, %39 : vector<1x24xf32>
    %311 = arith.mulf %265, %55 : vector<1x24xf32>
    %312 = arith.addf %310, %311 : vector<1x24xf32>
    %313 = arith.mulf %266, %71 : vector<1x24xf32>
    %314 = arith.addf %312, %313 : vector<1x24xf32>
    %315 = arith.mulf %258, %86 : vector<1x24xf32>
    %316 = arith.mulf %259, %87 : vector<1x24xf32>
    %317 = arith.addf %315, %316 : vector<1x24xf32>
    %318 = arith.mulf %260, %88 : vector<1x24xf32>
    %319 = arith.addf %317, %318 : vector<1x24xf32>
    %320 = arith.addf %319, %267 : vector<1x24xf32>
    %321 = arith.mulf %261, %86 : vector<1x24xf32>
    %322 = arith.mulf %262, %87 : vector<1x24xf32>
    %323 = arith.addf %321, %322 : vector<1x24xf32>
    %324 = arith.mulf %263, %88 : vector<1x24xf32>
    %325 = arith.addf %323, %324 : vector<1x24xf32>
    %326 = arith.addf %325, %268 : vector<1x24xf32>
    %327 = arith.mulf %264, %86 : vector<1x24xf32>
    %328 = arith.mulf %265, %87 : vector<1x24xf32>
    %329 = arith.addf %327, %328 : vector<1x24xf32>
    %330 = arith.mulf %266, %88 : vector<1x24xf32>
    %331 = arith.addf %329, %330 : vector<1x24xf32>
    %332 = arith.addf %331, %269 : vector<1x24xf32>
    %333 = tpu.concatenate %274, %279, %284, %289, %294, %299, %304, %309, %314, %320, %326, %332 in 0 : vector<1x24xf32>, vector<1x24xf32>, vector<1x24xf32>, vector<1x24xf32>, vector<1x24xf32>, vector<1x24xf32>, vector<1x24xf32>, vector<1x24xf32>, vector<1x24xf32>, vector<1x24xf32>, vector<1x24xf32>, vector<1x24xf32> -> vector<12x24xf32>
    %334 = vector.extract_strided_slice %90 {offsets = [2, 0], sizes = [1, 24], strides = [1, 1]} : vector<8x24xf32> to vector<1x24xf32>
    %cst_37 = arith.constant 0.000000e+00 : f32
    %335 = vector.broadcast %cst_37 : f32 to vector<1x24xf32>
    %336 = arith.cmpf ogt, %334, %335 : vector<1x24xf32>
    %337 = vector.shape_cast %336 : vector<1x24xi1> to vector<1x24xi1>
    %338 = vector.broadcast %337 : vector<1x24xi1> to vector<12x24xi1>
    %339 = arith.select %338, %333, %256 : vector<12x24xi1>, vector<12x24xf32>
    %cst_38 = arith.constant dense<0.000000e+00> : vector<12x24xf32>
    %340 = tpu.matmul %339, %82, %cst_38 {dimension_numbers = #tpu.dot_dimension_numbers<[1], [0], [0], [1], [0, 0, 1, 1], [], []>} : vector<12x24xf32>, vector<24x24xf32>, vector<12x24xf32> -> vector<12x24xf32>
    %341 = vector.extract_strided_slice %340 {offsets = [0, 0], sizes = [1, 24], strides = [1, 1]} : vector<12x24xf32> to vector<1x24xf32>
    %342 = vector.extract_strided_slice %340 {offsets = [1, 0], sizes = [1, 24], strides = [1, 1]} : vector<12x24xf32> to vector<1x24xf32>
    %343 = vector.extract_strided_slice %340 {offsets = [2, 0], sizes = [1, 24], strides = [1, 1]} : vector<12x24xf32> to vector<1x24xf32>
    %344 = vector.extract_strided_slice %340 {offsets = [3, 0], sizes = [1, 24], strides = [1, 1]} : vector<12x24xf32> to vector<1x24xf32>
    %345 = vector.extract_strided_slice %340 {offsets = [4, 0], sizes = [1, 24], strides = [1, 1]} : vector<12x24xf32> to vector<1x24xf32>
    %346 = vector.extract_strided_slice %340 {offsets = [5, 0], sizes = [1, 24], strides = [1, 1]} : vector<12x24xf32> to vector<1x24xf32>
    %347 = vector.extract_strided_slice %340 {offsets = [6, 0], sizes = [1, 24], strides = [1, 1]} : vector<12x24xf32> to vector<1x24xf32>
    %348 = vector.extract_strided_slice %340 {offsets = [7, 0], sizes = [1, 24], strides = [1, 1]} : vector<12x24xf32> to vector<1x24xf32>
    %349 = vector.extract_strided_slice %340 {offsets = [8, 0], sizes = [1, 24], strides = [1, 1]} : vector<12x24xf32> to vector<1x24xf32>
    %350 = vector.extract_strided_slice %340 {offsets = [9, 0], sizes = [1, 24], strides = [1, 1]} : vector<12x24xf32> to vector<1x24xf32>
    %351 = vector.extract_strided_slice %340 {offsets = [10, 0], sizes = [1, 24], strides = [1, 1]} : vector<12x24xf32> to vector<1x24xf32>
    %352 = vector.extract_strided_slice %340 {offsets = [11, 0], sizes = [1, 24], strides = [1, 1]} : vector<12x24xf32> to vector<1x24xf32>
    %353 = arith.mulf %341, %29 : vector<1x24xf32>
    %354 = arith.mulf %342, %43 : vector<1x24xf32>
    %355 = arith.addf %353, %354 : vector<1x24xf32>
    %356 = arith.mulf %343, %61 : vector<1x24xf32>
    %357 = arith.addf %355, %356 : vector<1x24xf32>
    %358 = arith.mulf %341, %35 : vector<1x24xf32>
    %359 = arith.mulf %342, %49 : vector<1x24xf32>
    %360 = arith.addf %358, %359 : vector<1x24xf32>
    %361 = arith.mulf %343, %65 : vector<1x24xf32>
    %362 = arith.addf %360, %361 : vector<1x24xf32>
    %363 = arith.mulf %341, %39 : vector<1x24xf32>
    %364 = arith.mulf %342, %55 : vector<1x24xf32>
    %365 = arith.addf %363, %364 : vector<1x24xf32>
    %366 = arith.mulf %343, %71 : vector<1x24xf32>
    %367 = arith.addf %365, %366 : vector<1x24xf32>
    %368 = arith.mulf %344, %29 : vector<1x24xf32>
    %369 = arith.mulf %345, %43 : vector<1x24xf32>
    %370 = arith.addf %368, %369 : vector<1x24xf32>
    %371 = arith.mulf %346, %61 : vector<1x24xf32>
    %372 = arith.addf %370, %371 : vector<1x24xf32>
    %373 = arith.mulf %344, %35 : vector<1x24xf32>
    %374 = arith.mulf %345, %49 : vector<1x24xf32>
    %375 = arith.addf %373, %374 : vector<1x24xf32>
    %376 = arith.mulf %346, %65 : vector<1x24xf32>
    %377 = arith.addf %375, %376 : vector<1x24xf32>
    %378 = arith.mulf %344, %39 : vector<1x24xf32>
    %379 = arith.mulf %345, %55 : vector<1x24xf32>
    %380 = arith.addf %378, %379 : vector<1x24xf32>
    %381 = arith.mulf %346, %71 : vector<1x24xf32>
    %382 = arith.addf %380, %381 : vector<1x24xf32>
    %383 = arith.mulf %347, %29 : vector<1x24xf32>
    %384 = arith.mulf %348, %43 : vector<1x24xf32>
    %385 = arith.addf %383, %384 : vector<1x24xf32>
    %386 = arith.mulf %349, %61 : vector<1x24xf32>
    %387 = arith.addf %385, %386 : vector<1x24xf32>
    %388 = arith.mulf %347, %35 : vector<1x24xf32>
    %389 = arith.mulf %348, %49 : vector<1x24xf32>
    %390 = arith.addf %388, %389 : vector<1x24xf32>
    %391 = arith.mulf %349, %65 : vector<1x24xf32>
    %392 = arith.addf %390, %391 : vector<1x24xf32>
    %393 = arith.mulf %347, %39 : vector<1x24xf32>
    %394 = arith.mulf %348, %55 : vector<1x24xf32>
    %395 = arith.addf %393, %394 : vector<1x24xf32>
    %396 = arith.mulf %349, %71 : vector<1x24xf32>
    %397 = arith.addf %395, %396 : vector<1x24xf32>
    %398 = arith.mulf %341, %86 : vector<1x24xf32>
    %399 = arith.mulf %342, %87 : vector<1x24xf32>
    %400 = arith.addf %398, %399 : vector<1x24xf32>
    %401 = arith.mulf %343, %88 : vector<1x24xf32>
    %402 = arith.addf %400, %401 : vector<1x24xf32>
    %403 = arith.addf %402, %350 : vector<1x24xf32>
    %404 = arith.mulf %344, %86 : vector<1x24xf32>
    %405 = arith.mulf %345, %87 : vector<1x24xf32>
    %406 = arith.addf %404, %405 : vector<1x24xf32>
    %407 = arith.mulf %346, %88 : vector<1x24xf32>
    %408 = arith.addf %406, %407 : vector<1x24xf32>
    %409 = arith.addf %408, %351 : vector<1x24xf32>
    %410 = arith.mulf %347, %86 : vector<1x24xf32>
    %411 = arith.mulf %348, %87 : vector<1x24xf32>
    %412 = arith.addf %410, %411 : vector<1x24xf32>
    %413 = arith.mulf %349, %88 : vector<1x24xf32>
    %414 = arith.addf %412, %413 : vector<1x24xf32>
    %415 = arith.addf %414, %352 : vector<1x24xf32>
    %416 = tpu.concatenate %357, %362, %367, %372, %377, %382, %387, %392, %397, %403, %409, %415 in 0 : vector<1x24xf32>, vector<1x24xf32>, vector<1x24xf32>, vector<1x24xf32>, vector<1x24xf32>, vector<1x24xf32>, vector<1x24xf32>, vector<1x24xf32>, vector<1x24xf32>, vector<1x24xf32>, vector<1x24xf32>, vector<1x24xf32> -> vector<12x24xf32>
    %417 = vector.extract_strided_slice %90 {offsets = [3, 0], sizes = [1, 24], strides = [1, 1]} : vector<8x24xf32> to vector<1x24xf32>
    %cst_39 = arith.constant 0.000000e+00 : f32
    %418 = vector.broadcast %cst_39 : f32 to vector<1x24xf32>
    %419 = arith.cmpf ogt, %417, %418 : vector<1x24xf32>
    %420 = vector.shape_cast %419 : vector<1x24xi1> to vector<1x24xi1>
    %421 = vector.broadcast %420 : vector<1x24xi1> to vector<12x24xi1>
    %422 = arith.select %421, %416, %339 : vector<12x24xi1>, vector<12x24xf32>
    %cst_40 = arith.constant dense<0.000000e+00> : vector<12x24xf32>
    %423 = tpu.matmul %422, %82, %cst_40 {dimension_numbers = #tpu.dot_dimension_numbers<[1], [0], [0], [1], [0, 0, 1, 1], [], []>} : vector<12x24xf32>, vector<24x24xf32>, vector<12x24xf32> -> vector<12x24xf32>
    %424 = vector.extract_strided_slice %423 {offsets = [0, 0], sizes = [1, 24], strides = [1, 1]} : vector<12x24xf32> to vector<1x24xf32>
    %425 = vector.extract_strided_slice %423 {offsets = [1, 0], sizes = [1, 24], strides = [1, 1]} : vector<12x24xf32> to vector<1x24xf32>
    %426 = vector.extract_strided_slice %423 {offsets = [2, 0], sizes = [1, 24], strides = [1, 1]} : vector<12x24xf32> to vector<1x24xf32>
    %427 = vector.extract_strided_slice %423 {offsets = [3, 0], sizes = [1, 24], strides = [1, 1]} : vector<12x24xf32> to vector<1x24xf32>
    %428 = vector.extract_strided_slice %423 {offsets = [4, 0], sizes = [1, 24], strides = [1, 1]} : vector<12x24xf32> to vector<1x24xf32>
    %429 = vector.extract_strided_slice %423 {offsets = [5, 0], sizes = [1, 24], strides = [1, 1]} : vector<12x24xf32> to vector<1x24xf32>
    %430 = vector.extract_strided_slice %423 {offsets = [6, 0], sizes = [1, 24], strides = [1, 1]} : vector<12x24xf32> to vector<1x24xf32>
    %431 = vector.extract_strided_slice %423 {offsets = [7, 0], sizes = [1, 24], strides = [1, 1]} : vector<12x24xf32> to vector<1x24xf32>
    %432 = vector.extract_strided_slice %423 {offsets = [8, 0], sizes = [1, 24], strides = [1, 1]} : vector<12x24xf32> to vector<1x24xf32>
    %433 = vector.extract_strided_slice %423 {offsets = [9, 0], sizes = [1, 24], strides = [1, 1]} : vector<12x24xf32> to vector<1x24xf32>
    %434 = vector.extract_strided_slice %423 {offsets = [10, 0], sizes = [1, 24], strides = [1, 1]} : vector<12x24xf32> to vector<1x24xf32>
    %435 = vector.extract_strided_slice %423 {offsets = [11, 0], sizes = [1, 24], strides = [1, 1]} : vector<12x24xf32> to vector<1x24xf32>
    %436 = arith.mulf %424, %29 : vector<1x24xf32>
    %437 = arith.mulf %425, %43 : vector<1x24xf32>
    %438 = arith.addf %436, %437 : vector<1x24xf32>
    %439 = arith.mulf %426, %61 : vector<1x24xf32>
    %440 = arith.addf %438, %439 : vector<1x24xf32>
    %441 = arith.mulf %424, %35 : vector<1x24xf32>
    %442 = arith.mulf %425, %49 : vector<1x24xf32>
    %443 = arith.addf %441, %442 : vector<1x24xf32>
    %444 = arith.mulf %426, %65 : vector<1x24xf32>
    %445 = arith.addf %443, %444 : vector<1x24xf32>
    %446 = arith.mulf %424, %39 : vector<1x24xf32>
    %447 = arith.mulf %425, %55 : vector<1x24xf32>
    %448 = arith.addf %446, %447 : vector<1x24xf32>
    %449 = arith.mulf %426, %71 : vector<1x24xf32>
    %450 = arith.addf %448, %449 : vector<1x24xf32>
    %451 = arith.mulf %427, %29 : vector<1x24xf32>
    %452 = arith.mulf %428, %43 : vector<1x24xf32>
    %453 = arith.addf %451, %452 : vector<1x24xf32>
    %454 = arith.mulf %429, %61 : vector<1x24xf32>
    %455 = arith.addf %453, %454 : vector<1x24xf32>
    %456 = arith.mulf %427, %35 : vector<1x24xf32>
    %457 = arith.mulf %428, %49 : vector<1x24xf32>
    %458 = arith.addf %456, %457 : vector<1x24xf32>
    %459 = arith.mulf %429, %65 : vector<1x24xf32>
    %460 = arith.addf %458, %459 : vector<1x24xf32>
    %461 = arith.mulf %427, %39 : vector<1x24xf32>
    %462 = arith.mulf %428, %55 : vector<1x24xf32>
    %463 = arith.addf %461, %462 : vector<1x24xf32>
    %464 = arith.mulf %429, %71 : vector<1x24xf32>
    %465 = arith.addf %463, %464 : vector<1x24xf32>
    %466 = arith.mulf %430, %29 : vector<1x24xf32>
    %467 = arith.mulf %431, %43 : vector<1x24xf32>
    %468 = arith.addf %466, %467 : vector<1x24xf32>
    %469 = arith.mulf %432, %61 : vector<1x24xf32>
    %470 = arith.addf %468, %469 : vector<1x24xf32>
    %471 = arith.mulf %430, %35 : vector<1x24xf32>
    %472 = arith.mulf %431, %49 : vector<1x24xf32>
    %473 = arith.addf %471, %472 : vector<1x24xf32>
    %474 = arith.mulf %432, %65 : vector<1x24xf32>
    %475 = arith.addf %473, %474 : vector<1x24xf32>
    %476 = arith.mulf %430, %39 : vector<1x24xf32>
    %477 = arith.mulf %431, %55 : vector<1x24xf32>
    %478 = arith.addf %476, %477 : vector<1x24xf32>
    %479 = arith.mulf %432, %71 : vector<1x24xf32>
    %480 = arith.addf %478, %479 : vector<1x24xf32>
    %481 = arith.mulf %424, %86 : vector<1x24xf32>
    %482 = arith.mulf %425, %87 : vector<1x24xf32>
    %483 = arith.addf %481, %482 : vector<1x24xf32>
    %484 = arith.mulf %426, %88 : vector<1x24xf32>
    %485 = arith.addf %483, %484 : vector<1x24xf32>
    %486 = arith.addf %485, %433 : vector<1x24xf32>
    %487 = arith.mulf %427, %86 : vector<1x24xf32>
    %488 = arith.mulf %428, %87 : vector<1x24xf32>
    %489 = arith.addf %487, %488 : vector<1x24xf32>
    %490 = arith.mulf %429, %88 : vector<1x24xf32>
    %491 = arith.addf %489, %490 : vector<1x24xf32>
    %492 = arith.addf %491, %434 : vector<1x24xf32>
    %493 = arith.mulf %430, %86 : vector<1x24xf32>
    %494 = arith.mulf %431, %87 : vector<1x24xf32>
    %495 = arith.addf %493, %494 : vector<1x24xf32>
    %496 = arith.mulf %432, %88 : vector<1x24xf32>
    %497 = arith.addf %495, %496 : vector<1x24xf32>
    %498 = arith.addf %497, %435 : vector<1x24xf32>
    %499 = tpu.concatenate %440, %445, %450, %455, %460, %465, %470, %475, %480, %486, %492, %498 in 0 : vector<1x24xf32>, vector<1x24xf32>, vector<1x24xf32>, vector<1x24xf32>, vector<1x24xf32>, vector<1x24xf32>, vector<1x24xf32>, vector<1x24xf32>, vector<1x24xf32>, vector<1x24xf32>, vector<1x24xf32>, vector<1x24xf32> -> vector<12x24xf32>
    %500 = vector.extract_strided_slice %90 {offsets = [4, 0], sizes = [1, 24], strides = [1, 1]} : vector<8x24xf32> to vector<1x24xf32>
    %cst_41 = arith.constant 0.000000e+00 : f32
    %501 = vector.broadcast %cst_41 : f32 to vector<1x24xf32>
    %502 = arith.cmpf ogt, %500, %501 : vector<1x24xf32>
    %503 = vector.shape_cast %502 : vector<1x24xi1> to vector<1x24xi1>
    %504 = vector.broadcast %503 : vector<1x24xi1> to vector<12x24xi1>
    %505 = arith.select %504, %499, %422 : vector<12x24xi1>, vector<12x24xf32>
    %cst_42 = arith.constant dense<0.000000e+00> : vector<12x24xf32>
    %506 = tpu.matmul %505, %82, %cst_42 {dimension_numbers = #tpu.dot_dimension_numbers<[1], [0], [0], [1], [0, 0, 1, 1], [], []>} : vector<12x24xf32>, vector<24x24xf32>, vector<12x24xf32> -> vector<12x24xf32>
    %507 = vector.extract_strided_slice %506 {offsets = [0, 0], sizes = [1, 24], strides = [1, 1]} : vector<12x24xf32> to vector<1x24xf32>
    %508 = vector.extract_strided_slice %506 {offsets = [1, 0], sizes = [1, 24], strides = [1, 1]} : vector<12x24xf32> to vector<1x24xf32>
    %509 = vector.extract_strided_slice %506 {offsets = [2, 0], sizes = [1, 24], strides = [1, 1]} : vector<12x24xf32> to vector<1x24xf32>
    %510 = vector.extract_strided_slice %506 {offsets = [3, 0], sizes = [1, 24], strides = [1, 1]} : vector<12x24xf32> to vector<1x24xf32>
    %511 = vector.extract_strided_slice %506 {offsets = [4, 0], sizes = [1, 24], strides = [1, 1]} : vector<12x24xf32> to vector<1x24xf32>
    %512 = vector.extract_strided_slice %506 {offsets = [5, 0], sizes = [1, 24], strides = [1, 1]} : vector<12x24xf32> to vector<1x24xf32>
    %513 = vector.extract_strided_slice %506 {offsets = [6, 0], sizes = [1, 24], strides = [1, 1]} : vector<12x24xf32> to vector<1x24xf32>
    %514 = vector.extract_strided_slice %506 {offsets = [7, 0], sizes = [1, 24], strides = [1, 1]} : vector<12x24xf32> to vector<1x24xf32>
    %515 = vector.extract_strided_slice %506 {offsets = [8, 0], sizes = [1, 24], strides = [1, 1]} : vector<12x24xf32> to vector<1x24xf32>
    %516 = vector.extract_strided_slice %506 {offsets = [9, 0], sizes = [1, 24], strides = [1, 1]} : vector<12x24xf32> to vector<1x24xf32>
    %517 = vector.extract_strided_slice %506 {offsets = [10, 0], sizes = [1, 24], strides = [1, 1]} : vector<12x24xf32> to vector<1x24xf32>
    %518 = vector.extract_strided_slice %506 {offsets = [11, 0], sizes = [1, 24], strides = [1, 1]} : vector<12x24xf32> to vector<1x24xf32>
    %519 = arith.mulf %507, %29 : vector<1x24xf32>
    %520 = arith.mulf %508, %43 : vector<1x24xf32>
    %521 = arith.addf %519, %520 : vector<1x24xf32>
    %522 = arith.mulf %509, %61 : vector<1x24xf32>
    %523 = arith.addf %521, %522 : vector<1x24xf32>
    %524 = arith.mulf %507, %35 : vector<1x24xf32>
    %525 = arith.mulf %508, %49 : vector<1x24xf32>
    %526 = arith.addf %524, %525 : vector<1x24xf32>
    %527 = arith.mulf %509, %65 : vector<1x24xf32>
    %528 = arith.addf %526, %527 : vector<1x24xf32>
    %529 = arith.mulf %507, %39 : vector<1x24xf32>
    %530 = arith.mulf %508, %55 : vector<1x24xf32>
    %531 = arith.addf %529, %530 : vector<1x24xf32>
    %532 = arith.mulf %509, %71 : vector<1x24xf32>
    %533 = arith.addf %531, %532 : vector<1x24xf32>
    %534 = arith.mulf %510, %29 : vector<1x24xf32>
    %535 = arith.mulf %511, %43 : vector<1x24xf32>
    %536 = arith.addf %534, %535 : vector<1x24xf32>
    %537 = arith.mulf %512, %61 : vector<1x24xf32>
    %538 = arith.addf %536, %537 : vector<1x24xf32>
    %539 = arith.mulf %510, %35 : vector<1x24xf32>
    %540 = arith.mulf %511, %49 : vector<1x24xf32>
    %541 = arith.addf %539, %540 : vector<1x24xf32>
    %542 = arith.mulf %512, %65 : vector<1x24xf32>
    %543 = arith.addf %541, %542 : vector<1x24xf32>
    %544 = arith.mulf %510, %39 : vector<1x24xf32>
    %545 = arith.mulf %511, %55 : vector<1x24xf32>
    %546 = arith.addf %544, %545 : vector<1x24xf32>
    %547 = arith.mulf %512, %71 : vector<1x24xf32>
    %548 = arith.addf %546, %547 : vector<1x24xf32>
    %549 = arith.mulf %513, %29 : vector<1x24xf32>
    %550 = arith.mulf %514, %43 : vector<1x24xf32>
    %551 = arith.addf %549, %550 : vector<1x24xf32>
    %552 = arith.mulf %515, %61 : vector<1x24xf32>
    %553 = arith.addf %551, %552 : vector<1x24xf32>
    %554 = arith.mulf %513, %35 : vector<1x24xf32>
    %555 = arith.mulf %514, %49 : vector<1x24xf32>
    %556 = arith.addf %554, %555 : vector<1x24xf32>
    %557 = arith.mulf %515, %65 : vector<1x24xf32>
    %558 = arith.addf %556, %557 : vector<1x24xf32>
    %559 = arith.mulf %513, %39 : vector<1x24xf32>
    %560 = arith.mulf %514, %55 : vector<1x24xf32>
    %561 = arith.addf %559, %560 : vector<1x24xf32>
    %562 = arith.mulf %515, %71 : vector<1x24xf32>
    %563 = arith.addf %561, %562 : vector<1x24xf32>
    %564 = arith.mulf %507, %86 : vector<1x24xf32>
    %565 = arith.mulf %508, %87 : vector<1x24xf32>
    %566 = arith.addf %564, %565 : vector<1x24xf32>
    %567 = arith.mulf %509, %88 : vector<1x24xf32>
    %568 = arith.addf %566, %567 : vector<1x24xf32>
    %569 = arith.addf %568, %516 : vector<1x24xf32>
    %570 = arith.mulf %510, %86 : vector<1x24xf32>
    %571 = arith.mulf %511, %87 : vector<1x24xf32>
    %572 = arith.addf %570, %571 : vector<1x24xf32>
    %573 = arith.mulf %512, %88 : vector<1x24xf32>
    %574 = arith.addf %572, %573 : vector<1x24xf32>
    %575 = arith.addf %574, %517 : vector<1x24xf32>
    %576 = arith.mulf %513, %86 : vector<1x24xf32>
    %577 = arith.mulf %514, %87 : vector<1x24xf32>
    %578 = arith.addf %576, %577 : vector<1x24xf32>
    %579 = arith.mulf %515, %88 : vector<1x24xf32>
    %580 = arith.addf %578, %579 : vector<1x24xf32>
    %581 = arith.addf %580, %518 : vector<1x24xf32>
    %582 = tpu.concatenate %523, %528, %533, %538, %543, %548, %553, %558, %563, %569, %575, %581 in 0 : vector<1x24xf32>, vector<1x24xf32>, vector<1x24xf32>, vector<1x24xf32>, vector<1x24xf32>, vector<1x24xf32>, vector<1x24xf32>, vector<1x24xf32>, vector<1x24xf32>, vector<1x24xf32>, vector<1x24xf32>, vector<1x24xf32> -> vector<12x24xf32>
    %583 = vector.extract_strided_slice %90 {offsets = [5, 0], sizes = [1, 24], strides = [1, 1]} : vector<8x24xf32> to vector<1x24xf32>
    %cst_43 = arith.constant 0.000000e+00 : f32
    %584 = vector.broadcast %cst_43 : f32 to vector<1x24xf32>
    %585 = arith.cmpf ogt, %583, %584 : vector<1x24xf32>
    %586 = vector.shape_cast %585 : vector<1x24xi1> to vector<1x24xi1>
    %587 = vector.broadcast %586 : vector<1x24xi1> to vector<12x24xi1>
    %588 = arith.select %587, %582, %505 : vector<12x24xi1>, vector<12x24xf32>
    %cst_44 = arith.constant dense<0.000000e+00> : vector<12x24xf32>
    %589 = tpu.matmul %588, %82, %cst_44 {dimension_numbers = #tpu.dot_dimension_numbers<[1], [0], [0], [1], [0, 0, 1, 1], [], []>} : vector<12x24xf32>, vector<24x24xf32>, vector<12x24xf32> -> vector<12x24xf32>
    %590 = vector.extract_strided_slice %589 {offsets = [0, 0], sizes = [1, 24], strides = [1, 1]} : vector<12x24xf32> to vector<1x24xf32>
    %591 = vector.extract_strided_slice %589 {offsets = [1, 0], sizes = [1, 24], strides = [1, 1]} : vector<12x24xf32> to vector<1x24xf32>
    %592 = vector.extract_strided_slice %589 {offsets = [2, 0], sizes = [1, 24], strides = [1, 1]} : vector<12x24xf32> to vector<1x24xf32>
    %593 = vector.extract_strided_slice %589 {offsets = [3, 0], sizes = [1, 24], strides = [1, 1]} : vector<12x24xf32> to vector<1x24xf32>
    %594 = vector.extract_strided_slice %589 {offsets = [4, 0], sizes = [1, 24], strides = [1, 1]} : vector<12x24xf32> to vector<1x24xf32>
    %595 = vector.extract_strided_slice %589 {offsets = [5, 0], sizes = [1, 24], strides = [1, 1]} : vector<12x24xf32> to vector<1x24xf32>
    %596 = vector.extract_strided_slice %589 {offsets = [6, 0], sizes = [1, 24], strides = [1, 1]} : vector<12x24xf32> to vector<1x24xf32>
    %597 = vector.extract_strided_slice %589 {offsets = [7, 0], sizes = [1, 24], strides = [1, 1]} : vector<12x24xf32> to vector<1x24xf32>
    %598 = vector.extract_strided_slice %589 {offsets = [8, 0], sizes = [1, 24], strides = [1, 1]} : vector<12x24xf32> to vector<1x24xf32>
    %599 = vector.extract_strided_slice %589 {offsets = [9, 0], sizes = [1, 24], strides = [1, 1]} : vector<12x24xf32> to vector<1x24xf32>
    %600 = vector.extract_strided_slice %589 {offsets = [10, 0], sizes = [1, 24], strides = [1, 1]} : vector<12x24xf32> to vector<1x24xf32>
    %601 = vector.extract_strided_slice %589 {offsets = [11, 0], sizes = [1, 24], strides = [1, 1]} : vector<12x24xf32> to vector<1x24xf32>
    %602 = arith.mulf %590, %29 : vector<1x24xf32>
    %603 = arith.mulf %591, %43 : vector<1x24xf32>
    %604 = arith.addf %602, %603 : vector<1x24xf32>
    %605 = arith.mulf %592, %61 : vector<1x24xf32>
    %606 = arith.addf %604, %605 : vector<1x24xf32>
    %607 = arith.mulf %590, %35 : vector<1x24xf32>
    %608 = arith.mulf %591, %49 : vector<1x24xf32>
    %609 = arith.addf %607, %608 : vector<1x24xf32>
    %610 = arith.mulf %592, %65 : vector<1x24xf32>
    %611 = arith.addf %609, %610 : vector<1x24xf32>
    %612 = arith.mulf %590, %39 : vector<1x24xf32>
    %613 = arith.mulf %591, %55 : vector<1x24xf32>
    %614 = arith.addf %612, %613 : vector<1x24xf32>
    %615 = arith.mulf %592, %71 : vector<1x24xf32>
    %616 = arith.addf %614, %615 : vector<1x24xf32>
    %617 = arith.mulf %593, %29 : vector<1x24xf32>
    %618 = arith.mulf %594, %43 : vector<1x24xf32>
    %619 = arith.addf %617, %618 : vector<1x24xf32>
    %620 = arith.mulf %595, %61 : vector<1x24xf32>
    %621 = arith.addf %619, %620 : vector<1x24xf32>
    %622 = arith.mulf %593, %35 : vector<1x24xf32>
    %623 = arith.mulf %594, %49 : vector<1x24xf32>
    %624 = arith.addf %622, %623 : vector<1x24xf32>
    %625 = arith.mulf %595, %65 : vector<1x24xf32>
    %626 = arith.addf %624, %625 : vector<1x24xf32>
    %627 = arith.mulf %593, %39 : vector<1x24xf32>
    %628 = arith.mulf %594, %55 : vector<1x24xf32>
    %629 = arith.addf %627, %628 : vector<1x24xf32>
    %630 = arith.mulf %595, %71 : vector<1x24xf32>
    %631 = arith.addf %629, %630 : vector<1x24xf32>
    %632 = arith.mulf %596, %29 : vector<1x24xf32>
    %633 = arith.mulf %597, %43 : vector<1x24xf32>
    %634 = arith.addf %632, %633 : vector<1x24xf32>
    %635 = arith.mulf %598, %61 : vector<1x24xf32>
    %636 = arith.addf %634, %635 : vector<1x24xf32>
    %637 = arith.mulf %596, %35 : vector<1x24xf32>
    %638 = arith.mulf %597, %49 : vector<1x24xf32>
    %639 = arith.addf %637, %638 : vector<1x24xf32>
    %640 = arith.mulf %598, %65 : vector<1x24xf32>
    %641 = arith.addf %639, %640 : vector<1x24xf32>
    %642 = arith.mulf %596, %39 : vector<1x24xf32>
    %643 = arith.mulf %597, %55 : vector<1x24xf32>
    %644 = arith.addf %642, %643 : vector<1x24xf32>
    %645 = arith.mulf %598, %71 : vector<1x24xf32>
    %646 = arith.addf %644, %645 : vector<1x24xf32>
    %647 = arith.mulf %590, %86 : vector<1x24xf32>
    %648 = arith.mulf %591, %87 : vector<1x24xf32>
    %649 = arith.addf %647, %648 : vector<1x24xf32>
    %650 = arith.mulf %592, %88 : vector<1x24xf32>
    %651 = arith.addf %649, %650 : vector<1x24xf32>
    %652 = arith.addf %651, %599 : vector<1x24xf32>
    %653 = arith.mulf %593, %86 : vector<1x24xf32>
    %654 = arith.mulf %594, %87 : vector<1x24xf32>
    %655 = arith.addf %653, %654 : vector<1x24xf32>
    %656 = arith.mulf %595, %88 : vector<1x24xf32>
    %657 = arith.addf %655, %656 : vector<1x24xf32>
    %658 = arith.addf %657, %600 : vector<1x24xf32>
    %659 = arith.mulf %596, %86 : vector<1x24xf32>
    %660 = arith.mulf %597, %87 : vector<1x24xf32>
    %661 = arith.addf %659, %660 : vector<1x24xf32>
    %662 = arith.mulf %598, %88 : vector<1x24xf32>
    %663 = arith.addf %661, %662 : vector<1x24xf32>
    %664 = arith.addf %663, %601 : vector<1x24xf32>
    %665 = tpu.concatenate %606, %611, %616, %621, %626, %631, %636, %641, %646, %652, %658, %664 in 0 : vector<1x24xf32>, vector<1x24xf32>, vector<1x24xf32>, vector<1x24xf32>, vector<1x24xf32>, vector<1x24xf32>, vector<1x24xf32>, vector<1x24xf32>, vector<1x24xf32>, vector<1x24xf32>, vector<1x24xf32>, vector<1x24xf32> -> vector<12x24xf32>
    %666 = vector.extract_strided_slice %90 {offsets = [6, 0], sizes = [1, 24], strides = [1, 1]} : vector<8x24xf32> to vector<1x24xf32>
    %cst_45 = arith.constant 0.000000e+00 : f32
    %667 = vector.broadcast %cst_45 : f32 to vector<1x24xf32>
    %668 = arith.cmpf ogt, %666, %667 : vector<1x24xf32>
    %669 = vector.shape_cast %668 : vector<1x24xi1> to vector<1x24xi1>
    %670 = vector.broadcast %669 : vector<1x24xi1> to vector<12x24xi1>
    %671 = arith.select %670, %665, %588 : vector<12x24xi1>, vector<12x24xf32>
    %cst_46 = arith.constant dense<0.000000e+00> : vector<12x24xf32>
    %672 = tpu.matmul %671, %82, %cst_46 {dimension_numbers = #tpu.dot_dimension_numbers<[1], [0], [0], [1], [0, 0, 1, 1], [], []>} : vector<12x24xf32>, vector<24x24xf32>, vector<12x24xf32> -> vector<12x24xf32>
    %673 = vector.extract_strided_slice %672 {offsets = [0, 0], sizes = [1, 24], strides = [1, 1]} : vector<12x24xf32> to vector<1x24xf32>
    %674 = vector.extract_strided_slice %672 {offsets = [1, 0], sizes = [1, 24], strides = [1, 1]} : vector<12x24xf32> to vector<1x24xf32>
    %675 = vector.extract_strided_slice %672 {offsets = [2, 0], sizes = [1, 24], strides = [1, 1]} : vector<12x24xf32> to vector<1x24xf32>
    %676 = vector.extract_strided_slice %672 {offsets = [3, 0], sizes = [1, 24], strides = [1, 1]} : vector<12x24xf32> to vector<1x24xf32>
    %677 = vector.extract_strided_slice %672 {offsets = [4, 0], sizes = [1, 24], strides = [1, 1]} : vector<12x24xf32> to vector<1x24xf32>
    %678 = vector.extract_strided_slice %672 {offsets = [5, 0], sizes = [1, 24], strides = [1, 1]} : vector<12x24xf32> to vector<1x24xf32>
    %679 = vector.extract_strided_slice %672 {offsets = [6, 0], sizes = [1, 24], strides = [1, 1]} : vector<12x24xf32> to vector<1x24xf32>
    %680 = vector.extract_strided_slice %672 {offsets = [7, 0], sizes = [1, 24], strides = [1, 1]} : vector<12x24xf32> to vector<1x24xf32>
    %681 = vector.extract_strided_slice %672 {offsets = [8, 0], sizes = [1, 24], strides = [1, 1]} : vector<12x24xf32> to vector<1x24xf32>
    %682 = vector.extract_strided_slice %672 {offsets = [9, 0], sizes = [1, 24], strides = [1, 1]} : vector<12x24xf32> to vector<1x24xf32>
    %683 = vector.extract_strided_slice %672 {offsets = [10, 0], sizes = [1, 24], strides = [1, 1]} : vector<12x24xf32> to vector<1x24xf32>
    %684 = vector.extract_strided_slice %672 {offsets = [11, 0], sizes = [1, 24], strides = [1, 1]} : vector<12x24xf32> to vector<1x24xf32>
    %685 = arith.mulf %673, %29 : vector<1x24xf32>
    %686 = arith.mulf %674, %43 : vector<1x24xf32>
    %687 = arith.addf %685, %686 : vector<1x24xf32>
    %688 = arith.mulf %675, %61 : vector<1x24xf32>
    %689 = arith.addf %687, %688 : vector<1x24xf32>
    %690 = arith.mulf %673, %35 : vector<1x24xf32>
    %691 = arith.mulf %674, %49 : vector<1x24xf32>
    %692 = arith.addf %690, %691 : vector<1x24xf32>
    %693 = arith.mulf %675, %65 : vector<1x24xf32>
    %694 = arith.addf %692, %693 : vector<1x24xf32>
    %695 = arith.mulf %673, %39 : vector<1x24xf32>
    %696 = arith.mulf %674, %55 : vector<1x24xf32>
    %697 = arith.addf %695, %696 : vector<1x24xf32>
    %698 = arith.mulf %675, %71 : vector<1x24xf32>
    %699 = arith.addf %697, %698 : vector<1x24xf32>
    %700 = arith.mulf %676, %29 : vector<1x24xf32>
    %701 = arith.mulf %677, %43 : vector<1x24xf32>
    %702 = arith.addf %700, %701 : vector<1x24xf32>
    %703 = arith.mulf %678, %61 : vector<1x24xf32>
    %704 = arith.addf %702, %703 : vector<1x24xf32>
    %705 = arith.mulf %676, %35 : vector<1x24xf32>
    %706 = arith.mulf %677, %49 : vector<1x24xf32>
    %707 = arith.addf %705, %706 : vector<1x24xf32>
    %708 = arith.mulf %678, %65 : vector<1x24xf32>
    %709 = arith.addf %707, %708 : vector<1x24xf32>
    %710 = arith.mulf %676, %39 : vector<1x24xf32>
    %711 = arith.mulf %677, %55 : vector<1x24xf32>
    %712 = arith.addf %710, %711 : vector<1x24xf32>
    %713 = arith.mulf %678, %71 : vector<1x24xf32>
    %714 = arith.addf %712, %713 : vector<1x24xf32>
    %715 = arith.mulf %679, %29 : vector<1x24xf32>
    %716 = arith.mulf %680, %43 : vector<1x24xf32>
    %717 = arith.addf %715, %716 : vector<1x24xf32>
    %718 = arith.mulf %681, %61 : vector<1x24xf32>
    %719 = arith.addf %717, %718 : vector<1x24xf32>
    %720 = arith.mulf %679, %35 : vector<1x24xf32>
    %721 = arith.mulf %680, %49 : vector<1x24xf32>
    %722 = arith.addf %720, %721 : vector<1x24xf32>
    %723 = arith.mulf %681, %65 : vector<1x24xf32>
    %724 = arith.addf %722, %723 : vector<1x24xf32>
    %725 = arith.mulf %679, %39 : vector<1x24xf32>
    %726 = arith.mulf %680, %55 : vector<1x24xf32>
    %727 = arith.addf %725, %726 : vector<1x24xf32>
    %728 = arith.mulf %681, %71 : vector<1x24xf32>
    %729 = arith.addf %727, %728 : vector<1x24xf32>
    %730 = arith.mulf %673, %86 : vector<1x24xf32>
    %731 = arith.mulf %674, %87 : vector<1x24xf32>
    %732 = arith.addf %730, %731 : vector<1x24xf32>
    %733 = arith.mulf %675, %88 : vector<1x24xf32>
    %734 = arith.addf %732, %733 : vector<1x24xf32>
    %735 = arith.addf %734, %682 : vector<1x24xf32>
    %736 = arith.mulf %676, %86 : vector<1x24xf32>
    %737 = arith.mulf %677, %87 : vector<1x24xf32>
    %738 = arith.addf %736, %737 : vector<1x24xf32>
    %739 = arith.mulf %678, %88 : vector<1x24xf32>
    %740 = arith.addf %738, %739 : vector<1x24xf32>
    %741 = arith.addf %740, %683 : vector<1x24xf32>
    %742 = arith.mulf %679, %86 : vector<1x24xf32>
    %743 = arith.mulf %680, %87 : vector<1x24xf32>
    %744 = arith.addf %742, %743 : vector<1x24xf32>
    %745 = arith.mulf %681, %88 : vector<1x24xf32>
    %746 = arith.addf %744, %745 : vector<1x24xf32>
    %747 = arith.addf %746, %684 : vector<1x24xf32>
    %748 = tpu.concatenate %689, %694, %699, %704, %709, %714, %719, %724, %729, %735, %741, %747 in 0 : vector<1x24xf32>, vector<1x24xf32>, vector<1x24xf32>, vector<1x24xf32>, vector<1x24xf32>, vector<1x24xf32>, vector<1x24xf32>, vector<1x24xf32>, vector<1x24xf32>, vector<1x24xf32>, vector<1x24xf32>, vector<1x24xf32> -> vector<12x24xf32>
    %749 = vector.extract_strided_slice %90 {offsets = [7, 0], sizes = [1, 24], strides = [1, 1]} : vector<8x24xf32> to vector<1x24xf32>
    %cst_47 = arith.constant 0.000000e+00 : f32
    %750 = vector.broadcast %cst_47 : f32 to vector<1x24xf32>
    %751 = arith.cmpf ogt, %749, %750 : vector<1x24xf32>
    %752 = vector.shape_cast %751 : vector<1x24xi1> to vector<1x24xi1>
    %753 = vector.broadcast %752 : vector<1x24xi1> to vector<12x24xi1>
    %754 = arith.select %753, %748, %671 : vector<12x24xi1>, vector<12x24xf32>
    %c0_48 = arith.constant 0 : index
    %755 = memref.load %arg7[%c0_48] : memref<3xf32, #tpu.memory_space<smem>>
    %c1_49 = arith.constant 1 : index
    %756 = memref.load %arg7[%c1_49] : memref<3xf32, #tpu.memory_space<smem>>
    %c2_50 = arith.constant 2 : index
    %757 = memref.load %arg7[%c2_50] : memref<3xf32, #tpu.memory_space<smem>>
    %c0_51 = arith.constant 0 : index
    %758 = memref.load %arg8[%c0_51] : memref<1xf32, #tpu.memory_space<smem>>
    %759 = vector.extract_strided_slice %754 {offsets = [9, 0], sizes = [1, 24], strides = [1, 1]} : vector<12x24xf32> to vector<1x24xf32>
    %760 = vector.extract_strided_slice %754 {offsets = [10, 0], sizes = [1, 24], strides = [1, 1]} : vector<12x24xf32> to vector<1x24xf32>
    %761 = vector.extract_strided_slice %754 {offsets = [11, 0], sizes = [1, 24], strides = [1, 1]} : vector<12x24xf32> to vector<1x24xf32>
    %762 = vector.broadcast %755 : f32 to vector<1x24xf32>
    %763 = arith.addf %759, %762 : vector<1x24xf32>
    %764 = vector.broadcast %758 : f32 to vector<1x24xf32>
    %765 = arith.mulf %763, %764 : vector<1x24xf32>
    %c0_52 = arith.constant 0 : index
    %c0_53 = arith.constant 0 : index
    %766 = vector.load %arg10[%c0_52, %c0_53] : memref<3x24xf32, #tpu.memory_space<vmem>>, vector<1x24xf32>
    tpu.vector_store %arg10[%c0_52, %c0_53], %765 {strides = array<i32>} : memref<3x24xf32, #tpu.memory_space<vmem>>, vector<1x24xf32>,
    %767 = vector.broadcast %756 : f32 to vector<1x24xf32>
    %768 = arith.addf %760, %767 : vector<1x24xf32>
    %769 = vector.broadcast %758 : f32 to vector<1x24xf32>
    %770 = arith.mulf %768, %769 : vector<1x24xf32>
    %c1_54 = arith.constant 1 : index
    %c0_55 = arith.constant 0 : index
    %771 = vector.load %arg10[%c1_54, %c0_55] : memref<3x24xf32, #tpu.memory_space<vmem>>, vector<1x24xf32>
    tpu.vector_store %arg10[%c1_54, %c0_55], %770 {strides = array<i32>} : memref<3x24xf32, #tpu.memory_space<vmem>>, vector<1x24xf32>,
    %772 = vector.broadcast %757 : f32 to vector<1x24xf32>
    %773 = arith.addf %761, %772 : vector<1x24xf32>
    %774 = vector.broadcast %758 : f32 to vector<1x24xf32>
    %775 = arith.mulf %773, %774 : vector<1x24xf32>
    %c2_56 = arith.constant 2 : index
    %c0_57 = arith.constant 0 : index
    %776 = vector.load %arg10[%c2_56, %c0_57] : memref<3x24xf32, #tpu.memory_space<vmem>>, vector<1x24xf32>
    tpu.vector_store %arg10[%c2_56, %c0_57], %775 {strides = array<i32>} : memref<3x24xf32, #tpu.memory_space<vmem>>, vector<1x24xf32>,
    %777 = vector.extract_strided_slice %754 {offsets = [0, 0], sizes = [1, 24], strides = [1, 1]} : vector<12x24xf32> to vector<1x24xf32>
    %778 = arith.mulf %777, %75 : vector<1x24xf32>
    %779 = vector.extract_strided_slice %754 {offsets = [1, 0], sizes = [1, 24], strides = [1, 1]} : vector<12x24xf32> to vector<1x24xf32>
    %780 = arith.mulf %779, %78 : vector<1x24xf32>
    %781 = arith.addf %778, %780 : vector<1x24xf32>
    %782 = vector.extract_strided_slice %754 {offsets = [2, 0], sizes = [1, 24], strides = [1, 1]} : vector<12x24xf32> to vector<1x24xf32>
    %783 = arith.mulf %782, %81 : vector<1x24xf32>
    %784 = arith.addf %781, %783 : vector<1x24xf32>
    %785 = arith.subf %759, %784 : vector<1x24xf32>
    %786 = vector.extract_strided_slice %754 {offsets = [3, 0], sizes = [1, 24], strides = [1, 1]} : vector<12x24xf32> to vector<1x24xf32>
    %787 = arith.mulf %786, %75 : vector<1x24xf32>
    %788 = vector.extract_strided_slice %754 {offsets = [4, 0], sizes = [1, 24], strides = [1, 1]} : vector<12x24xf32> to vector<1x24xf32>
    %789 = arith.mulf %788, %78 : vector<1x24xf32>
    %790 = arith.addf %787, %789 : vector<1x24xf32>
    %791 = vector.extract_strided_slice %754 {offsets = [5, 0], sizes = [1, 24], strides = [1, 1]} : vector<12x24xf32> to vector<1x24xf32>
    %792 = arith.mulf %791, %81 : vector<1x24xf32>
    %793 = arith.addf %790, %792 : vector<1x24xf32>
    %794 = arith.subf %760, %793 : vector<1x24xf32>
    %795 = vector.extract_strided_slice %754 {offsets = [6, 0], sizes = [1, 24], strides = [1, 1]} : vector<12x24xf32> to vector<1x24xf32>
    %796 = arith.mulf %795, %75 : vector<1x24xf32>
    %797 = vector.extract_strided_slice %754 {offsets = [7, 0], sizes = [1, 24], strides = [1, 1]} : vector<12x24xf32> to vector<1x24xf32>
    %798 = arith.mulf %797, %78 : vector<1x24xf32>
    %799 = arith.addf %796, %798 : vector<1x24xf32>
    %800 = vector.extract_strided_slice %754 {offsets = [8, 0], sizes = [1, 24], strides = [1, 1]} : vector<12x24xf32> to vector<1x24xf32>
    %801 = arith.mulf %800, %81 : vector<1x24xf32>
    %802 = arith.addf %799, %801 : vector<1x24xf32>
    %803 = arith.subf %761, %802 : vector<1x24xf32>
    %804 = vector.extract_strided_slice %754 {offsets = [0, 0], sizes = [1, 24], strides = [1, 1]} : vector<12x24xf32> to vector<1x24xf32>
    %805 = vector.broadcast %758 : f32 to vector<1x24xf32>
    %806 = arith.mulf %804, %805 : vector<1x24xf32>
    %807 = vector.extract_strided_slice %754 {offsets = [3, 0], sizes = [1, 24], strides = [1, 1]} : vector<12x24xf32> to vector<1x24xf32>
    %808 = vector.broadcast %758 : f32 to vector<1x24xf32>
    %809 = arith.mulf %807, %808 : vector<1x24xf32>
    %810 = vector.extract_strided_slice %754 {offsets = [6, 0], sizes = [1, 24], strides = [1, 1]} : vector<12x24xf32> to vector<1x24xf32>
    %811 = vector.broadcast %758 : f32 to vector<1x24xf32>
    %812 = arith.mulf %810, %811 : vector<1x24xf32>
    %813 = vector.extract_strided_slice %754 {offsets = [1, 0], sizes = [1, 24], strides = [1, 1]} : vector<12x24xf32> to vector<1x24xf32>
    %814 = vector.broadcast %758 : f32 to vector<1x24xf32>
    %815 = arith.mulf %813, %814 : vector<1x24xf32>
    %816 = vector.extract_strided_slice %754 {offsets = [4, 0], sizes = [1, 24], strides = [1, 1]} : vector<12x24xf32> to vector<1x24xf32>
    %817 = vector.broadcast %758 : f32 to vector<1x24xf32>
    %818 = arith.mulf %816, %817 : vector<1x24xf32>
    %819 = vector.extract_strided_slice %754 {offsets = [7, 0], sizes = [1, 24], strides = [1, 1]} : vector<12x24xf32> to vector<1x24xf32>
    %820 = vector.broadcast %758 : f32 to vector<1x24xf32>
    %821 = arith.mulf %819, %820 : vector<1x24xf32>
    %822 = vector.extract_strided_slice %754 {offsets = [2, 0], sizes = [1, 24], strides = [1, 1]} : vector<12x24xf32> to vector<1x24xf32>
    %823 = vector.broadcast %758 : f32 to vector<1x24xf32>
    %824 = arith.mulf %822, %823 : vector<1x24xf32>
    %825 = vector.extract_strided_slice %754 {offsets = [5, 0], sizes = [1, 24], strides = [1, 1]} : vector<12x24xf32> to vector<1x24xf32>
    %826 = vector.broadcast %758 : f32 to vector<1x24xf32>
    %827 = arith.mulf %825, %826 : vector<1x24xf32>
    %828 = vector.extract_strided_slice %754 {offsets = [8, 0], sizes = [1, 24], strides = [1, 1]} : vector<12x24xf32> to vector<1x24xf32>
    %829 = vector.broadcast %758 : f32 to vector<1x24xf32>
    %830 = arith.mulf %828, %829 : vector<1x24xf32>
    %831 = vector.broadcast %755 : f32 to vector<1x24xf32>
    %832 = arith.addf %785, %831 : vector<1x24xf32>
    %833 = vector.broadcast %758 : f32 to vector<1x24xf32>
    %834 = arith.mulf %832, %833 : vector<1x24xf32>
    %835 = vector.broadcast %756 : f32 to vector<1x24xf32>
    %836 = arith.addf %794, %835 : vector<1x24xf32>
    %837 = vector.broadcast %758 : f32 to vector<1x24xf32>
    %838 = arith.mulf %836, %837 : vector<1x24xf32>
    %839 = vector.broadcast %757 : f32 to vector<1x24xf32>
    %840 = arith.addf %803, %839 : vector<1x24xf32>
    %841 = vector.broadcast %758 : f32 to vector<1x24xf32>
    %842 = arith.mulf %840, %841 : vector<1x24xf32>
    %843 = tpu.concatenate %806, %809, %812, %815, %818, %821, %824, %827, %830, %834, %838, %842 in 0 : vector<1x24xf32>, vector<1x24xf32>, vector<1x24xf32>, vector<1x24xf32>, vector<1x24xf32>, vector<1x24xf32>, vector<1x24xf32>, vector<1x24xf32>, vector<1x24xf32>, vector<1x24xf32>, vector<1x24xf32>, vector<1x24xf32> -> vector<12x24xf32>
    %cst_58 = arith.constant 1.000000e+00 : f32
    %844 = vector.broadcast %cst_58 : f32 to vector<1x24xf32>
    %845 = arith.subf %29, %844 : vector<1x24xf32>
    %cst_59 = arith.constant 1.000000e+00 : f32
    %846 = vector.broadcast %cst_59 : f32 to vector<1x24xf32>
    %847 = arith.subf %49, %846 : vector<1x24xf32>
    %cst_60 = arith.constant 1.000000e+00 : f32
    %848 = vector.broadcast %cst_60 : f32 to vector<1x24xf32>
    %849 = arith.subf %71, %848 : vector<1x24xf32>
    %850 = tpu.concatenate %845, %35, %39, %43, %847, %55, %61, %65, %849 in 1 : vector<1x24xf32>, vector<1x24xf32>, vector<1x24xf32>, vector<1x24xf32>, vector<1x24xf32>, vector<1x24xf32>, vector<1x24xf32>, vector<1x24xf32>, vector<1x24xf32> -> vector<1x216xf32>
    %851 = tpu.concatenate %72, %850 in 1 : vector<1x11xf32>, vector<1x216xf32> -> vector<1x227xf32>
    %c0_61 = arith.constant 0 : index
    %c0_62 = arith.constant 0 : index
    %852 = vector.load %arg2[%c0_61, %c0_62] : memref<227x1536xf32, #tpu.memory_space<vmem>>, vector<227x1536xf32>
    %cst_63 = arith.constant dense<0.000000e+00> : vector<1x1536xf32>
    %853 = tpu.matmul %851, %852, %cst_63 {dimension_numbers = #tpu.dot_dimension_numbers<[1], [0], [0], [1], [0, 0, 1, 1], [], []>} : vector<1x227xf32>, vector<227x1536xf32>, vector<1x1536xf32> -> vector<1x1536xf32>
    %854 = vector.extract_strided_slice %853 {offsets = [0, 0], sizes = [1, 512], strides = [1, 1]} : vector<1x1536xf32> to vector<1x512xf32>
    %855 = vector.extract_strided_slice %853 {offsets = [0, 512], sizes = [1, 512], strides = [1, 1]} : vector<1x1536xf32> to vector<1x512xf32>
    %856 = vector.extract_strided_slice %853 {offsets = [0, 1024], sizes = [1, 512], strides = [1, 1]} : vector<1x1536xf32> to vector<1x512xf32>
    %c0_64 = arith.constant 0 : index
    %c0_65 = arith.constant 0 : index
    %857 = vector.load %arg6[%c0_64, %c0_65] : memref<24x512xf32, #tpu.memory_space<vmem>>, vector<24x512xf32>
    %cst_66 = arith.constant dense<0.000000e+00> : vector<12x512xf32>
    %858 = tpu.matmul %843, %857, %cst_66 {dimension_numbers = #tpu.dot_dimension_numbers<[1], [0], [0], [1], [0, 0, 1, 1], [], []>} : vector<12x24xf32>, vector<24x512xf32>, vector<12x512xf32> -> vector<12x512xf32>
    %859 = vector.extract_strided_slice %858 {offsets = [0, 0], sizes = [3, 512], strides = [1, 1]} : vector<12x512xf32> to vector<3x512xf32>
    %860 = vector.broadcast %854 : vector<1x512xf32> to vector<3x512xf32>
    %861 = arith.mulf %859, %860 : vector<3x512xf32>
    %862 = vector.extract_strided_slice %858 {offsets = [3, 0], sizes = [3, 512], strides = [1, 1]} : vector<12x512xf32> to vector<3x512xf32>
    %863 = vector.broadcast %855 : vector<1x512xf32> to vector<3x512xf32>
    %864 = arith.mulf %862, %863 : vector<3x512xf32>
    %865 = arith.addf %861, %864 : vector<3x512xf32>
    %866 = vector.extract_strided_slice %858 {offsets = [6, 0], sizes = [3, 512], strides = [1, 1]} : vector<12x512xf32> to vector<3x512xf32>
    %867 = vector.broadcast %856 : vector<1x512xf32> to vector<3x512xf32>
    %868 = arith.mulf %866, %867 : vector<3x512xf32>
    %869 = arith.addf %865, %868 : vector<3x512xf32>
    %870 = vector.extract_strided_slice %858 {offsets = [9, 0], sizes = [3, 512], strides = [1, 1]} : vector<12x512xf32> to vector<3x512xf32>
    %871 = arith.addf %869, %870 : vector<3x512xf32>
    %c0_67 = arith.constant 0 : index
    %c0_68 = arith.constant 0 : index
    %872 = vector.load %arg9[%c0_67, %c0_68] : memref<3x512xf32, #tpu.memory_space<vmem>>, vector<3x512xf32>
    tpu.vector_store %arg9[%c0_67, %c0_68], %871 {strides = array<i32>} : memref<3x512xf32, #tpu.memory_space<vmem>>, vector<3x512xf32>,
    return
  }
}

</mosaic_0001>

<bundles_post_ra>
// kernel: _forward_impl.1
= control target key start
LH: loop header
LB: loop body
LE: loop exit
PB: predicated region body
PF: predicated region fallthrough
CT: control target
= control target key end

     0   :  { %17 = vsyncpa [#allocation4], 0  ;;  %s6385_s0 = inlined_call_operand.vmem [shape: f32[3,24], index: 0, kind: input, shape index: {}]   ;;  %s6386_s1 = inlined_call_operand.vmem [shape: f32[1,11], index: 1, kind: input, shape index: {}]   ;;  %s6387_s2 = inlined_call_operand.hbm [shape: f32[227,1536], index: 2, kind: input, shape index: {}]   ;;  %s6388_s3 = inlined_call_operand.hbm [shape: f32[3,11,24], index: 3, kind: input, shape index: {}]   ;;  %s6389_s4 = inlined_call_operand.hbm [shape: f32[24,24], index: 4, kind: input, shape index: {}]   ;;  %s6390_s5 = inlined_call_operand.hbm [shape: f32[8,24], index: 5, kind: input, shape index: {}]   ;;  %s6391_s6 = inlined_call_operand.hbm [shape: f32[24,512], index: 6, kind: input, shape index: {}]   ;;  %s6392_s7 = inlined_call_operand.hbm [shape: f32[3], index: 7, kind: input, shape index: {}]   ;;  %s6393_s8 = inlined_call_operand.<no memory space> [shape: f32[1], index: 8, kind: input, shape index: {}]   ;;  %s6394_s9 = inlined_call_operand.vmem [shape: f32[3,512], index: 9, kind: output, shape index: {0}]   ;;  %s6395_s10 = inlined_call_operand.vmem [shape: f32[3,24], index: 10, kind: output, shape index: {1}]  }
   0x1   :  { %18 = vsyncpa [#allocation7], 0 }
   0x2   :  { %19 = vsyncpa [#allocation10], 0 }
   0x3   :  { %20 = vsyncpa [#allocation5], 0  ;;  %s4923_s13 = smov [#allocation6]   ;;  %s4795_s17 = scalar_lea.hbm %s6388_s3, 768 }
   0x4   :  { %s42_s14 = sshll.u32 %s4923_s13, 4  ;;  %p4796_p0 = scmp.ne.s32.totalorder %s6388_s3, %s4795_s17  ;;  %s43_s14 = int_to_ptr.vmem [resolvable:$true] %s42_s14 }
   0x5   :  { %p4799_p1 = scmp.lt.u32.totalorder %s4795_s17, %s6388_s3 }
   0x7   :  { %p4801_p2 = pnand %p4799_p1, %p4796_p0 }
   0x9   :  { %4804 = shalt.err (!%p4801_p2)
}
   0xa   :  { %s4805_s22 = scalar_lea.vmem %s43_s14, 768  ;;  %p4810_p4 = scmp.lt.s32.totalorder %s43_s14, %s43_s14 }
   0xb   :  { %p4806_p3 = scmp.ne.s32.totalorder %s43_s14, %s4805_s22  ;;  %p4811_p5 = scmp.lt.s32.totalorder %s4805_s22, %s4805_s22 }
   0xd   :  { %p4812_p6 = por %p4811_p5, %p4810_p4 }
   0xf   :  { %p4813_p7 = pnand %p4812_p6, %p4806_p3 }
  0x11   :  { %4816 = shalt.err (!%p4813_p7)
}
  0x12   :  { %s4924_s23 = smov 128   ;;  %s4925_s24 = smov 8  }
  0x13   :  { %48 = dma.hbm_to_vmem [thread:$0]  %s6388_s3, 768, %s43_s14, [#allocation7], %s4924_s23, %s4924_s23, %s4925_s24  }
  0x14   :  { %s4926_s27 = smov [#allocation9]   ;;  %s4927_s29 = smov [#allocation3]  }
  0x15   :  { %s67_s28 = sshll.u32 %s4926_s27, 4  ;;  %s30_s30 = sshll.u32 %s4927_s29, 4  ;;  %s68_s28 = int_to_ptr.vmem [resolvable:$true] %s67_s28  ;;  %s31_s30 = int_to_ptr.vmem [resolvable:$true] %s30_s30 }
  0x16   :  { %s4817_s13 = scalar_lea.hbm %s6390_s5, 128 }
  0x17   :  { %p4818_p8 = scmp.ne.s32.totalorder %s6390_s5, %s4817_s13  ;;  %p4821_p9 = scmp.lt.u32.totalorder %s4817_s13, %s6390_s5 }
  0x19   :  { %p4823_p10 = pnand %p4821_p9, %p4818_p8 }
  0x1b   :  { %4826 = shalt.err (!%p4823_p10)
}
  0x1c   :  { %s4827_s3 = scalar_lea.vmem %s68_s28, 128  ;;  %p4832_p12 = scmp.lt.s32.totalorder %s68_s28, %s68_s28 }
  0x1d   :  { %p4828_p11 = scmp.ne.s32.totalorder %s68_s28, %s4827_s3  ;;  %p4833_p13 = scmp.lt.s32.totalorder %s4827_s3, %s4827_s3 }
  0x1f   :  { %p4834_p0 = por %p4833_p13, %p4832_p12 }
  0x21   :  { %p4835_p1 = pnand %p4834_p0, %p4828_p11 }
  0x23   :  { %4838 = shalt.err (!%p4835_p1)
}
  0x24   :  { %70 = dma.hbm_to_vmem [thread:$0]  %s6390_s5, 128, %s68_s28, [#allocation10]  }
  0x25   :  { %s4839_s22 = scalar_lea.hbm %s6387_s2, 44544 }
  0x26   :  { %p4840_p2 = scmp.ne.s32.totalorder %s6387_s2, %s4839_s22  ;;  %p4843_p3 = scmp.lt.u32.totalorder %s4839_s22, %s6387_s2 }
  0x28   :  { %p4845_p4 = pnand %p4843_p3, %p4840_p2 }
  0x2a   :  { %4848 = shalt.err (!%p4845_p4)
}
  0x2b   :  { %s4849_s11 = scalar_lea.vmem %s31_s30, 44544  ;;  %p4854_p6 = scmp.lt.s32.totalorder %s31_s30, %s31_s30 }
  0x2c   :  { %p4850_p5 = scmp.ne.s32.totalorder %s31_s30, %s4849_s11  ;;  %p4855_p7 = scmp.lt.s32.totalorder %s4849_s11, %s4849_s11 }
  0x2e   :  { %p4856_p8 = por %p4855_p7, %p4854_p6 }
  0x30   :  { %p4857_p9 = pnand %p4856_p8, %p4850_p5 }
  0x32   :  { %4860 = shalt.err (!%p4857_p9)
}
  0x33   :  { %s4928_s5 = smov 1536   ;;  %s4929_s28 = smov 96  }
  0x34   :  { %36 = dma.hbm_to_vmem [thread:$0]  %s6387_s2, 44544, %s31_s30, [#allocation4], %s4928_s5, %s4928_s5, %s4929_s28  }
  0x35   :  { %s4930_s15 = smov [#allocation8]   ;;  %s4931_s17 = smov [#allocation11]  }
  0x36   :  { %s54_s16 = sshll.u32 %s4930_s15, 4  ;;  %s76_s18 = sshll.u32 %s4931_s17, 4  ;;  %s55_s16 = int_to_ptr.vmem [resolvable:$true] %s54_s16  ;;  %s77_s18 = int_to_ptr.vmem [resolvable:$true] %s76_s18 }
  0x37   :  { %s4861_s19 = scalar_lea.hbm %s6389_s4, 384 }
  0x38   :  { %p4862_p10 = scmp.ne.s32.totalorder %s6389_s4, %s4861_s19  ;;  %p4865_p11 = scmp.lt.u32.totalorder %s4861_s19, %s6389_s4 }
  0x3a   :  { %p4867_p12 = pnand %p4865_p11, %p4862_p10 }
  0x3c   :  { %4870 = shalt.err (!%p4867_p12)
}
  0x3d   :  { %s4871_s2 = scalar_lea.vmem %s55_s16, 384  ;;  %p4876_p0 = scmp.lt.s32.totalorder %s55_s16, %s55_s16 }
  0x3e   :  { %p4872_p13 = scmp.ne.s32.totalorder %s55_s16, %s4871_s2  ;;  %p4877_p1 = scmp.lt.s32.totalorder %s4871_s2, %s4871_s2 }
  0x40   :  { %p4878_p2 = por %p4877_p1, %p4876_p0 }
  0x42   :  { %p4879_p3 = pnand %p4878_p2, %p4872_p13 }
  0x44   :  { %4882 = shalt.err (!%p4879_p3)
}
  0x45   :  { %60 = dma.hbm_to_vmem [thread:$0]  %s6389_s4, 384, %s55_s16, [#allocation7], %s4924_s23, %s4924_s23, %s4925_s24  }
  0x46   :  { %s4883_s11 = scalar_lea.hbm %s6391_s6, 1536 }
  0x47   :  { %p4884_p4 = scmp.ne.s32.totalorder %s6391_s6, %s4883_s11  ;;  %p4887_p5 = scmp.lt.u32.totalorder %s4883_s11, %s6391_s6 }
  0x49   :  { %p4889_p6 = pnand %p4887_p5, %p4884_p4 }
  0x4b   :  { %4892 = shalt.err (!%p4889_p6)
}
  0x4c   :  { %s4893_s17 = scalar_lea.vmem %s77_s18, 1536  ;;  %p4898_p8 = scmp.lt.s32.totalorder %s77_s18, %s77_s18 }
  0x4d   :  { %p4894_p7 = scmp.ne.s32.totalorder %s77_s18, %s4893_s17  ;;  %p4899_p9 = scmp.lt.s32.totalorder %s4893_s17, %s4893_s17 }
  0x4f   :  { %p4900_p10 = por %p4899_p9, %p4898_p8 }
  0x51   :  { %p4901_p11 = pnand %p4900_p10, %p4894_p7 }
  0x53   :  { %4904 = shalt.err (!%p4901_p11)
}
  0x54   :  { %s4932_s4 = smov 512   ;;  %s4933_s23 = smov 32  }
  0x55   :  { %82 = dma.hbm_to_vmem [thread:$0]  %s6391_s6, 1536, %s77_s18, [#allocation10], %s4932_s4, %s4932_s4, %s4933_s23  }
  0x56   :  { %s4905_s19 = scalar_lea.hbm %s6392_s7, 16 }
  0x57   :  { %p4906_p12 = scmp.ne.s32.totalorder %s6392_s7, %s4905_s19  ;;  %p4909_p13 = scmp.lt.u32.totalorder %s4905_s19, %s6392_s7 }
  0x59   :  { %p4911_p0 = pnand %p4909_p13, %p4906_p12 }
  0x5b   :  { %4914 = shalt.err (!%p4911_p0)
}
  0x5c   :  { %s4934_s2 = smov [#allocation12]  }
  0x5d   :  { %90 = dma.hbm_to_smem %s6392_s7, 16, %s4934_s2, [#allocation5]  }
  0x5e   :  { %4915 = dma.done.wait [#allocation4], 44544  }
  0x5f   :  { %4916 = vsyncadd [#allocation4], 4294922752 }
  0x60   :  { %4917 = dma.done.wait [#allocation7], 1152  }
  0x61   :  { %4918 = vsyncadd [#allocation7], 4294966144 }
  0x62   :  { %4919 = dma.done.wait [#allocation10], 1664  }
  0x63   :  { %4920 = vsyncadd [#allocation10], 4294965632 }
  0x64   :  { %4921 = dma.done.wait [#allocation5], 16  }
  0x65   :  { %4922 = vsyncadd [#allocation5], 4294967280 }
  0x66   :  { %111 = sfence }
  0x67   :  { %v374_v0 = vld [vmem:[#allocation6] sm:$0xff]  ;;  %v375_v1 = vld [vmem:[#allocation6 + $0x8] sm:$0x7]  ;;  %vm380_vm0 = vcmask 1042432   ;;  %v4935_v2 = vmov 0.0|0.0   ;;  %vm4936_vm1 = vmmov 1  }
  0x68   :  { %4359 = vmatprep.subr.bf16.mxu0 %v4935_v2  ;;  %4363 = vmatprep.subr.bf16.mxu1 %v4935_v2  ;;  %v4360_v3 = vpack.c.bf16 %v375_v1, %v374_v0  ;;  %vm5089_vm2 = vmpackc.low %vm380_vm0, %vm4936_vm1  ;;  %v455_v5 = vld [vmem:[#allocation6 + $0x10] sm:$0xff]  ;;  %v456_v6 = vld [vmem:[#allocation6 + $0x18] sm:$0x7]  ;;  %vm4937_vm3 = vmmov 0   ;;  %v6398_v8 = vmov 0.0   ;;  %vm376_vm4 = vcmask 89088  }
  0x69   :  { %v4364_v7 = vpack.c.bf16 %v456_v6, %v455_v5  ;;  %4261 = vmatprep.mubr.msk.f32.mxu0 %vm4937_vm3, %v6398_v8  ;;  %4268 = vmatprep.mubr.msk.f32.mxu1 %vm4937_vm3, %v6398_v8  ;;  %v531_v9 = vld [vmem:[#allocation6 + $0x20] sm:$0xff]  ;;  %v532_v10 = vld [vmem:[#allocation6 + $0x28] sm:$0x7]  ;;  %v606_v13 = vld [vmem:[#allocation8] sm:$0xff]  ;;  %vm615_vm7 = vcmask 1040384   ;;  %vm617_vm8 = vcmask 1041408  }
  0x6a   :  { %4362 = vmatpush3.bf16.msk.msra.mxu0 %vm5089_vm2, %v4360_v3  ;;  %v373_v11 = vld [vmem:[%s6386_s1] sm:$0x1]  ;;  %v4368_v12 = vpack.c.bf16 %v532_v10, %v531_v9  ;;  %v607_v14 = vld [vmem:[#allocation8 + $0x8] sm:$0xff]  ;;  %v5134_v18 = vld [vmem:[%s6385_s0 + $0x1] sm:$0x1]  ;;  %vm619_vm9 = vcmask 195584  }
  0x6b   :  { %4366 = vmatpush3.bf16.msk.msra.mxu1 %vm5089_vm2, %v4364_v7  ;;  %4367 = vmatprep.subr.bf16.mxu0 %v4935_v2  ;;  %v5113_v15 = vpack.c.bf16 %v607_v14, %v606_v13  ;;  %v5118_v16 = vld [vmem:[#allocation8 + $0x10] sm:$0xff]  ;;  %v117_v20 = vadd.f32 1e-08, %v5134_v18  ;;  %v4939_v51 = vmov 2102212464   ;;  %s4947_s13 = smov 72  }
  0x6c   :  { %4371 = vmatprep.subr.bf16.mxu1 %v4935_v2  ;;  %v5129_v17 = vld [vmem:[%s6385_s0] sm:$0x1]  ;;  %v5141_v21 = vld [vmem:[%s6385_s0 + $0x2] sm:$0x1]  ;;  %v4940_v55 = vmov 683565275  }
  0x6d   :  { %4262 = vmatmul.mubr.msk.f32.vlgmr.msra.gmra.mrb[0].mxu0 %vm376_vm4, %v373_v11  ;;  %v115_v19 = vadd.f32 1e-08, %v5129_v17  ;;  %v118_v23 = vmul.f32 %v117_v20, %v117_v20  ;;  %v120_v24 = vadd.f32 1e-08, %v5141_v21  ;;  %v4941_v57 = vmov 2475754826  }
  0x6e   :  { %4269 = vmatmul.mubr.msk.f32.vlgmr.msra.gmra.mrb[0].mxu1 %vm376_vm4, %v373_v11  ;;  %4370 = vmatpush3.bf16.msk.msra.mxu0 %vm5089_vm2, %v4368_v12  ;;  %v4942_v60 = vmov 2131351028   ;;  %v4943_v2 = vmov 920167782   ;;  %v4944_v9 = vmov 1326507024  }
  0x6f   :  { %4275 = vmatprep.mubr.msk.f32.mxu0 %vm4937_vm3, %v6398_v8  ;;  %4284 = vmatprep.mubr.msk.f32.mxu1 %vm4937_vm3, %v6398_v8  ;;  %v116_v22 = vmul.f32 %v115_v19, %v115_v19  ;;  %v121_v26 = vmul.f32 %v120_v24, %v120_v24  ;;  %s4946_s0 = smov 24   ;;  %s4948_s15 = smov 48  }
  0x70   :  { %4373 = vmatpush3.bf16.msra.mxu1 %v5113_v15  ;;  %4375 = vmatprep.subr.bf16.mxu0 %v5113_v15  ;;  %s4949_s17 = smov 120   ;;  %s4950_s4 = smov 16  }
  0x71   :  { %4276 = vmatmul.mubr.msk.f32.vlgmr.msra.gmra.mrb[2].mxu0 %vm376_vm4, %v373_v11  ;;  %4282 = vmatprep.subr.mxu1 %v6398_v8  ;;  %v119_v25 = vadd.f32 %v118_v23, %v116_v22  ;;  %s4951_s23 = smov 40   ;;  %s4952_s24 = smov 64  }
  0x72   :  { %4377 = vmatpush3.bf16.msra.mxu0 %v5113_v15  ;;  %s6166_s14 = sld [smem:[#allocation12 + $0x1]]  ;;  %s6168_s19 = sld [smem:[#allocation12 + $0x2]] }
  0x73   :  { %4291 = vmatprep.subr.mxu0 %v5118_v16  ;;  %v122_v27 = vadd.f32 %v121_v26, %v119_v25 }
  0x74   :  { %4283 = vmatpush3.msra.mxu1 %v5118_v16 }
  0x75   :  { %4379 = vmatprep.subr.bf16.mxu1 %v5113_v15  ;;  %4785 = vrsqrt.f32 %v122_v27  ;;  %vm125_vm5 = vcmp.eq.f32.partialorder %v122_v27, inf  ;;  %v128_v30 = vand.u32 2147483648, %v122_v27  ;;  %vm127_vm6 = vcmp.eq.f32.partialorder %v122_v27, 0.0 }
  0x76   :  { %4292 = vmatpush3.msra.mxu0 %v5118_v16 }
  0x77   :  { %4383 = vmatprep.subr.bf16.mxu0 %v5113_v15 }
  0x7f   :  { %v4786_v28 = vpop.eup %4785 }
  0x80   :  { %v124_v29 = vmul.f32 %v4786_v28, %v122_v27 }
  0x82   :  { %v126_v32 = vsel %vm125_vm5, %v122_v27, %v124_v29 }
  0x83   :  { %v5148_v35 = vsel %vm127_vm6, %v128_v30, %v126_v32 }
  0x84   :  { %v138_v38 = vand.u32 2139095040, %v5148_v35  ;;  %v135_v50 = vand.u32 2147483647, %v5148_v35  ;;  %vm137_vm2 = vcmp.lt.s32.totalorder %v5148_v35, 0 }
  0x86   :  { %v139_v40 = vshrl.u32 %v138_v38, 23  ;;  %v142_v53 = vand.u32 8388607, %v135_v50  ;;  %vm136_vm3 = vcmp.le.f32.partialorder %v135_v50, 0.7853982 }
  0x88   :  { %v4146_v44 = vadd.s32 4294967169, %v139_v40  ;;  %v143_v0 = vor.u32 8388608, %v142_v53 }
  0x8a   :  { %v145_v46 = vadd.s32 1, %v4146_v44  ;;  %v183_v14 = vshll.u32 %v143_v0, 8 }
  0x8c   :  { %vm146_vm10 = vcmp.gt.s32.totalorder %v145_v46, 0 }
  0x8d   :  { %v147_v47 = vsel %vm146_vm10, %v145_v46, 0 }
  0x8e   :  { %v149_v48 = vand.u32 31, %v147_v47  ;;  %v148_v54 = vshrl.u32 %v147_v47, 5 }
  0x90   :  { %v150_v49 = vsub.s32 32, %v149_v48  ;;  %v161_v52 = vshll.u32 %v4939_v51, %v149_v48  ;;  %v152_v56 = vshll.u32 %v4940_v55, %v149_v48  ;;  %v155_v59 = vshll.u32 %v4941_v57, %v149_v48 }
  0x91   :  { %v158_v62 = vshll.u32 %v4942_v60, %v149_v48  ;;  %v164_v4 = vshll.u32 %v4943_v2, %v149_v48  ;;  %vm167_vm11 = vcmp.lt.s32.totalorder %v148_v54, 1  ;;  %vm169_vm12 = vcmp.lt.s32.totalorder %v148_v54, 3 }
  0x92   :  { %v153_v58 = vshrl.u32 %v4941_v57, %v150_v49  ;;  %v156_v61 = vshrl.u32 %v4942_v60, %v150_v49  ;;  %v159_v63 = vshrl.u32 %v4939_v51, %v150_v49  ;;  %v162_v3 = vshrl.u32 %v4943_v2, %v150_v49 }
  0x93   :  { %v165_v10 = vshrl.u32 %v4944_v9, %v150_v49  ;;  %vm168_vm13 = vcmp.lt.s32.totalorder %v148_v54, 2  ;;  %vm170_vm14 = vcmp.lt.s32.totalorder %v148_v54, 4  ;;  %v151_v19 = vshrl.u32 %v4940_v55, %v150_v49 }
  0x94   :  { %v154_v1 = vor.u32 %v153_v58, %v152_v56  ;;  %v157_v5 = vor.u32 %v156_v61, %v155_v59  ;;  %v160_v6 = vor.u32 %v159_v63, %v158_v62  ;;  %v163_v7 = vor.u32 %v162_v3, %v161_v52 }
  0x95   :  { %v166_v12 = vor.u32 %v165_v10, %v164_v4 }
  0x96   :  { %v175_v11 = vsel %vm167_vm11, %v154_v1, %v157_v5  ;;  %v176_v13 = vsel %vm170_vm14, %v163_v7, 920167782  ;;  %v179_v22 = vsel %vm167_vm11, %v157_v5, %v160_v6  ;;  %v172_v23 = vsel %vm170_vm14, %v160_v6, 2102212464 }
  0x97   :  { %v177_v20 = vsel %vm169_vm12, %v160_v6, %v176_v13  ;;  %v180_v25 = vsel %vm170_vm14, %v166_v12, 1326507024  ;;  %v171_v26 = vsel %vm167_vm11, %v151_v19, %v154_v1  ;;  %v173_v27 = vsel %vm169_vm12, %v157_v5, %v172_v23 }
  0x98   :  { %v178_v24 = vsel %vm168_vm13, %v175_v11, %v177_v20  ;;  %v181_v28 = vsel %vm169_vm12, %v163_v7, %v180_v25  ;;  %v174_v29 = vsel %vm168_vm13, %v171_v26, %v173_v27  ;;  %vm227_vm14 = vweird.f32 %v5148_v35 }
  0x99   :  { %v182_v30 = vsel %vm168_vm13, %v179_v22, %v181_v28  ;;  %v190_v40 = vmul.u32 %v183_v14, %v174_v29 }
 0x140   :  { %v5144_v31 = vpop.f32.mrb[0].mxu0 }
 0x141   :  { %6432 = vst [vmem:[#allocation17_spill] sm:$0xff] %v5144_v31  ;;  %v5146_v33 = vpop.f32.mrb[0].mxu1  ;;  %v4263_v34 = vpop.f32.mrb[1].mxu0 }
 0x142   :  { %6433 = vst [vmem:[#allocation18_spill] sm:$0xff] %v5146_v33  ;;  %v6397_v36 = vrot.slane %v5146_v33, 7  ;;  %v4270_v37 = vpop.f32.mrb[1].mxu1  ;;  %v5179_v32 = vmul.u32.u64.low %v183_v14, %v178_v24  ;;  %v5180_v34 = vmul.u32.u64.high %v183_v14, %v178_v24, %v5179_v32 }
 0x143   :  { %v5182_v37 = vmul.u32.u64.low %v183_v14, %v182_v30  ;;  %v5183_v38 = vmul.u32.u64.high %v183_v14, %v182_v30, %v5182_v37 }
 0x144   :  { %v5152_v39 = vpop.f32.mrb[2].mxu0  ;;  %v616_v43 = vsel %vm615_vm7, %v5144_v31, %v6397_v36 }
 0x145   :  { %6434 = vst [vmem:[#allocation19_spill] sm:$0xff] %v5152_v39  ;;  %v6396_v41 = vrot.slane %v5152_v39, 6  ;;  %v4277_v42 = vpop.f32.mrb[3].mxu0  ;;  %vm192_vm15 = vc.u32 %v5183_v38, %v5179_v32  ;;  %v191_v55 = vadd.s32 %v5179_v32, %v5183_v38 }
 0x146   :  { %v193_v42 = vadd.s32 1, %v5180_v34 }
 0x147   :  { %v5162_v45 = vsel %vm617_vm8, %v616_v43, %v6396_v41 }
 0x148   :  { %4285 = vmatmul.mubr.msk.f32.vlgmr.msra.gmra.mrb[2].mxu1 %vm619_vm9, %v5162_v45  ;;  %v194_v43 = vsel %vm192_vm15, %v193_v42, %v5180_v34  ;;  %vm721_vm15 = vcmask 1043456  }
 0x149   :  { %4381 = vmatpush3.bf16.msra.mxu1 %v5113_v15  ;;  %v195_v44 = vadd.s32 %v194_v43, %v190_v40 }
 0x14a   :  { %4300 = vmatprep.subr.mxu1 %v5118_v16 }
 0x14b   :  { %v196_v46 = vadd.s32 536870912, %v195_v44 }
 0x14d   :  { %4301 = vmatpush3.msra.mxu1 %v5118_v16  ;;  %v197_v47 = vshrl.u32 %v196_v46, 30 }
 0x14e   :  { %4387 = vmatprep.subr.bf16.mxu1 %v5113_v15 }
 0x14f   :  { %v198_v48 = vshll.u32 %v197_v47, 30  ;;  %v221_v7 = vsub.s32 4, %v197_v47 }
 0x151   :  { %v199_v49 = vsub.s32 %v195_v44, %v198_v48  ;;  %v222_v9 = vsel %vm137_vm2, %v221_v7, %v197_v47 }
 0x152   :  { %v224_v10 = vsel %vm136_vm3, 0, %v222_v9 }
 0x153   :  { %v201_v51 = vsub.s32 0, %v199_v49  ;;  %v228_v11 = vand.u32 3, %v224_v10  ;;  %v331_v12 = vadd.s32 3, %v224_v10 }
 0x155   :  { %v4147_v52 = vmin.u32 %v201_v51, %v199_v49  ;;  %v332_v13 = vand.u32 3, %v331_v12  ;;  %vm233_vm5 = vcmp.eq.s32.totalorder %v228_v11, 2  ;;  %vm229_vm10 = vcmp.lt.s32.totalorder %v228_v11, 2 }
 0x156   :  { %vm230_vm11 = vcmp.eq.s32.totalorder %v228_v11, 0 }
 0x157   :  { %v203_v53 = vclz %v4147_v52  ;;  %vm337_vm6 = vcmp.eq.s32.totalorder %v332_v13, 2  ;;  %vm334_vm12 = vcmp.eq.s32.totalorder %v332_v13, 0  ;;  %vm333_vm13 = vcmp.lt.s32.totalorder %v332_v13, 2 }
 0x159   :  { %v4148_v54 = vadd.s32 4294967294, %v203_v53 }
 0x15b   :  { %vm4149_vm1 = vcmp.lt.s32.totalorder %v4148_v54, 0 }
 0x15c   :  { %v206_v56 = vsel %vm4149_vm1, 0, %v4148_v54  ;;  %vm723_vm1 = vcmask 1044480  }
 0x15d   :  { %v207_v57 = vsub.s32 32, %v206_v56  ;;  %v208_v58 = vshll.u32 %v199_v49, %v206_v56  ;;  %v211_v59 = vsub.s32 4294967266, %v206_v56 }
 0x15f   :  { %v209_v60 = vshrl.u32 %v191_v55, %v207_v57  ;;  %v212_v61 = vadd.s32 127, %v211_v59 }
 0x161   :  { %v210_v62 = vor.u32 %v209_v60, %v208_v58  ;;  %v213_v63 = vshll.u32 %v212_v61, 23 }
 0x163   :  { %v214_v0 = vor.u32 4788187, %v213_v63  ;;  %v217_v1 = vcvt.s32.f32 %v210_v62 }
 0x165   :  { %v215_v2 = vand.u32 2147483647, %v214_v0 }
 0x167   :  { %v218_v3 = vmul.f32 %v217_v1, %v215_v2 }
 0x169   :  { %v219_v4 = vxor.u32 2147483648, %v218_v3 }
 0x16b   :  { %v220_v5 = vsel %vm137_vm2, %v219_v4, %v218_v3  ;;  %vm725_vm2 = vcmask 1045504  }
 0x16c   :  { %v223_v6 = vsel %vm136_vm3, %v5148_v35, %v220_v5  ;;  %vm727_vm3 = vcmask 1046528  }
 0x16d   :  { %4787 = vcosq.f32 %v223_v6 }
 0x16e   :  { %4789 = vrcp.f32 %v5148_v35 }
 0x16f   :  { %4791 = vsinq.f32 %v223_v6 }
 0x177   :  { %v4788_v14 = vpop.eup %4787 }
 0x178   :  { %v4790_v19 = vpop.eup %4789  ;;  %v234_v50 = vxor.u32 2147483648, %v4788_v14 }
 0x179   :  { %v4792_v20 = vpop.eup %4791  ;;  %v132_v22 = vmul.f32 %v4790_v19, %v5129_v17  ;;  %v133_v23 = vmul.f32 %v4790_v19, %v5134_v18  ;;  %v134_v24 = vmul.f32 %v4790_v19, %v5141_v21 }
 0x17a   :  { %v231_v25 = vxor.u32 2147483648, %v4792_v20  ;;  %v235_v26 = vsel %vm233_vm5, %v234_v50, %v4792_v20  ;;  %v339_v27 = vsel %vm337_vm6, %v234_v50, %v4792_v20 }
 0x17b   :  { %v343_v28 = vmul.f32 %v133_v23, %v133_v23  ;;  %v344_v29 = vmul.f32 %v134_v24, %v134_v24  ;;  %v358_v34 = vmul.f32 %v132_v22, %v132_v22 }
 0x17c   :  { %v232_v30 = vsel %vm230_vm11, %v4788_v14, %v231_v25  ;;  %v336_v32 = vsel %vm334_vm12, %v4788_v14, %v231_v25 }
 0x17d   :  { %v236_v37 = vsel %vm229_vm10, %v232_v30, %v235_v26  ;;  %v340_v38 = vsel %vm333_vm13, %v336_v32, %v339_v27  ;;  %v345_v17 = vadd.f32 %v344_v29, %v343_v28  ;;  %v359_v42 = vadd.f32 %v358_v34, %v344_v29  ;;  %v732_v32 = vld [vmem:[#allocation9] sm:$0xff] }
 0x17e   :  { %v237_v40 = vsel %vm227_vm14, nan, %v236_v37  ;;  %v341_v18 = vsel %vm227_vm14, nan, %v340_v38  ;;  %v370_v54 = vadd.f32 %v358_v34, %v343_v28  ;;  %vm1032_vm5 = vcmp.gt.f32.partialorder %v732_v32, 0.0 }
 0x17f   :  { %v342_v21 = vsub.f32 1.0, %v237_v40  ;;  %v348_v43 = vsub.f32 0.0, %v341_v18  ;;  %v353_v44 = vmul.f32 %v341_v18, %v133_v23  ;;  %v356_v46 = vmul.f32 %v341_v18, %v134_v24 }
 0x180   :  { %v368_v59 = vmul.f32 %v341_v18, %v132_v22  ;;  %vm2992_vm14 = vcmask 392192  }
 0x181   :  { %v346_v47 = vmul.f32 %v345_v17, %v342_v21  ;;  %v349_v48 = vmul.f32 %v348_v43, %v134_v24  ;;  %v350_v49 = vmul.f32 %v342_v21, %v132_v22  ;;  %v360_v35 = vmul.f32 %v359_v42, %v342_v21 }
 0x182   :  { %v362_v51 = vmul.f32 %v348_v43, %v132_v22  ;;  %v363_v52 = vmul.f32 %v342_v21, %v133_v23  ;;  %v366_v53 = vmul.f32 %v348_v43, %v133_v23  ;;  %v371_v60 = vmul.f32 %v370_v54, %v342_v21 }
 0x183   :  { %v351_v55 = vmul.f32 %v350_v49, %v133_v23  ;;  %v354_v56 = vmul.f32 %v350_v49, %v134_v24  ;;  %v5199_v57 = vsub.f32 1.0, %v360_v35  ;;  %v5201_v61 = vsub.f32 1.0, %v346_v47 }
 0x184   :  { %v364_v58 = vmul.f32 %v363_v52, %v134_v24  ;;  %v5240_v26 = vsub.f32 1.0, %v371_v60  ;;  %v4945_v35 = vmov 0  }
 0x185   :  { %6435 = vst [vmem:[#allocation20_spill] sm:$0xff] %v5199_v57  ;;  %v5203_v62 = vadd.f32 %v351_v55, %v349_v48  ;;  %v5205_v63 = vadd.f32 %v354_v56, %v353_v44  ;;  %v5207_v0 = vadd.f32 %v356_v46, %v351_v55  ;;  %v5211_v2 = vadd.f32 %v366_v53, %v354_v56 }
 0x186   :  { %v5209_v1 = vadd.f32 %v364_v58, %v362_v51  ;;  %v5213_v3 = vadd.f32 %v368_v59, %v364_v58  ;;  %v5219_v7 = vrot.slane %v5199_v57, 4  ;;  %v5261_v38 = vrot.slane %v5199_v57, 7 }
 0x187   :  { %6436 = vst [vmem:[#allocation21_spill] sm:$0xff] %v5207_v0  ;;  %6438 = vst [vmem:[#allocation23_spill] sm:$0xff] %v5211_v2  ;;  %v695_v4 = vrot.slane %v5203_v62, 7  ;;  %v698_v5 = vrot.slane %v5205_v63, 6  ;;  %v701_v6 = vrot.slane %v5207_v0, 5  ;;  %v710_v11 = vrot.slane %v5211_v2, 2  ;;  %2965 = vrot.lane.b32.xlu0 %v5203_v62, %s4946_s0 }
 0x188   :  { %6437 = vst [vmem:[#allocation22_spill] sm:$0xff] %v5209_v1  ;;  %6439 = vst [vmem:[#allocation24_spill] sm:$0xff] %v5213_v3  ;;  %v707_v9 = vrot.slane %v5209_v1, 3  ;;  %v713_v13 = vrot.slane %v5213_v3, 1  ;;  %v5258_v37 = vrot.slane %v5207_v0, 7  ;;  %v5264_v17 = vrot.slane %v5209_v1, 7 }
 0x189   :  { %6440 = vst [vmem:[#allocation25_spill] sm:$0xff] %v5219_v7  ;;  %v718_v10 = vsel %vm615_vm7, %v5201_v61, %v695_v4  ;;  %v5267_v40 = vrot.slane %v5207_v0, 4  ;;  %v5270_v18 = vrot.slane %v5209_v1, 4  ;;  %v5273_v42 = vrot.slane %v5207_v0, 1 }
 0x18a   :  { %v719_v12 = vsel %vm617_vm8, %v718_v10, %v698_v5  ;;  %v5279_v43 = vrot.slane %v5209_v1, 1  ;;  %v5288_v47 = vrot.slane %v5211_v2, 6  ;;  %v5291_v48 = vrot.slane %v5213_v3, 6 }
 0x18b   :  { %v720_v14 = vsel %vm380_vm0, %v719_v12, %v701_v6  ;;  %6442 = vst [vmem:[#allocation27_spill] sm:$0xff] %v5273_v42  ;;  %v5294_v49 = vrot.slane %v5240_v26, 6  ;;  %v5296_v51 = vsel %vm1032_vm5, 1, %v4945_v35  ;;  %v5299_v52 = vrot.slane %v5201_v61, 5  ;;  %2968 = vrot.lane.b32.xlu0 %v5205_v63, %s4948_s15 }
 0x18c   :  { %v722_v19 = vsel %vm721_vm15, %v720_v14, %v5219_v7  ;;  %6443 = vst [vmem:[#allocation28_spill] sm:$0xff] %v5279_v43  ;;  %v5302_v53 = vrot.slane %v5211_v2, 3  ;;  %v5305_v54 = vrot.slane %v5203_v62, 5  ;;  %v5308_v55 = vrot.slane %v5213_v3, 3 }
 0x18d   :  { %v724_v50 = vsel %vm723_vm1, %v722_v19, %v707_v9  ;;  %v5313_v58 = vrot.slane %v5205_v63, 5  ;;  %v5316_v59 = vrot.slane %v5240_v26, 3  ;;  %v5319_v60 = vrot.slane %v5201_v61, 2 }
 0x18e   :  { %v726_v20 = vsel %vm725_vm2, %v724_v50, %v710_v11  ;;  %v5322_v4 = vrot.slane %v5203_v62, 2  ;;  %v5331_v9 = vrot.slane %v5199_v57, 1  ;;  %v5336_v11 = vrot.slane %v5205_v63, 2 }
 0x18f   :  { %v5233_v22 = vsel %vm727_vm3, %v726_v20, %v713_v13  ;;  %vm2994_vm5 = vcmask 588800  }
 0x190   :  { %4293 = vmatprep.mubr.msk.f32.mxu0 %vm619_vm9, %v5233_v22  ;;  %6446 = vst [vmem:[#allocation31_spill] sm:$0xff] %v5322_v4  ;;  %6447 = vst [vmem:[#allocation32_spill] sm:$0xff] %v5331_v9 }
 0x191   :  { %6448 = vst [vmem:[#allocation33_spill] sm:$0xff] %v5336_v11 }
 0x21b   :  { %v689_v23 = vpop.f32.mrb[2].mxu1 }
 0x21c   :  { %v5238_v24 = vsub.f32 %v5162_v45, %v689_v23  ;;  %v4286_v25 = vpop.f32.mrb[3].mxu1  ;;  %v1034_v45 = vlaneseq }
 0x21e   :  { %6441 = vst [vmem:[#allocation26_spill] sm:$0xff] %v5238_v24  ;;  %v716_v27 = vrot.slane %v5238_v24, 7  ;;  %v5255_v34 = vshrl.u32 %v1034_v45, 7  ;;  %v5276_v21 = vrot.slane %v5238_v24, 2  ;;  %v5285_v46 = vrot.slane %v5238_v24, 5 }
 0x220   :  { %v729_v28 = vsel %vm615_vm7, %v5240_v26, %v716_v27  ;;  %v5282_v44 = vsub.s32 0, %v5255_v34  ;;  %6445 = vst [vmem:[#allocation30_spill] sm:$0xff] %v5285_v46 }
 0x221   :  { %v730_v29 = vsel %vm617_vm8, %v729_v28, %v716_v27 }
 0x222   :  { %v5247_v30 = vsel %vm380_vm0, %v730_v29, %v716_v27  ;;  %6444 = vst [vmem:[#allocation29_spill] sm:$0xff] %v5282_v44  ;;  %v1037_v10 = vrot.slane %v5296_v51, %v5282_v44 }
 0x223   :  { %4294 = vmatmul.mubr.msk.f32.vlgmr.msra.gmra.mrb[4].mxu0 %vm619_vm9, %v5247_v30 }
 0x224   :  { %4385 = vmatpush3.bf16.msra.mxu0 %v5113_v15  ;;  %vm5391_vm6 = vcmp.eq.s32.totalorder %v1037_v10, 1 }
 0x225   :  { %4309 = vmatprep.subr.mxu0 %v5118_v16 }
 0x228   :  { %4310 = vmatpush3.msra.mxu0 %v5118_v16 }
 0x229   :  { %4391 = vmatprep.subr.bf16.mxu0 %v5113_v15 }
 0x2f6   :  { %v5310_v56 = vpop.f32.mrb[4].mxu0 }
 0x2f7   :  { %v5326_v5 = vmul.f32 %v5310_v56, %v5240_v26  ;;  %v5328_v6 = vpop.f32.mrb[5].mxu0  ;;  %v5341_v13 = vmul.f32 %v5310_v56, %v5276_v21 }
 0x2f8   :  { %v817_v14 = vmul.f32 %v5258_v37, %v5328_v6  ;;  %v824_v19 = vmul.f32 %v5288_v47, %v5328_v6  ;;  %v814_v50 = vmul.f32 %v5328_v6, %v5201_v61  ;;  %v829_v20 = vmul.f32 %v5328_v6, %v5203_v62 }
 0x2f9   :  { %v832_v23 = vmul.f32 %v5261_v38, %v5328_v6  ;;  %v839_v25 = vmul.f32 %v5291_v48, %v5328_v6  ;;  %v844_v29 = vmul.f32 %v5328_v6, %v5205_v63  ;;  %v847_v45 = vmul.f32 %v5264_v17, %v5328_v6 }
 0x2fa   :  { %v819_v27 = vrot.slane %v817_v14, 1  ;;  %v826_v28 = vrot.slane %v824_v19, 2  ;;  %v855_v41 = vmul.f32 %v5294_v49, %v5328_v6  ;;  %v863_v36 = vmul.f32 %v5299_v52, %v5328_v6 }
 0x2fb   :  { %v834_v32 = vrot.slane %v832_v23, 1  ;;  %v841_v35 = vrot.slane %v839_v25, 2  ;;  %v849_v12 = vrot.slane %v847_v45, 1  ;;  %v866_v14 = vmul.f32 %v5267_v40, %v5328_v6 }
 0x2fc   :  { %v821_v8 = vadd.f32 %v819_v27, %v814_v50  ;;  %v873_v19 = vmul.f32 %v5302_v53, %v5328_v6  ;;  %v857_v39 = vrot.slane %v855_v41, 2  ;;  %v880_v23 = vmul.f32 %v5305_v54, %v5328_v6 }
 0x2fd   :  { %v836_v44 = vadd.f32 %v834_v32, %v829_v20  ;;  %v881_v25 = vmul.f32 %v5328_v6, %v5219_v7  ;;  %v851_v31 = vadd.f32 %v849_v12, %v844_v29  ;;  %v868_v57 = vrot.slane %v866_v14, 1 }
 0x2fe   :  { %v828_v33 = vadd.f32 %v826_v28, %v821_v8  ;;  %v875_v1 = vrot.slane %v873_v19, 2  ;;  %v888_v45 = vmul.f32 %v5308_v55, %v5328_v6  ;;  %v895_v0 = vmul.f32 %v5313_v58, %v5328_v6 }
 0x2ff   :  { %v843_v50 = vadd.f32 %v841_v35, %v836_v44  ;;  %v883_v27 = vrot.slane %v881_v25, 1  ;;  %v859_v20 = vadd.f32 %v857_v39, %v851_v31  ;;  %v870_v41 = vadd.f32 %v868_v57, %v863_v36 }
 0x300   :  { %v898_v32 = vmul.f32 %v5270_v18, %v5328_v6  ;;  %v905_v7 = vmul.f32 %v5316_v59, %v5328_v6  ;;  %v890_v12 = vrot.slane %v888_v45, 2  ;;  %v912_v44 = vmul.f32 %v5319_v60, %v5328_v6 }
 0x301   :  { %v885_v8 = vadd.f32 %v883_v27, %v880_v23  ;;  %v915_v28 = vmul.f32 %v5273_v42, %v5328_v6  ;;  %v877_v29 = vadd.f32 %v875_v1, %v870_v41  ;;  %v920_v31 = vmul.f32 %v5310_v56, %v5211_v2 }
 0x302   :  { %v900_v35 = vrot.slane %v898_v32, 1  ;;  %v907_v14 = vrot.slane %v905_v7, 2  ;;  %v927_v57 = vmul.f32 %v5322_v4, %v5328_v6  ;;  %v930_v19 = vmul.f32 %v5331_v9, %v5328_v6 }
 0x303   :  { %v892_v36 = vadd.f32 %v890_v12, %v885_v8  ;;  %v917_v39 = vrot.slane %v915_v28, 1  ;;  %v922_v25 = vrot.slane %v920_v31, 2  ;;  %v935_v27 = vmul.f32 %v5310_v56, %v5213_v3 }
 0x304   :  { %v902_v23 = vadd.f32 %v900_v35, %v895_v0  ;;  %v996_v45 = vrot.slane %v843_v50, 7  ;;  %v932_v41 = vrot.slane %v930_v19, 1  ;;  %v999_v7 = vrot.slane %v859_v20, 6 }
 0x305   :  { %v919_v1 = vadd.f32 %v917_v39, %v912_v44  ;;  %v1002_v32 = vrot.slane %v892_v36, 7  ;;  %v937_v12 = vrot.slane %v935_v27, 2  ;;  %v942_v0 = vmul.f32 %v5336_v11, %v5328_v6 }
 0x306   :  { %v909_v8 = vadd.f32 %v907_v14, %v902_v23  ;;  %v1022_v28 = vsel %vm615_vm7, %v828_v33, %v996_v45  ;;  %v934_v31 = vadd.f32 %v932_v41, %v927_v57  ;;  %v945_v50 = vmul.f32 %v5279_v43, %v5328_v6 }
 0x307   :  { %v924_v35 = vadd.f32 %v922_v25, %v919_v1  ;;  %v1023_v3 = vsel %vm617_vm8, %v1022_v28, %v999_v7  ;;  %v955_v44 = vmul.f32 %v5328_v6, %v5238_v24  ;;  %v969_v14 = vmul.f32 %v5285_v46, %v5328_v6 }
 0x308   :  { %v1005_v20 = vrot.slane %v909_v8, 6  ;;  %v1024_v10 = vsel %vm380_vm0, %v1023_v3, %v877_v29  ;;  %v939_v33 = vadd.f32 %v937_v12, %v934_v31  ;;  %v947_v39 = vrot.slane %v945_v50, 1 }
 0x309   :  { %v1025_v36 = vsel %vm721_vm15, %v1024_v10, %v1002_v32  ;;  %v982_v57 = vmul.f32 %v5276_v21, %v5328_v6  ;;  %v952_v19 = vrot.slane %v5326_v5, 2  ;;  %v957_v25 = vrot.slane %v955_v44, 1 }
 0x30a   :  { %v1026_v23 = vsel %vm723_vm1, %v1025_v36, %v1005_v20  ;;  %v971_v27 = vrot.slane %v969_v14, 1  ;;  %v1008_v3 = vrot.slane %v939_v33, 7  ;;  %v949_v45 = vadd.f32 %v947_v39, %v942_v0 }
 0x30b   :  { %v1027_v29 = vsel %vm725_vm2, %v1026_v23, %v924_v35  ;;  %v960_v1 = vrot.slane %v955_v44, 2  ;;  %v959_v41 = vadd.f32 %v957_v25, %v955_v44  ;;  %v974_v8 = vrot.slane %v969_v14, 2 }
 0x30c   :  { %v973_v7 = vadd.f32 %v971_v27, %v969_v14  ;;  %v984_v12 = vrot.slane %v982_v57, 1  ;;  %v977_v32 = vrot.slane %v5310_v56, 7  ;;  %v989_v28 = vrot.slane %v5341_v13, 2 }
 0x30d   :  { %v1028_v6 = vsel %vm727_vm3, %v1027_v29, %v1008_v3  ;;  %v954_v5 = vadd.f32 %v952_v19, %v949_v45  ;;  %v962_v50 = vadd.f32 %v960_v1, %v959_v41  ;;  %v6451_v20 = vrot.slane %v5310_v56, 1 }
 0x30e   :  { %v5418_v31 = vsel %vm5391_vm6, %v1028_v6, %v5233_v22  ;;  %v976_v35 = vadd.f32 %v974_v8, %v973_v7  ;;  %v986_v0 = vadd.f32 %v984_v12, %v982_v57  ;;  %v992_v13 = vrot.slane %v5310_v56, 5 }
 0x30f   :  { %4302 = vmatprep.mubr.msk.f32.mxu1 %vm619_vm9, %v5418_v31  ;;  %v966_v10 = vadd.f32 %v6451_v20, %v962_v50  ;;  %v1011_v36 = vrot.slane %v954_v5, 6  ;;  %v1296_v56 = vsub.s32 1, %v5255_v34 }
 0x310   :  { %v979_v44 = vadd.f32 %v977_v32, %v976_v35  ;;  %v991_v14 = vadd.f32 %v989_v28, %v986_v0 }
 0x311   :  { %v1014_v39 = vrot.slane %v966_v10, 7  ;;  %v5449_v29 = vrot.slane %v5296_v51, %v1296_v56 }
 0x312   :  { %v994_v33 = vadd.f32 %v992_v13, %v991_v14  ;;  %v1017_v19 = vrot.slane %v979_v44, 1 }
 0x313   :  { %v1029_v22 = vsel %vm615_vm7, %v1011_v36, %v1014_v39  ;;  %vm1298_vm10 = vcmp.eq.s32.totalorder %v5449_v29, 1 }
 0x314   :  { %v1020_v23 = vrot.slane %v994_v33, 3  ;;  %v1030_v25 = vsel %vm617_vm8, %v1029_v22, %v1017_v19  ;;  %v6452_v22 = vld [vmem:[#allocation25_spill] sm:$0xff] }
 0x316   :  { %v1031_v57 = vsel %vm380_vm0, %v1030_v25, %v1020_v23 }
 0x317   :  { %v5431_v27 = vsel %vm5391_vm6, %v1031_v57, %v5247_v30  ;;  %vm2996_vm6 = vcmask 785408  }
 0x318   :  { %4303 = vmatmul.mubr.msk.f32.vlgmr.msra.gmra.mrb[4].mxu1 %vm619_vm9, %v5431_v27 }
 0x319   :  { %4389 = vmatpush3.bf16.msra.mxu1 %v5113_v15 }
 0x31a   :  { %4318 = vmatprep.subr.mxu1 %v5118_v16 }
 0x31d   :  { %4319 = vmatpush3.msra.mxu1 %v5118_v16 }
 0x31e   :  { %4395 = vmatprep.subr.bf16.mxu1 %v5113_v15 }
 0x3eb   :  { %v5440_v3 = vpop.f32.mrb[4].mxu1 }
 0x3ec   :  { %v5444_v2 = vmul.f32 %v5440_v3, %v5240_v26  ;;  %v5446_v30 = vpop.f32.mrb[5].mxu1  ;;  %v5454_v1 = vmul.f32 %v5440_v3, %v5276_v21 }
 0x3ed   :  { %v1123_v41 = vmul.f32 %v5446_v30, %v5258_v37  ;;  %v1128_v7 = vmul.f32 %v5446_v30, %v5288_v47  ;;  %v1122_v8 = vmul.f32 %v5446_v30, %v5201_v61  ;;  %v1133_v12 = vmul.f32 %v5446_v30, %v5203_v62 }
 0x3ee   :  { %v1134_v32 = vmul.f32 %v5446_v30, %v5261_v38  ;;  %v1139_v28 = vmul.f32 %v5446_v30, %v5291_v48  ;;  %v1144_v50 = vmul.f32 %v5446_v30, %v5205_v63  ;;  %v1145_v35 = vmul.f32 %v5446_v30, %v5264_v17 }
 0x3ef   :  { %v1125_v6 = vrot.slane %v1123_v41, 1  ;;  %v1130_v5 = vrot.slane %v1128_v7, 2  ;;  %v1150_v10 = vmul.f32 %v5446_v30, %v5294_v49  ;;  %v1155_v44 = vmul.f32 %v5446_v30, %v5299_v52 }
 0x3f0   :  { %v1136_v0 = vrot.slane %v1134_v32, 1  ;;  %v1141_v20 = vrot.slane %v1139_v28, 2  ;;  %v1147_v13 = vrot.slane %v1145_v35, 1  ;;  %v1156_v33 = vmul.f32 %v5446_v30, %v5267_v40 }
 0x3f1   :  { %v1127_v14 = vadd.f32 %v1125_v6, %v1122_v8  ;;  %v1161_v36 = vmul.f32 %v5446_v30, %v5302_v53  ;;  %v1152_v19 = vrot.slane %v1150_v10, 2  ;;  %v1166_v23 = vmul.f32 %v5446_v30, %v5305_v54 }
 0x3f2   :  { %v1138_v39 = vadd.f32 %v1136_v0, %v1133_v12  ;;  %v1167_v25 = vmul.f32 %v5446_v30, %v6452_v22  ;;  %v1149_v56 = vadd.f32 %v1147_v13, %v1144_v50  ;;  %v1158_v41 = vrot.slane %v1156_v33, 1 }
 0x3f3   :  { %v1132_v57 = vadd.f32 %v1130_v5, %v1127_v14  ;;  %v1163_v7 = vrot.slane %v1161_v36, 2  ;;  %v1172_v28 = vmul.f32 %v5446_v30, %v5308_v55  ;;  %v1177_v6 = vmul.f32 %v5446_v30, %v5313_v58 }
 0x3f4   :  { %v1143_v8 = vadd.f32 %v1141_v20, %v1138_v39  ;;  %v1169_v32 = vrot.slane %v1167_v25, 1  ;;  %v1154_v12 = vadd.f32 %v1152_v19, %v1149_v56  ;;  %v1160_v35 = vadd.f32 %v1158_v41, %v1155_v44  ;;  %v6453_v39 = vld [vmem:[#allocation23_spill] sm:$0xff] }
 0x3f5   :  { %v1178_v0 = vmul.f32 %v5446_v30, %v5270_v18  ;;  %v1183_v10 = vmul.f32 %v5446_v30, %v5316_v59  ;;  %v1174_v50 = vrot.slane %v1172_v28, 2  ;;  %v1188_v20 = vmul.f32 %v5446_v30, %v5319_v60  ;;  %v6454_v28 = vld [vmem:[#allocation24_spill] sm:$0xff]  ;;  %2981 = vrot.lane.b32.xlu0 %v6453_v39, %s4950_s4 }
 0x3f6   :  { %v1171_v5 = vadd.f32 %v1169_v32, %v1166_v23  ;;  %v1189_v14 = vmul.f32 %v5446_v30, %v5273_v42  ;;  %v1165_v13 = vadd.f32 %v1163_v7, %v1160_v35  ;;  %v1194_v44 = vmul.f32 %v5440_v3, %v6453_v39 }
 0x3f7   :  { %v1180_v33 = vrot.slane %v1178_v0, 1  ;;  %v1185_v36 = vrot.slane %v1183_v10, 2  ;;  %v1199_v56 = vmul.f32 %v5446_v30, %v5322_v4  ;;  %v1200_v23 = vmul.f32 %v5446_v30, %v5331_v9 }
 0x3f8   :  { %v1176_v19 = vadd.f32 %v1174_v50, %v1171_v5  ;;  %v1191_v25 = vrot.slane %v1189_v14, 1  ;;  %v1196_v32 = vrot.slane %v1194_v44, 2  ;;  %v1205_v45 = vmul.f32 %v5440_v3, %v6454_v28 }
 0x3f9   :  { %v1182_v41 = vadd.f32 %v1180_v33, %v1177_v6  ;;  %v1258_v42 = vrot.slane %v1143_v8, 7  ;;  %v1202_v35 = vrot.slane %v1200_v23, 1  ;;  %v1261_v0 = vrot.slane %v1154_v12, 6  ;;  %2984 = vrot.lane.b32.xlu0 %v6454_v28, %s4951_s23 }
 0x3fa   :  { %v1193_v7 = vadd.f32 %v1191_v25, %v1188_v20  ;;  %v1264_v10 = vrot.slane %v1176_v19, 7  ;;  %v1207_v50 = vrot.slane %v1205_v45, 2  ;;  %v1210_v4 = vmul.f32 %v5446_v30, %v5336_v11 }
 0x3fb   :  { %v1187_v5 = vadd.f32 %v1185_v36, %v1182_v41  ;;  %v1284_v14 = vsel %vm615_vm7, %v1132_v57, %v1258_v42  ;;  %v1204_v6 = vadd.f32 %v1202_v35, %v1199_v56  ;;  %v1211_v8 = vmul.f32 %v5446_v30, %v5279_v43 }
 0x3fc   :  { %v1198_v9 = vadd.f32 %v1196_v32, %v1193_v7  ;;  %v1285_v33 = vsel %vm617_vm8, %v1284_v14, %v1261_v0  ;;  %v1221_v44 = vmul.f32 %v5446_v30, %v5238_v24  ;;  %v1233_v45 = vmul.f32 %v5446_v30, %v5285_v46 }
 0x3fd   :  { %v1267_v20 = vrot.slane %v1187_v5, 6  ;;  %v1286_v12 = vsel %vm380_vm0, %v1285_v33, %v1165_v13  ;;  %v1209_v42 = vadd.f32 %v1207_v50, %v1204_v6  ;;  %v1213_v36 = vrot.slane %v1211_v8, 1 }
 0x3fe   :  { %v1287_v57 = vsel %vm721_vm15, %v1286_v12, %v1264_v10  ;;  %v1244_v19 = vmul.f32 %v5446_v30, %v5276_v21  ;;  %v1218_v25 = vrot.slane %v5444_v2, 2  ;;  %v1223_v23 = vrot.slane %v1221_v44, 1 }
 0x3ff   :  { %v1288_v56 = vsel %vm723_vm1, %v1287_v57, %v1267_v20  ;;  %v1235_v41 = vrot.slane %v1233_v45, 1  ;;  %v1270_v13 = vrot.slane %v1209_v42, 7  ;;  %v1215_v7 = vadd.f32 %v1213_v36, %v1210_v4 }
 0x400   :  { %v1289_v32 = vsel %vm725_vm2, %v1288_v56, %v1198_v9  ;;  %v1226_v35 = vrot.slane %v1221_v44, 2  ;;  %v1225_v0 = vadd.f32 %v1223_v23, %v1221_v44  ;;  %v1238_v50 = vrot.slane %v1233_v45, 2 }
 0x401   :  { %v1237_v5 = vadd.f32 %v1235_v41, %v1233_v45  ;;  %v1246_v14 = vrot.slane %v1244_v19, 1  ;;  %v1241_v10 = vrot.slane %v5440_v3, 7  ;;  %v1251_v6 = vrot.slane %v5454_v1, 2 }
 0x402   :  { %v1290_v30 = vsel %vm727_vm3, %v1289_v32, %v1270_v13  ;;  %v1220_v2 = vadd.f32 %v1218_v25, %v1215_v7  ;;  %v1228_v8 = vadd.f32 %v1226_v35, %v1225_v0  ;;  %v6455_v20 = vrot.slane %v5440_v3, 1 }
 0x403   :  { %v5528_v33 = vsel %vm1298_vm10, %v1290_v30, %v5418_v31  ;;  %v1240_v9 = vadd.f32 %v1238_v50, %v1237_v5  ;;  %v1248_v4 = vadd.f32 %v1246_v14, %v1244_v19  ;;  %v1254_v1 = vrot.slane %v5440_v3, 5 }
 0x404   :  { %4311 = vmatprep.mubr.msk.f32.mxu0 %vm619_vm9, %v5528_v33  ;;  %v1232_v12 = vadd.f32 %v6455_v20, %v1228_v8  ;;  %v1273_v57 = vrot.slane %v1220_v2, 6  ;;  %v1556_v3 = vsub.s32 2, %v5255_v34 }
 0x405   :  { %v1243_v44 = vadd.f32 %v1241_v10, %v1240_v9  ;;  %v1253_v45 = vadd.f32 %v1251_v6, %v1248_v4 }
 0x406   :  { %v1276_v36 = vrot.slane %v1232_v12, 7  ;;  %v5559_v32 = vrot.slane %v5296_v51, %v1556_v3 }
 0x407   :  { %v1256_v42 = vadd.f32 %v1254_v1, %v1253_v45  ;;  %v1279_v25 = vrot.slane %v1243_v44, 1 }
 0x408   :  { %v1291_v31 = vsel %vm615_vm7, %v1273_v57, %v1276_v36  ;;  %vm1558_vm11 = vcmp.eq.s32.totalorder %v5559_v32, 1 }
 0x409   :  { %v1282_v56 = vrot.slane %v1256_v42, 3  ;;  %v1292_v23 = vsel %vm617_vm8, %v1291_v31, %v1279_v25 }
 0x40b   :  { %v1293_v19 = vsel %vm380_vm0, %v1292_v23, %v1282_v56 }
 0x40c   :  { %v5541_v41 = vsel %vm1298_vm10, %v1293_v19, %v5431_v27  ;;  %vm2998_vm10 = vcmask 982016  }
 0x40d   :  { %4312 = vmatmul.mubr.msk.f32.vlgmr.msra.gmra.mrb[6].mxu0 %vm619_vm9, %v5541_v41 }
 0x40e   :  { %4393 = vmatpush3.bf16.msra.mxu0 %v5113_v15 }
 0x40f   :  { %4327 = vmatprep.subr.mxu0 %v5118_v16 }
 0x412   :  { %4328 = vmatpush3.msra.mxu0 %v5118_v16 }
 0x413   :  { %4399 = vmatprep.subr.bf16.mxu0 %v5113_v15 }
 0x4e0   :  { %v5550_v13 = vpop.f32.mrb[6].mxu0 }
 0x4e1   :  { %v5554_v29 = vmul.f32 %v5550_v13, %v5240_v26  ;;  %v5556_v27 = vpop.f32.mrb[7].mxu0  ;;  %v5564_v16 = vmul.f32 %v5550_v13, %v5276_v21 }
 0x4e2   :  { %v1383_v35 = vmul.f32 %v5556_v27, %v5258_v37  ;;  %v1388_v0 = vmul.f32 %v5556_v27, %v5288_v47  ;;  %v1382_v5 = vmul.f32 %v5556_v27, %v5201_v61  ;;  %v1393_v50 = vmul.f32 %v5556_v27, %v5203_v62 }
 0x4e3   :  { %v1394_v14 = vmul.f32 %v5556_v27, %v5261_v38  ;;  %v1399_v10 = vmul.f32 %v5556_v27, %v5291_v48  ;;  %v1404_v2 = vmul.f32 %v5556_v27, %v5205_v63  ;;  %v1405_v8 = vmul.f32 %v5556_v27, %v5264_v17 }
 0x4e4   :  { %v1385_v6 = vrot.slane %v1383_v35, 1  ;;  %v1390_v30 = vrot.slane %v1388_v0, 2  ;;  %v1410_v20 = vmul.f32 %v5556_v27, %v5294_v49  ;;  %v1415_v12 = vmul.f32 %v5556_v27, %v5299_v52 }
 0x4e5   :  { %v1396_v9 = vrot.slane %v1394_v14, 1  ;;  %v1401_v4 = vrot.slane %v1399_v10, 2  ;;  %v1407_v45 = vrot.slane %v1405_v8, 1  ;;  %v1416_v1 = vmul.f32 %v5556_v27, %v5267_v40 }
 0x4e6   :  { %v1387_v44 = vadd.f32 %v1385_v6, %v1382_v5  ;;  %v1421_v42 = vmul.f32 %v5556_v27, %v5302_v53  ;;  %v1412_v36 = vrot.slane %v1410_v20, 2  ;;  %v1426_v25 = vmul.f32 %v5556_v27, %v5305_v54 }
 0x4e7   :  { %v1398_v57 = vadd.f32 %v1396_v9, %v1393_v50  ;;  %v1427_v56 = vmul.f32 %v5556_v27, %v6452_v22  ;;  %v1409_v23 = vadd.f32 %v1407_v45, %v1404_v2  ;;  %v1418_v19 = vrot.slane %v1416_v1, 1 }
 0x4e8   :  { %v1392_v31 = vadd.f32 %v1390_v30, %v1387_v44  ;;  %v1423_v3 = vrot.slane %v1421_v42, 2  ;;  %v1432_v5 = vmul.f32 %v5556_v27, %v5308_v55  ;;  %v1437_v14 = vmul.f32 %v5556_v27, %v5313_v58 }
 0x4e9   :  { %v1403_v35 = vadd.f32 %v1401_v4, %v1398_v57  ;;  %v1429_v0 = vrot.slane %v1427_v56, 1  ;;  %v1414_v50 = vadd.f32 %v1412_v36, %v1409_v23  ;;  %v1420_v10 = vadd.f32 %v1418_v19, %v1415_v12  ;;  %v6456_v4 = vld [vmem:[#allocation27_spill] sm:$0xff]  ;;  %v6458_v23 = vld [vmem:[#allocation32_spill] sm:$0xff] }
 0x4ea   :  { %v1438_v6 = vmul.f32 %v5556_v27, %v5270_v18  ;;  %v1443_v8 = vmul.f32 %v5556_v27, %v5316_v59  ;;  %v1434_v2 = vrot.slane %v1432_v5, 2  ;;  %v1448_v9 = vmul.f32 %v5556_v27, %v5319_v60  ;;  %v6457_v36 = vld [vmem:[#allocation31_spill] sm:$0xff] }
 0x4eb   :  { %v1431_v30 = vadd.f32 %v1429_v0, %v1426_v25  ;;  %v1449_v20 = vmul.f32 %v5556_v27, %v6456_v4  ;;  %v1425_v44 = vadd.f32 %v1423_v3, %v1420_v10  ;;  %v1454_v12 = vmul.f32 %v5550_v13, %v6453_v39 }
 0x4ec   :  { %v1440_v45 = vrot.slane %v1438_v6, 1  ;;  %v1445_v1 = vrot.slane %v1443_v8, 2  ;;  %v1459_v56 = vmul.f32 %v5556_v27, %v6457_v36  ;;  %v1460_v25 = vmul.f32 %v5556_v27, %v6458_v23 }
 0x4ed   :  { %v1436_v42 = vadd.f32 %v1434_v2, %v1431_v30  ;;  %v1451_v57 = vrot.slane %v1449_v20, 1  ;;  %v1456_v0 = vrot.slane %v1454_v12, 2  ;;  %v1465_v5 = vmul.f32 %v5550_v13, %v6454_v28 }
 0x4ee   :  { %v1442_v19 = vadd.f32 %v1440_v45, %v1437_v14  ;;  %v1518_v7 = vrot.slane %v1403_v35, 7  ;;  %v1462_v10 = vrot.slane %v1460_v25, 1  ;;  %v1521_v6 = vrot.slane %v1414_v50, 6 }
 0x4ef   :  { %v1453_v3 = vadd.f32 %v1451_v57, %v1448_v9  ;;  %v1524_v8 = vrot.slane %v1436_v42, 7  ;;  %v1467_v2 = vrot.slane %v1465_v5, 2  ;;  %v1470_v36 = vmul.f32 %v5556_v27, %v5336_v11 }
 0x4f0   :  { %v1447_v30 = vadd.f32 %v1445_v1, %v1442_v19  ;;  %v1544_v20 = vsel %vm615_vm7, %v1392_v31, %v1518_v7  ;;  %v1464_v14 = vadd.f32 %v1462_v10, %v1459_v56  ;;  %v1471_v35 = vmul.f32 %v5556_v27, %v5279_v43 }
 0x4f1   :  { %v1458_v23 = vadd.f32 %v1456_v0, %v1453_v3  ;;  %v1545_v45 = vsel %vm617_vm8, %v1544_v20, %v1521_v6  ;;  %v1481_v12 = vmul.f32 %v5556_v27, %v5238_v24  ;;  %v1493_v1 = vmul.f32 %v5556_v27, %v5285_v46 }
 0x4f2   :  { %v1527_v9 = vrot.slane %v1447_v30, 6  ;;  %v1546_v50 = vsel %vm380_vm0, %v1545_v45, %v1425_v44  ;;  %v1469_v7 = vadd.f32 %v1467_v2, %v1464_v14  ;;  %v1473_v42 = vrot.slane %v1471_v35, 1 }
 0x4f3   :  { %v1547_v31 = vsel %vm721_vm15, %v1546_v50, %v1524_v8  ;;  %v1504_v57 = vmul.f32 %v5556_v27, %v5276_v21  ;;  %v1478_v56 = vrot.slane %v5554_v29, 2  ;;  %v1483_v19 = vrot.slane %v1481_v12, 1 }
 0x4f4   :  { %v1548_v25 = vsel %vm723_vm1, %v1547_v31, %v1527_v9  ;;  %v1495_v0 = vrot.slane %v1493_v1, 1  ;;  %v1530_v44 = vrot.slane %v1469_v7, 7  ;;  %v1475_v3 = vadd.f32 %v1473_v42, %v1470_v36 }
 0x4f5   :  { %v1549_v5 = vsel %vm725_vm2, %v1548_v25, %v1458_v23  ;;  %v1486_v10 = vrot.slane %v1481_v12, 2  ;;  %v1485_v6 = vadd.f32 %v1483_v19, %v1481_v12  ;;  %v1498_v2 = vrot.slane %v1493_v1, 2 }
 0x4f6   :  { %v1497_v30 = vadd.f32 %v1495_v0, %v1493_v1  ;;  %v1506_v20 = vrot.slane %v1504_v57, 1  ;;  %v1501_v8 = vrot.slane %v5550_v13, 7  ;;  %v1511_v14 = vrot.slane %v5564_v16, 2 }
 0x4f7   :  { %v1550_v27 = vsel %vm727_vm3, %v1549_v5, %v1530_v44  ;;  %v1480_v29 = vadd.f32 %v1478_v56, %v1475_v3  ;;  %v1488_v35 = vadd.f32 %v1486_v10, %v1485_v6  ;;  %v6459_v9 = vrot.slane %v5550_v13, 1 }
 0x4f8   :  { %v5638_v45 = vsel %vm1558_vm11, %v1550_v27, %v5528_v33  ;;  %v1500_v23 = vadd.f32 %v1498_v2, %v1497_v30  ;;  %v1508_v36 = vadd.f32 %v1506_v20, %v1504_v57  ;;  %v1514_v16 = vrot.slane %v5550_v13, 5  ;;  %v5656_v13 = vld [vmem:[#allocation8 + $0x10] sm:$0xff] }
 0x4f9   :  { %4320 = vmatprep.mubr.msk.f32.mxu1 %vm619_vm9, %v5638_v45  ;;  %v1492_v50 = vadd.f32 %v6459_v9, %v1488_v35  ;;  %v1533_v31 = vrot.slane %v1480_v29, 6  ;;  %v1816_v44 = vsub.s32 3, %v5255_v34 }
 0x4fa   :  { %v1503_v12 = vadd.f32 %v1501_v8, %v1500_v23  ;;  %v1513_v1 = vadd.f32 %v1511_v14, %v1508_v36 }
 0x4fb   :  { %v1536_v42 = vrot.slane %v1492_v50, 7  ;;  %v5671_v3 = vrot.slane %v5296_v51, %v1816_v44 }
 0x4fc   :  { %v1516_v7 = vadd.f32 %v1514_v16, %v1513_v1  ;;  %v1539_v56 = vrot.slane %v1503_v12, 1 }
 0x4fd   :  { %v1551_v33 = vsel %vm615_vm7, %v1533_v31, %v1536_v42  ;;  %vm1818_vm12 = vcmp.eq.s32.totalorder %v5671_v3, 1 }
 0x4fe   :  { %v1542_v25 = vrot.slane %v1516_v7, 3  ;;  %v1552_v19 = vsel %vm617_vm8, %v1551_v33, %v1539_v56 }
 0x500   :  { %v1553_v57 = vsel %vm380_vm0, %v1552_v19, %v1542_v25 }
 0x501   :  { %v5651_v0 = vsel %vm1558_vm11, %v1553_v57, %v5541_v41  ;;  %vm3000_vm11 = vcmask 130048  }
 0x502   :  { %4321 = vmatmul.mubr.msk.f32.vlgmr.msra.gmra.mrb[6].mxu1 %vm619_vm9, %v5651_v0 }
 0x503   :  { %4397 = vmatpush3.bf16.msra.mxu1 %v5113_v15 }
 0x504   :  { %4336 = vmatprep.subr.mxu1 %v5656_v13 }
 0x507   :  { %4337 = vmatpush3.msra.mxu1 %v5656_v13 }
 0x508   :  { %4403 = vmatprep.subr.bf16.mxu1 %v5113_v15 }
 0x5d5   :  { %v5662_v5 = vpop.f32.mrb[6].mxu1 }
 0x5d6   :  { %v5666_v41 = vmul.f32 %v5662_v5, %v5240_v26  ;;  %v5668_v32 = vpop.f32.mrb[7].mxu1  ;;  %v5676_v6 = vmul.f32 %v5662_v5, %v5276_v21  ;;  %v1725_v10 = vmul.f32 %v5662_v5, %v6454_v28 }
 0x5d7   :  { %v1643_v30 = vmul.f32 %v5668_v32, %v5258_v37  ;;  %v1648_v2 = vmul.f32 %v5668_v32, %v5288_v47  ;;  %v1642_v20 = vmul.f32 %v5668_v32, %v5201_v61  ;;  %v1653_v8 = vmul.f32 %v5668_v32, %v5203_v62 }
 0x5d8   :  { %v1654_v14 = vmul.f32 %v5668_v32, %v5261_v38  ;;  %v1659_v27 = vmul.f32 %v5668_v32, %v5291_v48  ;;  %v1664_v23 = vmul.f32 %v5668_v32, %v5205_v63  ;;  %v1665_v36 = vmul.f32 %v5668_v32, %v5264_v17 }
 0x5d9   :  { %v1645_v29 = vrot.slane %v1643_v30, 1  ;;  %v1650_v35 = vrot.slane %v1648_v2, 2  ;;  %v1670_v12 = vmul.f32 %v5668_v32, %v5294_v49  ;;  %v1675_v1 = vmul.f32 %v5668_v32, %v5299_v52 }
 0x5da   :  { %v1656_v9 = vrot.slane %v1654_v14, 1  ;;  %v1661_v50 = vrot.slane %v1659_v27, 2  ;;  %v1667_v7 = vrot.slane %v1665_v36, 1  ;;  %v1676_v31 = vmul.f32 %v5668_v32, %v5267_v40 }
 0x5db   :  { %v1647_v16 = vadd.f32 %v1645_v29, %v1642_v20  ;;  %v1681_v42 = vmul.f32 %v5668_v32, %v5302_v53  ;;  %v1672_v25 = vrot.slane %v1670_v12, 2  ;;  %v1686_v33 = vmul.f32 %v5668_v32, %v5305_v54 }
 0x5dc   :  { %v1658_v56 = vadd.f32 %v1656_v9, %v1653_v8  ;;  %v1687_v19 = vmul.f32 %v5668_v32, %v6452_v22  ;;  %v1669_v44 = vadd.f32 %v1667_v7, %v1664_v23  ;;  %v1678_v30 = vrot.slane %v1676_v31, 1 }
 0x5dd   :  { %v1652_v57 = vadd.f32 %v1650_v35, %v1647_v16  ;;  %v1683_v2 = vrot.slane %v1681_v42, 2  ;;  %v1692_v27 = vmul.f32 %v5668_v32, %v5308_v55  ;;  %v1697_v29 = vmul.f32 %v5668_v32, %v5313_v58 }
 0x5de   :  { %v1663_v20 = vadd.f32 %v1661_v50, %v1658_v56  ;;  %v1689_v14 = vrot.slane %v1687_v19, 1  ;;  %v1674_v8 = vadd.f32 %v1672_v25, %v1669_v44  ;;  %v1680_v36 = vadd.f32 %v1678_v30, %v1675_v1  ;;  %v6460_v19 = vld [vmem:[#allocation31_spill] sm:$0xff]  ;;  %v6461_v30 = vld [vmem:[#allocation32_spill] sm:$0xff] }
 0x5df   :  { %v1698_v9 = vmul.f32 %v5668_v32, %v5270_v18  ;;  %v1703_v12 = vmul.f32 %v5668_v32, %v5316_v59  ;;  %v1694_v23 = vrot.slane %v1692_v27, 2  ;;  %v1708_v50 = vmul.f32 %v5668_v32, %v5319_v60 }
 0x5e0   :  { %v1691_v35 = vadd.f32 %v1689_v14, %v1686_v33  ;;  %v1709_v16 = vmul.f32 %v5668_v32, %v6456_v4  ;;  %v1685_v7 = vadd.f32 %v1683_v2, %v1680_v36  ;;  %v1714_v1 = vmul.f32 %v5662_v5, %v6453_v39 }
 0x5e1   :  { %v1700_v31 = vrot.slane %v1698_v9, 1  ;;  %v1705_v42 = vrot.slane %v1703_v12, 2  ;;  %v1719_v44 = vmul.f32 %v5668_v32, %v6460_v19  ;;  %v1720_v33 = vmul.f32 %v5668_v32, %v6461_v30 }
 0x5e2   :  { %v1696_v56 = vadd.f32 %v1694_v23, %v1691_v35  ;;  %v1711_v25 = vrot.slane %v1709_v16, 1  ;;  %v1716_v27 = vrot.slane %v1714_v1, 2  ;;  %v1778_v4 = vrot.slane %v1663_v20, 7 }
 0x5e3   :  { %v1702_v14 = vadd.f32 %v1700_v31, %v1697_v29  ;;  %v1722_v36 = vrot.slane %v1720_v33, 1  ;;  %v1781_v9 = vrot.slane %v1674_v8, 6  ;;  %v1727_v23 = vrot.slane %v1725_v10, 2 }
 0x5e4   :  { %v1713_v2 = vadd.f32 %v1711_v25, %v1708_v50  ;;  %v1784_v12 = vrot.slane %v1696_v56, 7  ;;  %v1804_v16 = vsel %vm615_vm7, %v1652_v57, %v1778_v4  ;;  %v1730_v19 = vmul.f32 %v5668_v32, %v5336_v11 }
 0x5e5   :  { %v1707_v35 = vadd.f32 %v1705_v42, %v1702_v14  ;;  %v1724_v29 = vadd.f32 %v1722_v36, %v1719_v44  ;;  %v1805_v31 = vsel %vm617_vm8, %v1804_v16, %v1781_v9  ;;  %v1731_v20 = vmul.f32 %v5668_v32, %v5279_v43 }
 0x5e6   :  { %v1718_v30 = vadd.f32 %v1716_v27, %v1713_v2  ;;  %v1806_v8 = vsel %vm380_vm0, %v1805_v31, %v1685_v7  ;;  %v1741_v1 = vmul.f32 %v5668_v32, %v5238_v24  ;;  %v1753_v10 = vmul.f32 %v5668_v32, %v5285_v46 }
 0x5e7   :  { %v1787_v50 = vrot.slane %v1707_v35, 6  ;;  %v1729_v4 = vadd.f32 %v1727_v23, %v1724_v29  ;;  %v1807_v57 = vsel %vm721_vm15, %v1806_v8, %v1784_v12  ;;  %v1733_v42 = vrot.slane %v1731_v20, 1 }
 0x5e8   :  { %v1764_v56 = vmul.f32 %v5668_v32, %v5276_v21  ;;  %v1738_v25 = vrot.slane %v5666_v41, 2  ;;  %v1743_v33 = vrot.slane %v1741_v1, 1  ;;  %v1755_v14 = vrot.slane %v1753_v10, 1 }
 0x5e9   :  { %v1808_v44 = vsel %vm723_vm1, %v1807_v57, %v1787_v50  ;;  %v1790_v7 = vrot.slane %v1729_v4, 7  ;;  %v1735_v2 = vadd.f32 %v1733_v42, %v1730_v19  ;;  %v1746_v36 = vrot.slane %v1741_v1, 2 }
 0x5ea   :  { %v1809_v27 = vsel %vm725_vm2, %v1808_v44, %v1718_v30  ;;  %v1745_v9 = vadd.f32 %v1743_v33, %v1741_v1  ;;  %v1757_v35 = vadd.f32 %v1755_v14, %v1753_v10  ;;  %v1758_v23 = vrot.slane %v1753_v10, 2 }
 0x5eb   :  { %v1766_v16 = vrot.slane %v1764_v56, 1  ;;  %v1761_v12 = vrot.slane %v5662_v5, 7  ;;  %v1771_v29 = vrot.slane %v5676_v6, 2  ;;  %v1810_v32 = vsel %vm727_vm3, %v1809_v27, %v1790_v7 }
 0x5ec   :  { %v1740_v41 = vadd.f32 %v1738_v25, %v1735_v2  ;;  %v5750_v31 = vsel %vm1818_vm12, %v1810_v32, %v5638_v45  ;;  %v1748_v20 = vadd.f32 %v1746_v36, %v1745_v9  ;;  %v1760_v30 = vadd.f32 %v1758_v23, %v1757_v35 }
 0x5ed   :  { %v1768_v19 = vadd.f32 %v1766_v16, %v1764_v56  ;;  %4329 = vmatprep.mubr.msk.f32.mxu0 %vm619_vm9, %v5750_v31  ;;  %v6462_v50 = vrot.slane %v5662_v5, 1  ;;  %v1774_v6 = vrot.slane %v5662_v5, 5  ;;  %v2076_v5 = vsub.s32 4, %v5255_v34 }
 0x5ee   :  { %v1763_v1 = vadd.f32 %v1761_v12, %v1760_v30  ;;  %v1793_v57 = vrot.slane %v1740_v41, 6 }
 0x5ef   :  { %v1752_v8 = vadd.f32 %v6462_v50, %v1748_v20  ;;  %v1773_v10 = vadd.f32 %v1771_v29, %v1768_v19 }
 0x5f0   :  { %v1799_v25 = vrot.slane %v1763_v1, 1 }
 0x5f1   :  { %v1776_v4 = vadd.f32 %v1774_v6, %v1773_v10  ;;  %v1796_v42 = vrot.slane %v1752_v8, 7 }
 0x5f3   :  { %v1802_v44 = vrot.slane %v1776_v4, 3  ;;  %v1811_v45 = vsel %vm615_vm7, %v1793_v57, %v1796_v42 }
 0x5f4   :  { %v1812_v33 = vsel %vm617_vm8, %v1811_v45, %v1799_v25 }
 0x5f5   :  { %v1813_v56 = vsel %vm380_vm0, %v1812_v33, %v1802_v44 }
 0x5f6   :  { %v5763_v14 = vsel %vm1818_vm12, %v1813_v56, %v5651_v0  ;;  %v5780_v0 = vrot.slane %v5296_v51, %v2076_v5  ;;  %vm3002_vm12 = vcmask 326656  }
 0x5f7   :  { %4330 = vmatmul.mubr.msk.f32.vlgmr.msra.gmra.mrb[8].mxu0 %vm619_vm9, %v5763_v14 }
 0x5f8   :  { %4401 = vmatpush3.bf16.msra.mxu0 %v5113_v15  ;;  %vm2078_vm13 = vcmp.eq.s32.totalorder %v5780_v0, 1  ;;  %v6469_v0 = vld [vmem:[#allocation20_spill] sm:$0xff] }
 0x5f9   :  { %4345 = vmatprep.subr.mxu0 %v5656_v13 }
 0x5fc   :  { %4346 = vmatpush3.msra.mxu0 %v5656_v13 }
 0x6ca   :  { %v5771_v7 = vpop.f32.mrb[8].mxu0 }
 0x6cb   :  { %v5775_v27 = vmul.f32 %v5771_v7, %v5240_v26  ;;  %v5777_v3 = vpop.f32.mrb[9].mxu0  ;;  %v5785_v36 = vmul.f32 %v5771_v7, %v5276_v21  ;;  %v1985_v2 = vmul.f32 %v5771_v7, %v6454_v28 }
 0x6cc   :  { %v1903_v9 = vmul.f32 %v5777_v3, %v5258_v37  ;;  %v1908_v35 = vmul.f32 %v5777_v3, %v5288_v47  ;;  %v1902_v23 = vmul.f32 %v5777_v3, %v5201_v61  ;;  %v1913_v16 = vmul.f32 %v5777_v3, %v5203_v62 }
 0x6cd   :  { %v1914_v12 = vmul.f32 %v5777_v3, %v5261_v38  ;;  %v1919_v29 = vmul.f32 %v5777_v3, %v5291_v48  ;;  %v1924_v20 = vmul.f32 %v5777_v3, %v5205_v63  ;;  %v1925_v30 = vmul.f32 %v5777_v3, %v5264_v17 }
 0x6ce   :  { %v1905_v32 = vrot.slane %v1903_v9, 1  ;;  %v1910_v41 = vrot.slane %v1908_v35, 2  ;;  %v1930_v8 = vmul.f32 %v5777_v3, %v5294_v49  ;;  %v1935_v1 = vmul.f32 %v5777_v3, %v5299_v52 }
 0x6cf   :  { %v1916_v19 = vrot.slane %v1914_v12, 1  ;;  %v1921_v50 = vrot.slane %v1919_v29, 2  ;;  %v1927_v6 = vrot.slane %v1925_v30, 1  ;;  %v1936_v4 = vmul.f32 %v5777_v3, %v5267_v40 }
 0x6d0   :  { %v1907_v10 = vadd.f32 %v1905_v32, %v1902_v23  ;;  %v1941_v57 = vmul.f32 %v5777_v3, %v5302_v53  ;;  %v1932_v25 = vrot.slane %v1930_v8, 2  ;;  %v1946_v44 = vmul.f32 %v5777_v3, %v5305_v54  ;;  %v6463_v8 = vld [vmem:[#allocation27_spill] sm:$0xff] }
 0x6d1   :  { %v1918_v42 = vadd.f32 %v1916_v19, %v1913_v16  ;;  %v1947_v45 = vmul.f32 %v5777_v3, %v6452_v22  ;;  %v1929_v56 = vadd.f32 %v1927_v6, %v1924_v20  ;;  %v1938_v5 = vrot.slane %v1936_v4, 1 }
 0x6d2   :  { %v1912_v33 = vadd.f32 %v1910_v41, %v1907_v10  ;;  %v1943_v9 = vrot.slane %v1941_v57, 2  ;;  %v1952_v12 = vmul.f32 %v5777_v3, %v5308_v55  ;;  %v1957_v29 = vmul.f32 %v5777_v3, %v5313_v58 }
 0x6d3   :  { %v1923_v35 = vadd.f32 %v1921_v50, %v1918_v42  ;;  %v1949_v23 = vrot.slane %v1947_v45, 1  ;;  %v1934_v16 = vadd.f32 %v1932_v25, %v1929_v56  ;;  %v1940_v32 = vadd.f32 %v1938_v5, %v1935_v1  ;;  %v6464_v45 = vld [vmem:[#allocation31_spill] sm:$0xff]  ;;  %v6465_v5 = vld [vmem:[#allocation32_spill] sm:$0xff] }
 0x6d4   :  { %v1958_v30 = vmul.f32 %v5777_v3, %v5270_v18  ;;  %v1963_v19 = vmul.f32 %v5777_v3, %v5316_v59  ;;  %v1954_v20 = vrot.slane %v1952_v12, 2  ;;  %v1968_v50 = vmul.f32 %v5777_v3, %v5319_v60 }
 0x6d5   :  { %v1951_v41 = vadd.f32 %v1949_v23, %v1946_v44  ;;  %v1969_v10 = vmul.f32 %v5777_v3, %v6463_v8  ;;  %v1945_v6 = vadd.f32 %v1943_v9, %v1940_v32  ;;  %v1974_v1 = vmul.f32 %v5771_v7, %v6453_v39 }
 0x6d6   :  { %v1960_v4 = vrot.slane %v1958_v30, 1  ;;  %v1965_v57 = vrot.slane %v1963_v19, 2  ;;  %v1979_v56 = vmul.f32 %v5777_v3, %v6464_v45  ;;  %v1980_v44 = vmul.f32 %v5777_v3, %v6465_v5 }
 0x6d7   :  { %v1956_v42 = vadd.f32 %v1954_v20, %v1951_v41  ;;  %v1971_v25 = vrot.slane %v1969_v10, 1  ;;  %v1976_v12 = vrot.slane %v1974_v1, 2  ;;  %v2038_v8 = vrot.slane %v1923_v35, 7 }
 0x6d8   :  { %v1962_v23 = vadd.f32 %v1960_v4, %v1957_v29  ;;  %v1982_v32 = vrot.slane %v1980_v44, 1  ;;  %v2041_v30 = vrot.slane %v1934_v16, 6  ;;  %v1987_v20 = vrot.slane %v1985_v2, 2 }
 0x6d9   :  { %v1973_v9 = vadd.f32 %v1971_v25, %v1968_v50  ;;  %v2044_v19 = vrot.slane %v1956_v42, 7  ;;  %v2064_v10 = vsel %vm615_vm7, %v1912_v33, %v2038_v8  ;;  %v1990_v45 = vmul.f32 %v5777_v3, %v5336_v11 }
 0x6da   :  { %v1967_v41 = vadd.f32 %v1965_v57, %v1962_v23  ;;  %v1984_v29 = vadd.f32 %v1982_v32, %v1979_v56  ;;  %v2065_v4 = vsel %vm617_vm8, %v2064_v10, %v2041_v30  ;;  %v1991_v35 = vmul.f32 %v5777_v3, %v5279_v43 }
 0x6db   :  { %v1978_v5 = vadd.f32 %v1976_v12, %v1973_v9  ;;  %v2066_v16 = vsel %vm380_vm0, %v2065_v4, %v1945_v6  ;;  %v2001_v1 = vmul.f32 %v5777_v3, %v5238_v24  ;;  %v2013_v2 = vmul.f32 %v5777_v3, %v5285_v46 }
 0x6dc   :  { %v2047_v50 = vrot.slane %v1967_v41, 6  ;;  %v1989_v33 = vadd.f32 %v1987_v20, %v1984_v29  ;;  %v2067_v8 = vsel %vm721_vm15, %v2066_v16, %v2044_v19  ;;  %v1993_v57 = vrot.slane %v1991_v35, 1 }
 0x6dd   :  { %v2024_v42 = vmul.f32 %v5777_v3, %v5276_v21  ;;  %v1998_v25 = vrot.slane %v5775_v27, 2  ;;  %v2003_v44 = vrot.slane %v2001_v1, 1  ;;  %v2015_v23 = vrot.slane %v2013_v2, 1 }
 0x6de   :  { %v2068_v56 = vsel %vm723_vm1, %v2067_v8, %v2047_v50  ;;  %v2050_v6 = vrot.slane %v1989_v33, 7  ;;  %v1995_v9 = vadd.f32 %v1993_v57, %v1990_v45  ;;  %v2006_v32 = vrot.slane %v2001_v1, 2 }
 0x6df   :  { %v2069_v12 = vsel %vm725_vm2, %v2068_v56, %v1978_v5  ;;  %v2005_v30 = vadd.f32 %v2003_v44, %v2001_v1  ;;  %v2017_v41 = vadd.f32 %v2015_v23, %v2013_v2  ;;  %v2018_v20 = vrot.slane %v2013_v2, 2 }
 0x6e0   :  { %v2026_v10 = vrot.slane %v2024_v42, 1  ;;  %v2021_v19 = vrot.slane %v5771_v7, 7  ;;  %v2031_v29 = vrot.slane %v5785_v36, 2  ;;  %v2070_v3 = vsel %vm727_vm3, %v2069_v12, %v2050_v6  ;;  %v3028_v12 = vld [vmem:[#allocation3 + $0x68] sm:$0xff] }
 0x6e1   :  { %v2000_v27 = vadd.f32 %v1998_v25, %v1995_v9  ;;  %v5859_v4 = vsel %vm2078_vm13, %v2070_v3, %v5750_v31  ;;  %v2008_v35 = vadd.f32 %v2006_v32, %v2005_v30  ;;  %v2020_v5 = vadd.f32 %v2018_v20, %v2017_v41  ;;  %v2966_v30 = vpop.permute.xlu0 %2965 }
 0x6e2   :  { %v2028_v45 = vadd.f32 %v2026_v10, %v2024_v42  ;;  %4338 = vmatprep.mubr.msk.f32.mxu1 %vm619_vm9, %v5859_v4  ;;  %v6466_v50 = vrot.slane %v5771_v7, 1  ;;  %v2034_v36 = vrot.slane %v5771_v7, 5  ;;  %v6467_v7 = vld [vmem:[#allocation21_spill] sm:$0xff]  ;;  %v4180_v6 = vadd.f32 -1.0, %v6469_v0 }
 0x6e3   :  { %v2023_v1 = vadd.f32 %v2021_v19, %v2020_v5  ;;  %v2053_v8 = vrot.slane %v2000_v27, 6  ;;  %2971 = vrot.lane.b32.xlu1 %v6467_v7, %s4947_s13  ;;  %v4179_v32 = vadd.f32 -1.0, %v5201_v61  ;;  %v2336_v27 = vsub.s32 5, %v5255_v34 }
 0x6e4   :  { %v2012_v16 = vadd.f32 %v6466_v50, %v2008_v35  ;;  %v2033_v2 = vadd.f32 %v2031_v29, %v2028_v45 }
 0x6e5   :  { %v2059_v25 = vrot.slane %v2023_v1, 1  ;;  %v2991_v20 = vsel %vm619_vm9, %v4179_v32, %v2966_v30  ;;  %v2969_v10 = vpop.permute.xlu0 %2968 }
 0x6e6   :  { %v2036_v33 = vadd.f32 %v2034_v36, %v2033_v2  ;;  %v2056_v57 = vrot.slane %v2012_v16, 7  ;;  %v2993_v29 = vsel %vm2992_vm14, %v2991_v20, %v2969_v10 }
 0x6e8   :  { %v2062_v56 = vrot.slane %v2036_v33, 3  ;;  %v2071_v31 = vsel %vm615_vm7, %v2053_v8, %v2056_v57  ;;  %v5901_v33 = vrot.slane %v5296_v51, %v2336_v27 }
 0x6e9   :  { %v2072_v44 = vsel %vm617_vm8, %v2071_v31, %v2059_v25  ;;  %v2982_v50 = vpop.permute.xlu0 %2981 }
 0x6ea   :  { %v2073_v42 = vsel %vm380_vm0, %v2072_v44, %v2062_v56  ;;  %vm2338_vm14 = vcmp.eq.s32.totalorder %v5901_v33, 1  ;;  %v3087_v33 = vld [vmem:[#allocation3 + $0x240] sm:$0xff] }
 0x6eb   :  { %v5872_v23 = vsel %vm2078_vm13, %v2073_v42, %v5763_v14  ;;  %v6468_v14 = vld [vmem:[#allocation22_spill] sm:$0xff]  ;;  %vm3004_vm13 = vcmask 523264  }
 0x6ec   :  { %4339 = vmatmul.mubr.msk.f32.vlgmr.msra.gmra.mrb[8].mxu1 %vm619_vm9, %v5872_v23  ;;  %2978 = vrot.lane.b32.xlu1 %v6468_v14, %s4949_s17 }
 0x6ed   :  { %4405 = vmatpush3.bf16.msra.mxu1 %v5113_v15  ;;  %v4181_v15 = vadd.f32 -1.0, %v5240_v26 }
 0x6ee   :  { %4354 = vmatprep.subr.mxu1 %v5656_v13 }
 0x6f0   :  { %2975 = vrot.lane.b32.xlu1 %v4180_v6, %s4929_s28  ;;  %s4953_s28 = smov 11  }
 0x6f1   :  { %4355 = vmatpush3.msra.mxu1 %v5656_v13  ;;  %v3016_v13 = vld [vmem:[#allocation3 + $0x8] sm:$0xff] }
 0x6f2   :  { %v4406_v9 = vpack.c.bf16 %v3028_v12, %v3016_v13 }
 0x6f4   :  { %2988 = vrot.lane.b32.xlu1 %v4181_v15, %s4952_s24  ;;  %4407 = vmatprep.subr.bf16.mxu0 %v4406_v9 }
 0x755   :  { %v2972_v41 = vpop.permute.xlu1 %2971 }
 0x756   :  { %v2995_v3 = vsel %vm2994_vm5, %v2993_v29, %v2972_v41  ;;  %vm3363_vm5 = vcmask 809984  }
 0x75e   :  { %v2979_v19 = vpop.permute.xlu1 %2978 }
 0x75f   :  { %v5903_v8 = vsel %vm3000_vm11, %v2979_v19, %v2982_v50  ;;  %vm2874_vm11 = vcmask 190466  }
 0x762   :  { %v2976_v35 = vpop.permute.xlu1 %2975 }
 0x763   :  { %v2997_v5 = vsel %vm2996_vm6, %v2995_v3, %v2976_v35 }
 0x764   :  { %v2999_v16 = vsel %vm2998_vm10, %v2997_v5, %v2979_v19  ;;  %vm2869_vm10 = vcmask 189441  }
 0x765   :  { %3008 = vrot.lane.b32.xlu0 %v2999_v16, %s4953_s28 }
 0x7bf   :  { %v5891_v45 = vpop.f32.mrb[8].mxu1 }
 0x7c0   :  { %v5895_v1 = vmul.f32 %v5891_v45, %v5240_v26  ;;  %v5898_v36 = vpop.f32.mrb[9].mxu1  ;;  %v5909_v25 = vmul.f32 %v5891_v45, %v5276_v21  ;;  %v2245_v57 = vmul.f32 %v5891_v45, %v6454_v28 }
 0x7c1   :  { %v2163_v56 = vmul.f32 %v5898_v36, %v5258_v37  ;;  %v2168_v31 = vmul.f32 %v5898_v36, %v5288_v47  ;;  %v2162_v44 = vmul.f32 %v5898_v36, %v5201_v61  ;;  %v2173_v42 = vmul.f32 %v5898_v36, %v5203_v62 }
 0x7c2   :  { %v2174_v7 = vmul.f32 %v5898_v36, %v5261_v38  ;;  %v2179_v14 = vmul.f32 %v5898_v36, %v5291_v48  ;;  %v2184_v15 = vmul.f32 %v5898_v36, %v5205_v63  ;;  %v2185_v13 = vmul.f32 %v5898_v36, %v5264_v17 }
 0x7c3   :  { %v2165_v0 = vrot.slane %v2163_v56, 1  ;;  %v2170_v6 = vrot.slane %v2168_v31, 2  ;;  %v2190_v32 = vmul.f32 %v5898_v36, %v5294_v49  ;;  %v2195_v30 = vmul.f32 %v5898_v36, %v5299_v52 }
 0x7c4   :  { %v2176_v12 = vrot.slane %v2174_v7, 1  ;;  %v2181_v9 = vrot.slane %v2179_v14, 2  ;;  %v2187_v20 = vrot.slane %v2185_v13, 1  ;;  %v2196_v10 = vmul.f32 %v5898_v36, %v5267_v40 }
 0x7c5   :  { %v2167_v41 = vadd.f32 %v2165_v0, %v2162_v44  ;;  %v2201_v19 = vmul.f32 %v5898_v36, %v5302_v53  ;;  %v2192_v3 = vrot.slane %v2190_v32, 2  ;;  %v2206_v27 = vmul.f32 %v5898_v36, %v5305_v54  ;;  %v6470_v32 = vld [vmem:[#allocation27_spill] sm:$0xff] }
 0x7c6   :  { %v2178_v29 = vadd.f32 %v2176_v12, %v2173_v42  ;;  %v2207_v35 = vmul.f32 %v5898_v36, %v6452_v22  ;;  %v2189_v50 = vadd.f32 %v2187_v20, %v2184_v15  ;;  %v2198_v16 = vrot.slane %v2196_v10, 1 }
 0x7c7   :  { %v2172_v5 = vadd.f32 %v2170_v6, %v2167_v41  ;;  %v2203_v56 = vrot.slane %v2201_v19, 2  ;;  %v2212_v7 = vmul.f32 %v5898_v36, %v5308_v55  ;;  %v2217_v14 = vmul.f32 %v5898_v36, %v5313_v58 }
 0x7c8   :  { %v2183_v31 = vadd.f32 %v2181_v9, %v2178_v29  ;;  %v2209_v44 = vrot.slane %v2207_v35, 1  ;;  %v2194_v42 = vadd.f32 %v2192_v3, %v2189_v50  ;;  %v2200_v0 = vadd.f32 %v2198_v16, %v2195_v30  ;;  %v6471_v35 = vld [vmem:[#allocation31_spill] sm:$0xff] }
 0x7c9   :  { %v2218_v13 = vmul.f32 %v5898_v36, %v5270_v18  ;;  %v2223_v12 = vmul.f32 %v5898_v36, %v5316_v59  ;;  %v2214_v15 = vrot.slane %v2212_v7, 2  ;;  %v2228_v9 = vmul.f32 %v5898_v36, %v5319_v60 }
 0x7ca   :  { %v2211_v6 = vadd.f32 %v2209_v44, %v2206_v27  ;;  %v2229_v41 = vmul.f32 %v5898_v36, %v6470_v32  ;;  %v2205_v20 = vadd.f32 %v2203_v56, %v2200_v0  ;;  %v2234_v30 = vmul.f32 %v5891_v45, %v6453_v39  ;;  %v6472_v27 = vld [vmem:[#allocation32_spill] sm:$0xff] }
 0x7cb   :  { %v2220_v10 = vrot.slane %v2218_v13, 1  ;;  %v2225_v19 = vrot.slane %v2223_v12, 2  ;;  %v2239_v50 = vmul.f32 %v5898_v36, %v6471_v35  ;;  %v2240_v16 = vmul.f32 %v5898_v36, %v6472_v27 }
 0x7cc   :  { %v2216_v29 = vadd.f32 %v2214_v15, %v2211_v6  ;;  %v2231_v3 = vrot.slane %v2229_v41, 1  ;;  %v2236_v7 = vrot.slane %v2234_v30, 2  ;;  %v2298_v56 = vrot.slane %v2183_v31, 7 }
 0x7cd   :  { %v2222_v44 = vadd.f32 %v2220_v10, %v2217_v14  ;;  %v2242_v13 = vrot.slane %v2240_v16, 1  ;;  %v2301_v12 = vrot.slane %v2194_v42, 6  ;;  %v2247_v15 = vrot.slane %v2245_v57, 2 }
 0x7ce   :  { %v2233_v0 = vadd.f32 %v2231_v3, %v2228_v9  ;;  %v2304_v2 = vrot.slane %v2216_v29, 7  ;;  %v2324_v41 = vsel %vm615_vm7, %v2172_v5, %v2298_v56  ;;  %v2250_v27 = vmul.f32 %v5898_v36, %v5336_v11 }
 0x7cf   :  { %v2227_v6 = vadd.f32 %v2225_v19, %v2222_v44  ;;  %v2244_v10 = vadd.f32 %v2242_v13, %v2239_v50  ;;  %v2325_v30 = vsel %vm617_vm8, %v2324_v41, %v2301_v12  ;;  %v2251_v31 = vmul.f32 %v5898_v36, %v5279_v43 }
 0x7d0   :  { %v2238_v14 = vadd.f32 %v2236_v7, %v2233_v0  ;;  %v2326_v42 = vsel %vm380_vm0, %v2325_v30, %v2205_v20  ;;  %v2261_v29 = vmul.f32 %v5898_v36, %v5238_v24  ;;  %v2273_v57 = vmul.f32 %v5898_v36, %v5285_v46  ;;  %v2985_v20 = vpop.permute.xlu0 %2984  ;;  %v2989_v30 = vpop.permute.xlu1 %2988 }
 0x7d1   :  { %v2307_v9 = vrot.slane %v2227_v6, 6  ;;  %v2249_v5 = vadd.f32 %v2247_v15, %v2244_v10  ;;  %v2327_v19 = vsel %vm721_vm15, %v2326_v42, %v2304_v2  ;;  %v2253_v3 = vrot.slane %v2251_v31, 1 }
 0x7d2   :  { %v2284_v50 = vmul.f32 %v5898_v36, %v5276_v21  ;;  %v2258_v16 = vrot.slane %v5895_v1, 2  ;;  %v2263_v7 = vrot.slane %v2261_v29, 1  ;;  %v2275_v56 = vrot.slane %v2273_v57, 1 }
 0x7d3   :  { %v2328_v44 = vsel %vm723_vm1, %v2327_v19, %v2307_v9  ;;  %v2310_v0 = vrot.slane %v2249_v5, 7  ;;  %v2255_v12 = vadd.f32 %v2253_v3, %v2250_v27  ;;  %v2266_v6 = vrot.slane %v2261_v29, 2 }
 0x7d4   :  { %v2329_v13 = vsel %vm725_vm2, %v2328_v44, %v2238_v14  ;;  %v2265_v41 = vadd.f32 %v2263_v7, %v2261_v29  ;;  %v2277_v15 = vadd.f32 %v2275_v56, %v2273_v57  ;;  %v2278_v10 = vrot.slane %v2273_v57, 2  ;;  %v3015_v56 = vld [vmem:[#allocation3] sm:$0xff] }
 0x7d5   :  { %v2286_v2 = vrot.slane %v2284_v50, 1  ;;  %v2291_v31 = vrot.slane %v5909_v25, 2  ;;  %v2330_v36 = vsel %vm727_vm3, %v2329_v13, %v2310_v0  ;;  %v2260_v1 = vadd.f32 %v2258_v16, %v2255_v12  ;;  %v3040_v0 = vld [vmem:[#allocation3 + $0xc8] sm:$0xff] }
 0x7d6   :  { %v3003_v9 = vsel %vm3002_vm12, %v5903_v8, %v2985_v20  ;;  %v5984_v42 = vsel %vm2338_vm14, %v2330_v36, %v5859_v4  ;;  %v2268_v27 = vadd.f32 %v2266_v6, %v2265_v41  ;;  %v2280_v14 = vadd.f32 %v2278_v10, %v2277_v15  ;;  %v3027_v20 = vld [vmem:[#allocation3 + $0x60] sm:$0xff]  ;;  %v3052_v13 = vld [vmem:[#allocation3 + $0x128] sm:$0xff] }
 0x7d7   :  { %v2288_v29 = vadd.f32 %v2286_v2, %v2284_v50  ;;  %4347 = vmatprep.mubr.msk.f32.mxu0 %vm619_vm9, %v5984_v42  ;;  %v3005_v57 = vsel %vm3004_vm13, %v3003_v9, %v2989_v30  ;;  %v6473_v25 = vrot.slane %v5891_v45, 1  ;;  %v6474_v19 = vrot.slane %v5891_v45, 7  ;;  %v3051_v30 = vld [vmem:[#allocation3 + $0x120] sm:$0xff]  ;;  %v3064_v36 = vld [vmem:[#allocation3 + $0x188] sm:$0xff] }
 0x7d8   :  { %v2294_v16 = vrot.slane %v5891_v45, 5  ;;  %3010 = vrot.lane.b32.xlu1 %v3005_v57, %s4953_s28  ;;  %v2313_v44 = vrot.slane %v2260_v1, 6  ;;  %v4408_v15 = vpack.c.bf16 %v3027_v20, %v3015_v56  ;;  %v4410_v2 = vpack.c.bf16 %v3052_v13, %v3040_v0  ;;  %v3039_v45 = vld [vmem:[#allocation3 + $0xc0] sm:$0xff]  ;;  %v3076_v1 = vld [vmem:[#allocation3 + $0x1e8] sm:$0xff] }
 0x7d9   :  { %v2272_v5 = vadd.f32 %v6473_v25, %v2268_v27  ;;  %v2283_v3 = vadd.f32 %v6474_v19, %v2280_v14  ;;  %v2293_v8 = vadd.f32 %v2291_v31, %v2288_v29  ;;  %v4412_v9 = vpack.c.bf16 %v3051_v30, %v3039_v45  ;;  %v3063_v14 = vld [vmem:[#allocation3 + $0x180] sm:$0xff]  ;;  %v3088_v57 = vld [vmem:[#allocation3 + $0x248] sm:$0xff] }
 0x7da   :  { %v4414_v27 = vpack.c.bf16 %v3076_v1, %v3064_v36  ;;  %v3075_v29 = vld [vmem:[#allocation3 + $0x1e0] sm:$0xff]  ;;  %v3100_v25 = vld [vmem:[#allocation3 + $0x2a8] sm:$0xff]  ;;  %vm2879_vm12 = vcmask 191491  }
 0x7db   :  { %v2296_v4 = vadd.f32 %v2294_v16, %v2293_v8  ;;  %v2316_v7 = vrot.slane %v2272_v5, 7  ;;  %v2319_v50 = vrot.slane %v2283_v3, 1  ;;  %v4416_v5 = vpack.c.bf16 %v3075_v29, %v3063_v14  ;;  %v3112_v3 = vld [vmem:[#allocation3 + $0x308] sm:$0xff]  ;;  %v3135_v13 = vld [vmem:[#allocation3 + $0x3c0] sm:$0xff] }
 0x7dc   :  { %v4418_v19 = vpack.c.bf16 %v3100_v25, %v3088_v57  ;;  %v3124_v8 = vld [vmem:[#allocation3 + $0x368] sm:$0xff]  ;;  %v3171_v45 = vld [vmem:[#allocation3 + $0x4e0] sm:$0xff] }
 0x7dd   :  { %v2322_v12 = vrot.slane %v2296_v4, 3  ;;  %v2331_v6 = vsel %vm615_vm7, %v2313_v44, %v2316_v7  ;;  %v4422_v4 = vpack.c.bf16 %v3124_v8, %v3112_v3  ;;  %v3111_v44 = vld [vmem:[#allocation3 + $0x300] sm:$0xff]  ;;  %v3148_v56 = vld [vmem:[#allocation3 + $0x428] sm:$0xff] }
 0x7de   :  { %v2332_v41 = vsel %vm617_vm8, %v2331_v6, %v2319_v50  ;;  %v3123_v7 = vld [vmem:[#allocation3 + $0x360] sm:$0xff]  ;;  %v3136_v50 = vld [vmem:[#allocation3 + $0x3c8] sm:$0xff] }
 0x7df   :  { %v2333_v10 = vsel %vm380_vm0, %v2332_v41, %v2322_v12  ;;  %v4424_v20 = vpack.c.bf16 %v3123_v7, %v3111_v44  ;;  %v4426_v0 = vpack.c.bf16 %v3148_v56, %v3136_v50  ;;  %v3147_v12 = vld [vmem:[#allocation3 + $0x420] sm:$0xff]  ;;  %v3160_v6 = vld [vmem:[#allocation3 + $0x488] sm:$0xff] }
 0x7e0   :  { %v6001_v31 = vsel %vm2338_vm14, %v2333_v10, %v5872_v23  ;;  %v3099_v23 = vld [vmem:[#allocation3 + $0x2a0] sm:$0xff]  ;;  %v3172_v41 = vld [vmem:[#allocation3 + $0x4e8] sm:$0xff] }
 0x7e1   :  { %4348 = vmatmul.mubr.msk.f32.vlgmr.msra.gmra.mrb[10].mxu0 %vm619_vm9, %v6001_v31  ;;  %v4420_v16 = vpack.c.bf16 %v3099_v23, %v3087_v33  ;;  %v4430_v10 = vpack.c.bf16 %v3172_v41, %v3160_v6  ;;  %v3184_v30 = vld [vmem:[#allocation3 + $0x548] sm:$0xff]  ;;  %v3195_v14 = vld [vmem:[#allocation3 + $0x5a0] sm:$0xff] }
 0x7e2   :  { %4409 = vmatpush1.bf16.msra.mxu0 %v4408_v15  ;;  %v4428_v15 = vpack.c.bf16 %v3147_v12, %v3135_v13  ;;  %v3196_v36 = vld [vmem:[#allocation3 + $0x5a8] sm:$0xff]  ;;  %v3219_v33 = vld [vmem:[#allocation3 + $0x660] sm:$0xff] }
 0x7e3   :  { %4411 = vmatprep.subr.bf16.mxu0 %v4410_v2  ;;  %v3159_v2 = vld [vmem:[#allocation3 + $0x480] sm:$0xff]  ;;  %v3208_v29 = vld [vmem:[#allocation3 + $0x608] sm:$0xff] }
 0x7e4   :  { %v4432_v1 = vpack.c.bf16 %v3171_v45, %v3159_v2  ;;  %v3220_v57 = vld [vmem:[#allocation3 + $0x668] sm:$0xff]  ;;  %v3243_v44 = vld [vmem:[#allocation3 + $0x720] sm:$0xff] }
 0x7e5   :  { %v3232_v23 = vld [vmem:[#allocation3 + $0x6c8] sm:$0xff]  ;;  %v3267_v13 = vld [vmem:[#allocation3 + $0x7e0] sm:$0xff] }
 0x7e6   :  { %4413 = vmatpush1.bf16.msra.mxu0 %v4412_v9  ;;  %v4434_v9 = vpack.c.bf16 %v3196_v36, %v3184_v30  ;;  %v3244_v3 = vld [vmem:[#allocation3 + $0x728] sm:$0xff]  ;;  %v3291_v2 = vld [vmem:[#allocation3 + $0x8a0] sm:$0xff] }
 0x7e7   :  { %4415 = vmatprep.subr.bf16.mxu0 %v4414_v27  ;;  %v3183_v27 = vld [vmem:[#allocation3 + $0x540] sm:$0xff]  ;;  %v3256_v50 = vld [vmem:[#allocation3 + $0x788] sm:$0xff] }
 0x7e8   :  { %v4436_v25 = vpack.c.bf16 %v3195_v14, %v3183_v27  ;;  %v3268_v56 = vld [vmem:[#allocation3 + $0x7e8] sm:$0xff]  ;;  %v3315_v27 = vld [vmem:[#allocation3 + $0x960] sm:$0xff] }
 0x7e9   :  { %v3280_v12 = vld [vmem:[#allocation3 + $0x848] sm:$0xff] }
 0x7ea   :  { %4417 = vmatpush1.bf16.msra.mxu0 %v4416_v5  ;;  %v4438_v5 = vpack.c.bf16 %v3220_v57, %v3208_v29  ;;  %v3292_v6 = vld [vmem:[#allocation3 + $0x8a8] sm:$0xff] }
 0x7eb   :  { %4419 = vmatprep.subr.bf16.mxu0 %v4418_v19  ;;  %v3207_v19 = vld [vmem:[#allocation3 + $0x600] sm:$0xff]  ;;  %v3304_v45 = vld [vmem:[#allocation3 + $0x908] sm:$0xff] }
 0x7ec   :  { %v4440_v8 = vpack.c.bf16 %v3219_v33, %v3207_v19  ;;  %v3316_v30 = vld [vmem:[#allocation3 + $0x968] sm:$0xff]  ;;  %v3339_v19 = vld [vmem:[#allocation3 + $0xa20] sm:$0xff] }
 0x7ed   :  { %v3328_v14 = vld [vmem:[#allocation3 + $0x9c8] sm:$0xff] }
 0x7ee   :  { %4421 = vmatpush1.bf16.msra.mxu0 %v4420_v16  ;;  %v4442_v16 = vpack.c.bf16 %v3244_v3, %v3232_v23  ;;  %v3340_v29 = vld [vmem:[#allocation3 + $0xa28] sm:$0xff] }
 0x7ef   :  { %4423 = vmatprep.subr.bf16.mxu0 %v4422_v4  ;;  %v3231_v4 = vld [vmem:[#allocation3 + $0x6c0] sm:$0xff]  ;;  %v3352_v23 = vld [vmem:[#allocation3 + $0xa88] sm:$0x7] }
 0x7f0   :  { %v4444_v7 = vpack.c.bf16 %v3243_v44, %v3231_v4  ;;  %v3020_v3 = vld [vmem:[#allocation3 + $0x28] sm:$0xff]  ;;  %v3351_v4 = vld [vmem:[#allocation3 + $0xa80] sm:$0x7] }
 0x7f2   :  { %4425 = vmatpush1.bf16.msra.mxu0 %v4424_v20  ;;  %v3255_v20 = vld [vmem:[#allocation3 + $0x780] sm:$0xff] }
 0x7f3   :  { %4427 = vmatprep.subr.bf16.mxu0 %v4426_v0  ;;  %v4446_v0 = vpack.c.bf16 %v3268_v56, %v3256_v50  ;;  %v4448_v41 = vpack.c.bf16 %v3267_v13, %v3255_v20  ;;  %v3031_v50 = vld [vmem:[#allocation3 + $0x80] sm:$0xff] }
 0x7f4   :  { %v4794_v20 = vld [vmem:[%s6386_s1] sm:$0x1]  ;;  %s6164_s1 = sld [smem:[#allocation12]] }
 0x7f6   :  { %4429 = vmatpush1.bf16.msra.mxu0 %v4428_v15  ;;  %v4450_v15 = vpack.c.bf16 %v3292_v6, %v3280_v12  ;;  %v3018_v6 = vld [vmem:[#allocation3 + $0x18] sm:$0xff] }
 0x7f7   :  { %4431 = vmatprep.subr.bf16.mxu0 %v4430_v10  ;;  %v3279_v10 = vld [vmem:[#allocation3 + $0x840] sm:$0xff] }
 0x7f8   :  { %v4452_v36 = vpack.c.bf16 %v3291_v2, %v3279_v10  ;;  %v3044_v10 = vld [vmem:[#allocation3 + $0xe8] sm:$0xff] }
 0x7f9   :  { %v3056_v2 = vld [vmem:[#allocation3 + $0x148] sm:$0xff] }
 0x7fa   :  { %4433 = vmatpush1.bf16.msra.mxu0 %v4432_v1  ;;  %v4454_v1 = vpack.c.bf16 %v3316_v30, %v3304_v45  ;;  %v3043_v45 = vld [vmem:[#allocation3 + $0xe0] sm:$0xff]  ;;  %v4522_v30 = vpack.c.bf16 %v3056_v2, %v3044_v10  ;;  %v3164_v2 = vld [vmem:[#allocation3 + $0x4a8] sm:$0xff] }
 0x7fb   :  { %4435 = vmatprep.subr.bf16.mxu0 %v4434_v9  ;;  %v3303_v9 = vld [vmem:[#allocation3 + $0x900] sm:$0xff] }
 0x7fc   :  { %v4456_v57 = vpack.c.bf16 %v3315_v27, %v3303_v9  ;;  %v3068_v9 = vld [vmem:[#allocation3 + $0x1a8] sm:$0xff] }
 0x7fd   :  { %v3080_v27 = vld [vmem:[#allocation3 + $0x208] sm:$0xff] }
 0x7fe   :  { %4437 = vmatpush1.bf16.msra.mxu0 %v4436_v25  ;;  %v4458_v25 = vpack.c.bf16 %v3340_v29, %v3328_v14  ;;  %v3067_v14 = vld [vmem:[#allocation3 + $0x1a0] sm:$0xff]  ;;  %v4526_v29 = vpack.c.bf16 %v3080_v27, %v3068_v9  ;;  %v3188_v27 = vld [vmem:[#allocation3 + $0x568] sm:$0xff] }
 0x7ff   :  { %4439 = vmatprep.subr.bf16.mxu0 %v4438_v5  ;;  %v3327_v5 = vld [vmem:[#allocation3 + $0x9c0] sm:$0xff] }
 0x800   :  { %v4460_v33 = vpack.c.bf16 %v3339_v19, %v3327_v5  ;;  %v3092_v5 = vld [vmem:[#allocation3 + $0x268] sm:$0xff] }
 0x801   :  { %v3104_v19 = vld [vmem:[#allocation3 + $0x2c8] sm:$0xff] }
 0x802   :  { %4441 = vmatpush1.bf16.msra.mxu0 %v4440_v8  ;;  %v3032_v8 = vld [vmem:[#allocation3 + $0x88] sm:$0xff] }
 0x803   :  { %4443 = vmatprep.subr.bf16.mxu0 %v4442_v16  ;;  %v3009_v16 = vpop.permute.xlu0 %3008  ;;  %v4518_v44 = vpack.c.bf16 %v3032_v8, %v3020_v3  ;;  %v3103_v3 = vld [vmem:[#allocation3 + $0x2c0] sm:$0xff] }
 0x806   :  { %4445 = vmatpush1.bf16.msra.mxu0 %v4444_v7  ;;  %v3019_v7 = vld [vmem:[#allocation3 + $0x20] sm:$0xff] }
 0x807   :  { %4447 = vmatprep.subr.bf16.mxu0 %v4446_v0  ;;  %v6010_v0 = vsel %vm376_vm4, %v4794_v20, %v3009_v16  ;;  %v4520_v13 = vpack.c.bf16 %v3031_v50, %v3019_v7  ;;  %v3127_v50 = vld [vmem:[#allocation3 + $0x380] sm:$0xff]  ;;  %v3140_v20 = vld [vmem:[#allocation3 + $0x3e8] sm:$0xff] }
 0x80a   :  { %4449 = vmatpush1.bf16.msra.mxu0 %v4448_v41  ;;  %v3030_v41 = vld [vmem:[#allocation3 + $0x78] sm:$0xff] }
 0x80b   :  { %4451 = vmatprep.subr.bf16.mxu0 %v4450_v15  ;;  %v4462_v15 = vpack.c.bf16 %v3030_v41, %v3018_v6  ;;  %v3139_v6 = vld [vmem:[#allocation3 + $0x3e0] sm:$0xff] }
 0x80d   :  { %4463 = vmatprep.subr.bf16.mxu1 %v4462_v15  ;;  %v3151_v15 = vld [vmem:[#allocation3 + $0x440] sm:$0xff] }
 0x80e   :  { %4453 = vmatpush1.bf16.msra.mxu0 %v4452_v36  ;;  %v3055_v36 = vld [vmem:[#allocation3 + $0x140] sm:$0xff]  ;;  %v4540_v10 = vpack.c.bf16 %v3151_v15, %v3139_v6  ;;  %v3272_v6 = vld [vmem:[#allocation3 + $0x808] sm:$0xff] }
 0x80f   :  { %4455 = vmatprep.subr.bf16.mxu0 %v4454_v1  ;;  %v4524_v1 = vpack.c.bf16 %v3055_v36, %v3043_v45  ;;  %v3176_v45 = vld [vmem:[#allocation3 + $0x508] sm:$0xff] }
 0x810   :  { %v4542_v36 = vpack.c.bf16 %v3176_v45, %v3164_v2  ;;  %v3284_v45 = vld [vmem:[#allocation3 + $0x868] sm:$0xff] }
 0x812   :  { %4457 = vmatpush1.bf16.msra.mxu0 %v4456_v57  ;;  %v3079_v57 = vld [vmem:[#allocation3 + $0x200] sm:$0xff] }
 0x813   :  { %4459 = vmatprep.subr.bf16.mxu0 %v4458_v25  ;;  %v4528_v25 = vpack.c.bf16 %v3079_v57, %v3067_v14  ;;  %v3200_v14 = vld [vmem:[#allocation3 + $0x5c8] sm:$0xff] }
 0x814   :  { %v4546_v57 = vpack.c.bf16 %v3200_v14, %v3188_v27  ;;  %v3308_v14 = vld [vmem:[#allocation3 + $0x928] sm:$0xff] }
 0x816   :  { %4461 = vmatpush1.bf16.msra.mxu0 %v4460_v33  ;;  %v3091_v33 = vld [vmem:[#allocation3 + $0x260] sm:$0xff] }
 0x817   :  { %4182 = vmatprep.subr.msk.mxu0 %vm380_vm0, %v3352_v23  ;;  %v4530_v23 = vpack.c.bf16 %v3104_v19, %v3092_v5  ;;  %v4532_v8 = vpack.c.bf16 %v3103_v3, %v3091_v33  ;;  %v3212_v19 = vld [vmem:[#allocation3 + $0x628] sm:$0xff] }
 0x818   :  { %v3224_v33 = vld [vmem:[#allocation3 + $0x688] sm:$0xff] }
 0x819   :  { %v4550_v3 = vpack.c.bf16 %v3224_v33, %v3212_v19  ;;  %v3332_v33 = vld [vmem:[#allocation3 + $0x9e8] sm:$0xff] }
 0x81a   :  { %4183 = vmatpush1.msk.msra.mxu0 %vm380_vm0, %v3351_v4  ;;  %v3128_v4 = vld [vmem:[#allocation3 + $0x388] sm:$0xff] }
 0x81b   :  { %4519 = vmatprep.subr.bf16.mxu0 %v4518_v44  ;;  %v3115_v44 = vld [vmem:[#allocation3 + $0x320] sm:$0xff] }
 0x84a   :  { %v3011_v56 = vpop.permute.xlu1 %3010 }
 0x84b   :  { %v6014_v12 = vsel %vm376_vm4, %v3009_v16, %v3011_v56  ;;  %v3116_v16 = vld [vmem:[#allocation3 + $0x328] sm:$0xff]  ;;  %v4536_v56 = vpack.c.bf16 %v3127_v50, %v3115_v44 }
 0x84c   :  { %4184 = vmatprep.mubr.msk.f32.mxu0 %vm3363_vm5, %v6014_v12  ;;  %v4534_v7 = vpack.c.bf16 %v3128_v4, %v3116_v16  ;;  %v3236_v4 = vld [vmem:[#allocation3 + $0x6e8] sm:$0xff] }
 0x84d   :  { %3467 = vmatmul.mubr.f32.vlgmr.msra.gmra.mrb[12].mxu0 %v6010_v0  ;;  %v3248_v44 = vld [vmem:[#allocation3 + $0x748] sm:$0xff] }
 0x84e   :  { %4521 = vmatpush1.bf16.msra.mxu0 %v4520_v13  ;;  %4190 = vmatprep.mubr.msk.f32.mxu0 %vm3363_vm5, %v6014_v12  ;;  %v3152_v13 = vld [vmem:[#allocation3 + $0x448] sm:$0xff]  ;;  %v4554_v50 = vpack.c.bf16 %v3248_v44, %v3236_v4 }
 0x84f   :  { %4523 = vmatprep.subr.bf16.mxu0 %v4522_v30  ;;  %v4538_v41 = vpack.c.bf16 %v3152_v13, %v3140_v20  ;;  %v3163_v30 = vld [vmem:[#allocation3 + $0x4a0] sm:$0xff]  ;;  %v3260_v13 = vld [vmem:[#allocation3 + $0x7a8] sm:$0xff] }
 0x850   :  { %v4558_v15 = vpack.c.bf16 %v3272_v6, %v3260_v13  ;;  %v3356_v44 = vld [vmem:[#allocation3 + $0xaa8] sm:$0x7]  ;;  %v3023_v13 = vld [vmem:[#allocation3 + $0x40] sm:$0xff] }
 0x851   :  { %v3035_v6 = vld [vmem:[#allocation3 + $0xa0] sm:$0xff] }
 0x852   :  { %4525 = vmatpush1.bf16.msra.mxu0 %v4524_v1  ;;  %v3175_v1 = vld [vmem:[#allocation3 + $0x500] sm:$0xff] }
 0x853   :  { %4527 = vmatprep.subr.bf16.mxu0 %v4526_v29  ;;  %v4544_v9 = vpack.c.bf16 %v3175_v1, %v3163_v30  ;;  %v3187_v29 = vld [vmem:[#allocation3 + $0x560] sm:$0xff]  ;;  %v3296_v30 = vld [vmem:[#allocation3 + $0x8c8] sm:$0xff] }
 0x854   :  { %v4562_v1 = vpack.c.bf16 %v3296_v30, %v3284_v45  ;;  %v3059_v30 = vld [vmem:[#allocation3 + $0x160] sm:$0xff] }
 0x856   :  { %4529 = vmatpush1.bf16.msra.mxu0 %v4528_v25  ;;  %v3199_v25 = vld [vmem:[#allocation3 + $0x5c0] sm:$0xff] }
 0x857   :  { %4531 = vmatprep.subr.bf16.mxu0 %v4530_v23  ;;  %v4548_v5 = vpack.c.bf16 %v3199_v25, %v3187_v29  ;;  %v3211_v23 = vld [vmem:[#allocation3 + $0x620] sm:$0xff]  ;;  %v3320_v29 = vld [vmem:[#allocation3 + $0x988] sm:$0xff] }
 0x858   :  { %v4566_v25 = vpack.c.bf16 %v3320_v29, %v3308_v14  ;;  %v3083_v29 = vld [vmem:[#allocation3 + $0x220] sm:$0xff] }
 0x85a   :  { %4533 = vmatpush1.bf16.msra.mxu0 %v4532_v8  ;;  %v3223_v8 = vld [vmem:[#allocation3 + $0x680] sm:$0xff] }
 0x85b   :  { %4535 = vmatprep.subr.bf16.mxu0 %v4534_v7  ;;  %v4552_v16 = vpack.c.bf16 %v3223_v8, %v3211_v23  ;;  %v3235_v7 = vld [vmem:[#allocation3 + $0x6e0] sm:$0xff]  ;;  %v3344_v23 = vld [vmem:[#allocation3 + $0xa48] sm:$0xff] }
 0x85c   :  { %v4570_v8 = vpack.c.bf16 %v3344_v23, %v3332_v33  ;;  %v3107_v23 = vld [vmem:[#allocation3 + $0x2e0] sm:$0xff] }
 0x85e   :  { %4537 = vmatpush1.bf16.msra.mxu0 %v4536_v56  ;;  %v3247_v56 = vld [vmem:[#allocation3 + $0x740] sm:$0xff] }
 0x85f   :  { %4539 = vmatprep.subr.bf16.mxu0 %v4538_v41  ;;  %v4556_v20 = vpack.c.bf16 %v3247_v56, %v3235_v7  ;;  %v3259_v41 = vld [vmem:[#allocation3 + $0x7a0] sm:$0xff]  ;;  %v3036_v56 = vld [vmem:[#allocation3 + $0xa8] sm:$0xff] }
 0x860   :  { %v3355_v7 = vld [vmem:[#allocation3 + $0xaa0] sm:$0x7] }
 0x862   :  { %4541 = vmatpush1.bf16.msra.mxu0 %v4540_v10  ;;  %v3271_v10 = vld [vmem:[#allocation3 + $0x800] sm:$0xff] }
 0x863   :  { %4543 = vmatprep.subr.bf16.mxu0 %v4542_v36  ;;  %v4560_v2 = vpack.c.bf16 %v3271_v10, %v3259_v41  ;;  %v3283_v36 = vld [vmem:[#allocation3 + $0x860] sm:$0xff]  ;;  %v4632_v41 = vpack.c.bf16 %v3035_v6, %v3023_v13  ;;  %v3060_v10 = vld [vmem:[#allocation3 + $0x168] sm:$0xff] }
 0x864   :  { %v3143_v13 = vld [vmem:[#allocation3 + $0x400] sm:$0xff] }
 0x866   :  { %4545 = vmatpush1.bf16.msra.mxu0 %v4544_v9  ;;  %v3295_v9 = vld [vmem:[#allocation3 + $0x8c0] sm:$0xff] }
 0x867   :  { %4547 = vmatprep.subr.bf16.mxu0 %v4546_v57  ;;  %v4564_v27 = vpack.c.bf16 %v3295_v9, %v3283_v36  ;;  %v3307_v57 = vld [vmem:[#allocation3 + $0x920] sm:$0xff]  ;;  %v3084_v9 = vld [vmem:[#allocation3 + $0x228] sm:$0xff] }
 0x86a   :  { %4549 = vmatpush1.bf16.msra.mxu0 %v4548_v5  ;;  %v3319_v5 = vld [vmem:[#allocation3 + $0x980] sm:$0xff] }
 0x86b   :  { %4551 = vmatprep.subr.bf16.mxu0 %v4550_v3  ;;  %v4568_v19 = vpack.c.bf16 %v3319_v5, %v3307_v57  ;;  %v3331_v3 = vld [vmem:[#allocation3 + $0x9e0] sm:$0xff]  ;;  %v3108_v5 = vld [vmem:[#allocation3 + $0x2e8] sm:$0xff] }
 0x86e   :  { %4553 = vmatpush1.bf16.msra.mxu0 %v4552_v16  ;;  %v3343_v16 = vld [vmem:[#allocation3 + $0xa40] sm:$0xff] }
 0x86f   :  { %4555 = vmatprep.subr.bf16.mxu0 %v4554_v50  ;;  %v4572_v4 = vpack.c.bf16 %v3343_v16, %v3331_v3  ;;  %v3024_v50 = vld [vmem:[#allocation3 + $0x48] sm:$0xff] }
 0x870   :  { %v3132_v16 = vld [vmem:[#allocation3 + $0x3a8] sm:$0xff] }
 0x872   :  { %4557 = vmatpush1.bf16.msra.mxu0 %v4556_v20  ;;  %v4630_v20 = vpack.c.bf16 %v3036_v56, %v3024_v50  ;;  %v3144_v56 = vld [vmem:[#allocation3 + $0x408] sm:$0xff] }
 0x873   :  { %4559 = vmatprep.subr.bf16.mxu0 %v4558_v15  ;;  %v3048_v15 = vld [vmem:[#allocation3 + $0x108] sm:$0xff] }
 0x874   :  { %v4634_v45 = vpack.c.bf16 %v3060_v10, %v3048_v15  ;;  %v3168_v10 = vld [vmem:[#allocation3 + $0x4c8] sm:$0xff] }
 0x876   :  { %4561 = vmatpush1.bf16.msra.mxu0 %v4560_v2  ;;  %v3047_v2 = vld [vmem:[#allocation3 + $0x100] sm:$0xff] }
 0x877   :  { %4563 = vmatprep.subr.bf16.mxu0 %v4562_v1  ;;  %v4636_v36 = vpack.c.bf16 %v3059_v30, %v3047_v2  ;;  %v3072_v1 = vld [vmem:[#allocation3 + $0x1c8] sm:$0xff] }
 0x878   :  { %v4638_v14 = vpack.c.bf16 %v3084_v9, %v3072_v1  ;;  %v3180_v2 = vld [vmem:[#allocation3 + $0x528] sm:$0xff] }
 0x879   :  { %v4654_v30 = vpack.c.bf16 %v3180_v2, %v3168_v10  ;;  %v3192_v9 = vld [vmem:[#allocation3 + $0x588] sm:$0xff] }
 0x87a   :  { %4565 = vmatpush1.bf16.msra.mxu0 %v4564_v27  ;;  %v3071_v27 = vld [vmem:[#allocation3 + $0x1c0] sm:$0xff] }
 0x87b   :  { %4567 = vmatprep.subr.bf16.mxu0 %v4566_v25  ;;  %v4640_v57 = vpack.c.bf16 %v3083_v29, %v3071_v27  ;;  %v3096_v25 = vld [vmem:[#allocation3 + $0x288] sm:$0xff] }
 0x87c   :  { %v4642_v33 = vpack.c.bf16 %v3108_v5, %v3096_v25  ;;  %v3204_v27 = vld [vmem:[#allocation3 + $0x5e8] sm:$0xff] }
 0x87d   :  { %v4658_v29 = vpack.c.bf16 %v3204_v27, %v3192_v9  ;;  %v3216_v5 = vld [vmem:[#allocation3 + $0x648] sm:$0xff] }
 0x87e   :  { %4569 = vmatpush1.bf16.msra.mxu0 %v4568_v19  ;;  %v3095_v19 = vld [vmem:[#allocation3 + $0x280] sm:$0xff] }
 0x87f   :  { %4571 = vmatprep.subr.bf16.mxu0 %v4570_v8  ;;  %v4644_v3 = vpack.c.bf16 %v3107_v23, %v3095_v19  ;;  %v3120_v8 = vld [vmem:[#allocation3 + $0x348] sm:$0xff] }
 0x880   :  { %v3228_v19 = vld [vmem:[#allocation3 + $0x6a8] sm:$0xff] }
 0x881   :  { %v4662_v23 = vpack.c.bf16 %v3228_v19, %v3216_v5 }
 0x882   :  { %4573 = vmatpush1.bf16.msra.mxu0 %v4572_v4  ;;  %v3119_v4 = vld [vmem:[#allocation3 + $0x340] sm:$0xff] }
 0x883   :  { %4188 = vmatprep.subr.msk.mxu0 %vm380_vm0, %v3356_v44  ;;  %v4646_v44 = vpack.c.bf16 %v3132_v16, %v3120_v8  ;;  %v2596_v16 = vsub.s32 6, %v5255_v34 }
 0x885   :  { %v6038_v2 = vrot.slane %v5296_v51, %v2596_v16 }
 0x886   :  { %4189 = vmatpush1.msk.msra.mxu0 %vm380_vm0, %v3355_v7  ;;  %v3131_v7 = vld [vmem:[#allocation3 + $0x3a0] sm:$0xff] }
 0x887   :  { %4631 = vmatprep.subr.bf16.mxu0 %v4630_v20  ;;  %3609 = vmatmul.mubr.f32.vlgmr.msra.gmra.mrb[14].mxu0 %v6010_v0  ;;  %v4648_v50 = vpack.c.bf16 %v3131_v7, %v3119_v4  ;;  %v3156_v20 = vld [vmem:[#allocation3 + $0x468] sm:$0xff]  ;;  %v3239_v7 = vld [vmem:[#allocation3 + $0x700] sm:$0xff]  ;;  %vm2598_vm4 = vcmp.eq.s32.totalorder %v6038_v2, 1 }
 0x888   :  { %4196 = vmatprep.mubr.msk.f32.mxu0 %vm3363_vm5, %v6014_v12  ;;  %4633 = vmatpush1.bf16.msra.mxu0 %v4632_v41  ;;  %v4650_v6 = vpack.c.bf16 %v3156_v20, %v3144_v56  ;;  %v3155_v41 = vld [vmem:[#allocation3 + $0x460] sm:$0xff]  ;;  %v3240_v4 = vld [vmem:[#allocation3 + $0x708] sm:$0xff] }
 0x889   :  { %4635 = vmatprep.subr.bf16.mxu0 %v4634_v45  ;;  %v4652_v15 = vpack.c.bf16 %v3155_v41, %v3143_v13  ;;  %v3167_v45 = vld [vmem:[#allocation3 + $0x4c0] sm:$0xff]  ;;  %v3360_v2 = vld [vmem:[#allocation3 + $0xac8] sm:$0x7] }
 0x88a   :  { %v3251_v56 = vld [vmem:[#allocation3 + $0x760] sm:$0xff] }
 0x88b   :  { %v4668_v20 = vpack.c.bf16 %v3251_v56, %v3239_v7 }
 0x88c   :  { %4637 = vmatpush1.bf16.msra.mxu0 %v4636_v36  ;;  %v3179_v36 = vld [vmem:[#allocation3 + $0x520] sm:$0xff] }
 0x88d   :  { %4639 = vmatprep.subr.bf16.mxu0 %v4638_v14  ;;  %v4656_v1 = vpack.c.bf16 %v3179_v36, %v3167_v45  ;;  %v3191_v14 = vld [vmem:[#allocation3 + $0x580] sm:$0xff] }
 0x890   :  { %4641 = vmatpush1.bf16.msra.mxu0 %v4640_v57  ;;  %v3203_v57 = vld [vmem:[#allocation3 + $0x5e0] sm:$0xff] }
 0x891   :  { %4643 = vmatprep.subr.bf16.mxu0 %v4642_v33  ;;  %v4660_v25 = vpack.c.bf16 %v3203_v57, %v3191_v14  ;;  %v3215_v33 = vld [vmem:[#allocation3 + $0x640] sm:$0xff] }
 0x894   :  { %4645 = vmatpush1.bf16.msra.mxu0 %v4644_v3  ;;  %v3227_v3 = vld [vmem:[#allocation3 + $0x6a0] sm:$0xff] }
 0x895   :  { %4647 = vmatprep.subr.bf16.mxu0 %v4646_v44  ;;  %v4664_v8 = vpack.c.bf16 %v3227_v3, %v3215_v33  ;;  %v3252_v44 = vld [vmem:[#allocation3 + $0x768] sm:$0xff] }
 0x898   :  { %4649 = vmatpush1.bf16.msra.mxu0 %v4648_v50  ;;  %v4666_v50 = vpack.c.bf16 %v3252_v44, %v3240_v4 }
 0x899   :  { %4651 = vmatprep.subr.bf16.mxu0 %v4650_v6 }
 0x89c   :  { %4653 = vmatpush1.bf16.msra.mxu0 %v4652_v15 }
 0x89d   :  { %4655 = vmatprep.subr.bf16.mxu0 %v4654_v30 }
 0x8a0   :  { %4657 = vmatpush1.bf16.msra.mxu0 %v4656_v1 }
 0x8a1   :  { %4659 = vmatprep.subr.bf16.mxu0 %v4658_v29 }
 0x8a4   :  { %4661 = vmatpush1.bf16.msra.mxu0 %v4660_v25 }
 0x8a5   :  { %4663 = vmatprep.subr.bf16.mxu0 %v4662_v23 }
 0x8a8   :  { %4665 = vmatpush1.bf16.msra.mxu0 %v4664_v8 }
 0x8a9   :  { %4667 = vmatprep.subr.bf16.mxu0 %v4666_v50 }
 0x8ac   :  { %4669 = vmatpush1.bf16.msra.mxu0 %v4668_v20 }
 0x8b4   :  { %v6027_v13 = vpop.f32.mrb[10].mxu0 }
 0x8b5   :  { %v6031_v6 = vmul.f32 %v6027_v13, %v5240_v26  ;;  %v6035_v10 = vpop.f32.mrb[11].mxu0  ;;  %v6042_v45 = vmul.f32 %v6027_v13, %v5276_v21 }
 0x8b6   :  { %v2422_v30 = vmul.f32 %v6035_v10, %v5201_v61  ;;  %v2423_v36 = vmul.f32 %v6035_v10, %v5258_v37  ;;  %v2428_v1 = vmul.f32 %v6035_v10, %v5288_v47  ;;  %v2433_v27 = vmul.f32 %v6035_v10, %v5203_v62 }
 0x8b7   :  { %v2434_v14 = vmul.f32 %v6035_v10, %v5261_v38  ;;  %v2439_v29 = vmul.f32 %v6035_v10, %v5291_v48  ;;  %v2444_v5 = vmul.f32 %v6035_v10, %v5205_v63  ;;  %v2445_v19 = vmul.f32 %v6035_v10, %v5264_v17 }
 0x8b8   :  { %v2425_v57 = vrot.slane %v2423_v36, 1  ;;  %v2430_v25 = vrot.slane %v2428_v1, 2  ;;  %v2450_v3 = vmul.f32 %v6035_v10, %v5294_v49  ;;  %v2455_v8 = vmul.f32 %v6035_v10, %v5299_v52 }
 0x8b9   :  { %v2436_v33 = vrot.slane %v2434_v14, 1  ;;  %v2441_v23 = vrot.slane %v2439_v29, 2  ;;  %v2447_v4 = vrot.slane %v2445_v19, 1  ;;  %v2456_v44 = vmul.f32 %v6035_v10, %v5267_v40 }
 0x8ba   :  { %v2427_v16 = vadd.f32 %v2425_v57, %v2422_v30  ;;  %v2461_v7 = vmul.f32 %v6035_v10, %v5302_v53  ;;  %v2452_v56 = vrot.slane %v2450_v3, 2  ;;  %v2466_v20 = vmul.f32 %v6035_v10, %v5305_v54 }
 0x8bb   :  { %v2438_v50 = vadd.f32 %v2436_v33, %v2433_v27  ;;  %v2467_v36 = vmul.f32 %v6035_v10, %v6452_v22  ;;  %v2449_v14 = vadd.f32 %v2447_v4, %v2444_v5  ;;  %v2458_v29 = vrot.slane %v2456_v44, 1 }
 0x8bc   :  { %v2432_v1 = vadd.f32 %v2430_v25, %v2427_v16  ;;  %v2463_v15 = vrot.slane %v2461_v7, 2  ;;  %v2472_v19 = vmul.f32 %v6035_v10, %v5308_v55  ;;  %v2477_v41 = vmul.f32 %v6035_v10, %v5313_v58 }
 0x8bd   :  { %v2443_v30 = vadd.f32 %v2441_v23, %v2438_v50  ;;  %v2469_v57 = vrot.slane %v2467_v36, 1  ;;  %v2454_v27 = vadd.f32 %v2452_v56, %v2449_v14  ;;  %v2460_v33 = vadd.f32 %v2458_v29, %v2455_v8  ;;  %v6475_v14 = vld [vmem:[#allocation32_spill] sm:$0xff] }
 0x8be   :  { %v2478_v3 = vmul.f32 %v6035_v10, %v5270_v18  ;;  %v2483_v9 = vmul.f32 %v6035_v10, %v5316_v59  ;;  %v2474_v5 = vrot.slane %v2472_v19, 2  ;;  %v2488_v23 = vmul.f32 %v6035_v10, %v5319_v60 }
 0x8bf   :  { %v2471_v25 = vadd.f32 %v2469_v57, %v2466_v20  ;;  %v2489_v16 = vmul.f32 %v6035_v10, %v6470_v32  ;;  %v2465_v4 = vadd.f32 %v2463_v15, %v2460_v33  ;;  %v2494_v8 = vmul.f32 %v6027_v13, %v6453_v39 }
 0x8c0   :  { %v2480_v44 = vrot.slane %v2478_v3, 1  ;;  %v2485_v7 = vrot.slane %v2483_v9, 2  ;;  %v2499_v36 = vmul.f32 %v6035_v10, %v6471_v35  ;;  %v2500_v20 = vmul.f32 %v6035_v10, %v6475_v14 }
 0x8c1   :  { %v2476_v50 = vadd.f32 %v2474_v5, %v2471_v25  ;;  %v2491_v56 = vrot.slane %v2489_v16, 1  ;;  %v2496_v57 = vrot.slane %v2494_v8, 2  ;;  %v2505_v19 = vmul.f32 %v6027_v13, %v6454_v28 }
 0x8c2   :  { %v2482_v29 = vadd.f32 %v2480_v44, %v2477_v41  ;;  %v2558_v32 = vrot.slane %v2443_v30, 7  ;;  %v2502_v33 = vrot.slane %v2500_v20, 1  ;;  %v2561_v9 = vrot.slane %v2454_v27, 6 }
 0x8c3   :  { %v2493_v15 = vadd.f32 %v2491_v56, %v2488_v23  ;;  %v2564_v3 = vrot.slane %v2476_v50, 7  ;;  %v2507_v5 = vrot.slane %v2505_v19, 2  ;;  %v2510_v35 = vmul.f32 %v6035_v10, %v5336_v11  ;;  %v3276_v19 = vld [vmem:[#allocation3 + $0x828] sm:$0xff]  ;;  %v3299_v11 = vld [vmem:[#allocation3 + $0x8e0] sm:$0xff] }
 0x8c4   :  { %v2487_v25 = vadd.f32 %v2485_v7, %v2482_v29  ;;  %v2584_v16 = vsel %vm615_vm7, %v2432_v1, %v2558_v32  ;;  %v2504_v41 = vadd.f32 %v2502_v33, %v2499_v36  ;;  %v2511_v30 = vmul.f32 %v6035_v10, %v5279_v43  ;;  %v3264_v36 = vld [vmem:[#allocation3 + $0x7c8] sm:$0xff]  ;;  %v3275_v33 = vld [vmem:[#allocation3 + $0x820] sm:$0xff] }
 0x8c5   :  { %v2498_v14 = vadd.f32 %v2496_v57, %v2493_v15  ;;  %v2585_v44 = vsel %vm617_vm8, %v2584_v16, %v2561_v9  ;;  %v2521_v8 = vmul.f32 %v6035_v10, %v5238_v24  ;;  %v2533_v7 = vmul.f32 %v6035_v10, %v5285_v46  ;;  %v3263_v15 = vld [vmem:[#allocation3 + $0x7c0] sm:$0xff] }
 0x8c6   :  { %v2567_v23 = vrot.slane %v2487_v25, 6  ;;  %v2586_v27 = vsel %vm380_vm0, %v2585_v44, %v2465_v4  ;;  %v2509_v32 = vadd.f32 %v2507_v5, %v2504_v41  ;;  %v2513_v50 = vrot.slane %v2511_v30, 1  ;;  %v3287_v43 = vld [vmem:[#allocation3 + $0x880] sm:$0xff] }
 0x8c7   :  { %v2587_v1 = vsel %vm721_vm15, %v2586_v27, %v2564_v3  ;;  %v2544_v56 = vmul.f32 %v6035_v10, %v5276_v21  ;;  %v2551_v20 = vrot.slane %v6042_v45, 2  ;;  %v2523_v57 = vrot.slane %v2521_v8, 1  ;;  %v3288_v10 = vld [vmem:[#allocation3 + $0x888] sm:$0xff] }
 0x8c8   :  { %v2588_v29 = vsel %vm723_vm1, %v2587_v1, %v2567_v23  ;;  %v2535_v4 = vrot.slane %v2533_v7, 1  ;;  %v2570_v9 = vrot.slane %v2509_v32, 7  ;;  %v2515_v5 = vadd.f32 %v2513_v50, %v2510_v35  ;;  %v3300_v27 = vld [vmem:[#allocation3 + $0x8e8] sm:$0xff] }
 0x8c9   :  { %v2589_v25 = vsel %vm725_vm2, %v2588_v29, %v2498_v14  ;;  %v2526_v16 = vrot.slane %v2521_v8, 2  ;;  %v2525_v3 = vadd.f32 %v2523_v57, %v2521_v8  ;;  %v2538_v44 = vrot.slane %v2533_v7, 2  ;;  %v3312_v32 = vld [vmem:[#allocation3 + $0x948] sm:$0xff] }
 0x8ca   :  { %v2537_v41 = vadd.f32 %v2535_v4, %v2533_v7  ;;  %v2546_v30 = vrot.slane %v2544_v56, 1  ;;  %v2590_v45 = vsel %vm727_vm3, %v2589_v25, %v2570_v9  ;;  %v6476_v23 = vrot.slane %v6031_v6, 2  ;;  %v3324_v50 = vld [vmem:[#allocation3 + $0x9a8] sm:$0xff]  ;;  %v3323_v9 = vld [vmem:[#allocation3 + $0x9a0] sm:$0xff] }
 0x8cb   :  { %v4670_v46 = vpack.c.bf16 %v3276_v19, %v3264_v36  ;;  %v4672_v24 = vpack.c.bf16 %v3275_v33, %v3263_v15  ;;  %v6117_v35 = vsel %vm2598_vm4, %v2590_v45, %v5984_v42  ;;  %v2528_v14 = vadd.f32 %v2526_v16, %v2525_v3  ;;  %v3311_v33 = vld [vmem:[#allocation3 + $0x940] sm:$0xff] }
 0x8cc   :  { %v2520_v1 = vadd.f32 %v6476_v23, %v2515_v5  ;;  %v2540_v8 = vadd.f32 %v2538_v44, %v2537_v41  ;;  %v2548_v7 = vadd.f32 %v2546_v30, %v2544_v56  ;;  %4356 = vmatprep.mubr.msk.f32.mxu1 %vm619_vm9, %v6117_v35  ;;  %v2554_v6 = vrot.slane %v6027_v13, 5  ;;  %v3017_v41 = vld [vmem:[#allocation3 + $0x10] sm:$0xff]  ;;  %v3042_v44 = vld [vmem:[#allocation3 + $0xd8] sm:$0xff]  ;;  %v3347_v23 = vld [vmem:[#allocation3 + $0xa60] sm:$0xff] }
 0x8cd   :  { %4671 = vmatprep.subr.bf16.mxu0 %v4670_v46  ;;  %v4674_v36 = vpack.c.bf16 %v3300_v27, %v3288_v10  ;;  %v6477_v29 = vrot.slane %v6027_v13, 1  ;;  %v6478_v4 = vrot.slane %v6027_v13, 7  ;;  %v4676_v15 = vpack.c.bf16 %v3299_v11, %v3287_v43  ;;  %v3029_v46 = vld [vmem:[#allocation3 + $0x70] sm:$0xff]  ;;  %v3054_v30 = vld [vmem:[#allocation3 + $0x138] sm:$0xff]  ;;  %v3336_v10 = vld [vmem:[#allocation3 + $0xa08] sm:$0xff] }
 0x8ce   :  { %v2553_v42 = vadd.f32 %v2551_v20, %v2548_v7  ;;  %4673 = vmatpush1.bf16.msra.mxu0 %v4672_v24  ;;  %v4678_v56 = vpack.c.bf16 %v3324_v50, %v3312_v32  ;;  %v2573_v5 = vrot.slane %v2520_v1, 6  ;;  %v3348_v27 = vld [vmem:[#allocation3 + $0xa68] sm:$0xff]  ;;  %v4680_v24 = vpack.c.bf16 %v3323_v9, %v3311_v33  ;;  %v3335_v20 = vld [vmem:[#allocation3 + $0xa00] sm:$0xff]  ;;  %v3053_v7 = vld [vmem:[#allocation3 + $0x130] sm:$0xff] }
 0x8cf   :  { %v2532_v57 = vadd.f32 %v6477_v29, %v2528_v14  ;;  %v2543_v19 = vadd.f32 %v6478_v4, %v2540_v8  ;;  %4675 = vmatprep.subr.bf16.mxu0 %v4674_v36  ;;  %v4464_v11 = vpack.c.bf16 %v3029_v46, %v3017_v41  ;;  %v4466_v14 = vpack.c.bf16 %v3054_v30, %v3042_v44  ;;  %v3041_v8 = vld [vmem:[#allocation3 + $0xd0] sm:$0xff]  ;;  %v3078_v36 = vld [vmem:[#allocation3 + $0x1f8] sm:$0xff]  ;;  %v3359_v33 = vld [vmem:[#allocation3 + $0xac0] sm:$0x7] }
 0x8d0   :  { %v2556_v25 = vadd.f32 %v2554_v6, %v2553_v42  ;;  %v4682_v32 = vpack.c.bf16 %v3348_v27, %v3336_v10  ;;  %v3066_v6 = vld [vmem:[#allocation3 + $0x198] sm:$0xff]  ;;  %v4684_v29 = vpack.c.bf16 %v3347_v23, %v3335_v20  ;;  %v3077_v42 = vld [vmem:[#allocation3 + $0x1f0] sm:$0xff]  ;;  %v6479_v10 = vmov 0.0  }
 0x8d1   :  { %v2576_v16 = vrot.slane %v2532_v57, 7  ;;  %v2579_v3 = vrot.slane %v2543_v19, 1  ;;  %v4468_v57 = vpack.c.bf16 %v3053_v7, %v3041_v8  ;;  %v4470_v4 = vpack.c.bf16 %v3078_v36, %v3066_v6  ;;  %v3065_v19 = vld [vmem:[#allocation3 + $0x190] sm:$0xff]  ;;  %v3138_v27 = vld [vmem:[#allocation3 + $0x3d8] sm:$0xff] }
 0x8d2   :  { %v2582_v45 = vrot.slane %v2556_v25, 3  ;;  %4677 = vmatpush1.bf16.msra.mxu0 %v4676_v15  ;;  %v3102_v15 = vld [vmem:[#allocation3 + $0x2b8] sm:$0xff]  ;;  %v3089_v25 = vld [vmem:[#allocation3 + $0x250] sm:$0xff] }
 0x8d3   :  { %v2591_v13 = vsel %vm615_vm7, %v2573_v5, %v2576_v16  ;;  %4679 = vmatprep.subr.bf16.mxu0 %v4678_v56  ;;  %v4472_v56 = vpack.c.bf16 %v3077_v42, %v3065_v19  ;;  %v3101_v5 = vld [vmem:[#allocation3 + $0x2b0] sm:$0xff]  ;;  %v3114_v16 = vld [vmem:[#allocation3 + $0x318] sm:$0xff] }
 0x8d4   :  { %v2592_v43 = vsel %vm617_vm8, %v2591_v13, %v2579_v3  ;;  %v3126_v3 = vld [vmem:[#allocation3 + $0x378] sm:$0xff]  ;;  %v4476_v41 = vpack.c.bf16 %v3101_v5, %v3089_v25  ;;  %v3113_v44 = vld [vmem:[#allocation3 + $0x310] sm:$0xff] }
 0x8d5   :  { %v2593_v1 = vsel %vm380_vm0, %v2592_v43, %v2582_v45  ;;  %v4478_v46 = vpack.c.bf16 %v3126_v3, %v3114_v16  ;;  %v3125_v30 = vld [vmem:[#allocation3 + $0x370] sm:$0xff]  ;;  %v3150_v45 = vld [vmem:[#allocation3 + $0x438] sm:$0xff] }
 0x8d6   :  { %v6132_v50 = vsel %vm2598_vm4, %v2593_v1, %v6001_v31  ;;  %4681 = vmatpush1.bf16.msra.mxu0 %v4680_v24  ;;  %v3090_v31 = vld [vmem:[#allocation3 + $0x258] sm:$0xff]  ;;  %v4480_v13 = vpack.c.bf16 %v3125_v30, %v3113_v44  ;;  %v4482_v24 = vpack.c.bf16 %v3150_v45, %v3138_v27  ;;  %v3137_v43 = vld [vmem:[#allocation3 + $0x3d0] sm:$0xff] }
 0x8d7   :  { %4357 = vmatmul.mubr.msk.f32.vlgmr.msra.gmra.mrb[10].mxu1 %vm619_vm9, %v6132_v50  ;;  %4683 = vmatprep.subr.bf16.mxu0 %v4682_v32  ;;  %v4474_v9 = vpack.c.bf16 %v3102_v15, %v3090_v31  ;;  %v3162_v20 = vld [vmem:[#allocation3 + $0x498] sm:$0xff]  ;;  %v3161_v8 = vld [vmem:[#allocation3 + $0x490] sm:$0xff] }
 0x8d8   :  { %4465 = vmatpush1.bf16.msra.mxu1 %v4464_v11  ;;  %4187 = vmatprep.mubr.msk.f32.mxu1 %vm3363_vm5, %v6014_v12  ;;  %v3149_v11 = vld [vmem:[#allocation3 + $0x430] sm:$0xff]  ;;  %v3174_v23 = vld [vmem:[#allocation3 + $0x4f8] sm:$0xff] }
 0x8d9   :  { %4467 = vmatprep.subr.bf16.mxu1 %v4466_v14  ;;  %v4484_v1 = vpack.c.bf16 %v3149_v11, %v3137_v43  ;;  %v4486_v14 = vpack.c.bf16 %v3174_v23, %v3162_v20  ;;  %v3173_v7 = vld [vmem:[#allocation3 + $0x4f0] sm:$0xff]  ;;  %v3186_v32 = vld [vmem:[#allocation3 + $0x558] sm:$0xff] }
 0x8da   :  { %4685 = vmatpush1.bf16.msra.mxu0 %v4684_v29  ;;  %v3198_v6 = vld [vmem:[#allocation3 + $0x5b8] sm:$0xff]  ;;  %v4488_v36 = vpack.c.bf16 %v3173_v7, %v3161_v8  ;;  %v3209_v15 = vld [vmem:[#allocation3 + $0x610] sm:$0xff] }
 0x8db   :  { %4194 = vmatprep.subr.msk.mxu0 %vm380_vm0, %v3360_v2  ;;  %v4490_v29 = vpack.c.bf16 %v3198_v6, %v3186_v32  ;;  %v3210_v19 = vld [vmem:[#allocation3 + $0x618] sm:$0xff]  ;;  %v3233_v16 = vld [vmem:[#allocation3 + $0x6d0] sm:$0xff] }
 0x8dc   :  { %4469 = vmatpush1.bf16.msra.mxu1 %v4468_v57  ;;  %v3185_v57 = vld [vmem:[#allocation3 + $0x550] sm:$0xff]  ;;  %v3222_v42 = vld [vmem:[#allocation3 + $0x678] sm:$0xff] }
 0x8dd   :  { %4471 = vmatprep.subr.bf16.mxu1 %v4470_v4  ;;  %v3197_v4 = vld [vmem:[#allocation3 + $0x5b0] sm:$0xff]  ;;  %v4494_v31 = vpack.c.bf16 %v3222_v42, %v3210_v19 }
 0x8de   :  { %4195 = vmatpush1.msk.msra.mxu0 %vm380_vm0, %v3359_v33  ;;  %v4492_v2 = vpack.c.bf16 %v3197_v4, %v3185_v57  ;;  %v3234_v33 = vld [vmem:[#allocation3 + $0x6d8] sm:$0xff]  ;;  %v3245_v3 = vld [vmem:[#allocation3 + $0x730] sm:$0xff] }
 0x8df   :  { %3751 = vmatmul.mubr.f32.vlgmr.msra.gmra.mrb[16].mxu0 %v6010_v0  ;;  %v4500_v44 = vpack.c.bf16 %v3245_v3, %v3233_v16  ;;  %v3257_v27 = vld [vmem:[#allocation3 + $0x790] sm:$0xff] }
 0x8e0   :  { %4473 = vmatpush1.bf16.msra.mxu1 %v4472_v56  ;;  %3910 = vmatprep.mubr.f32.mxu0 %v6479_v10  ;;  %v3221_v56 = vld [vmem:[#allocation3 + $0x670] sm:$0xff] }
 0x8e1   :  { %4475 = vmatprep.subr.bf16.mxu1 %v4474_v9  ;;  %v3246_v9 = vld [vmem:[#allocation3 + $0x738] sm:$0xff]  ;;  %v4496_v25 = vpack.c.bf16 %v3221_v56, %v3209_v15  ;;  %v3269_v45 = vld [vmem:[#allocation3 + $0x7f0] sm:$0xff] }
 0x8e2   :  { %v4498_v5 = vpack.c.bf16 %v3246_v9, %v3234_v33  ;;  %v4504_v43 = vpack.c.bf16 %v3269_v45, %v3257_v27  ;;  %v3281_v20 = vld [vmem:[#allocation3 + $0x850] sm:$0xff]  ;;  %v3022_v15 = vld [vmem:[#allocation3 + $0x38] sm:$0xff] }
 0x8e3   :  { %v3293_v23 = vld [vmem:[#allocation3 + $0x8b0] sm:$0xff]  ;;  %v3034_v56 = vld [vmem:[#allocation3 + $0x98] sm:$0xff] }
 0x8e4   :  { %4477 = vmatpush1.bf16.msra.mxu1 %v4476_v41  ;;  %v3258_v41 = vld [vmem:[#allocation3 + $0x798] sm:$0xff]  ;;  %v4508_v8 = vpack.c.bf16 %v3293_v23, %v3281_v20  ;;  %v3305_v32 = vld [vmem:[#allocation3 + $0x910] sm:$0xff]  ;;  %v4574_v3 = vpack.c.bf16 %v3034_v56, %v3022_v15 }
 0x8e5   :  { %4479 = vmatprep.subr.bf16.mxu1 %v4478_v46  ;;  %v3270_v46 = vld [vmem:[#allocation3 + $0x7f8] sm:$0xff]  ;;  %v3317_v6 = vld [vmem:[#allocation3 + $0x970] sm:$0xff] }
 0x8e6   :  { %v4502_v30 = vpack.c.bf16 %v3270_v46, %v3258_v41  ;;  %v4512_v57 = vpack.c.bf16 %v3317_v6, %v3305_v32  ;;  %v3329_v19 = vld [vmem:[#allocation3 + $0x9d0] sm:$0xff]  ;;  %v3070_v27 = vld [vmem:[#allocation3 + $0x1b8] sm:$0xff] }
 0x8e7   :  { %v3341_v42 = vld [vmem:[#allocation3 + $0xa30] sm:$0xff]  ;;  %v3082_v45 = vld [vmem:[#allocation3 + $0x218] sm:$0xff] }
 0x8e8   :  { %4481 = vmatpush1.bf16.msra.mxu1 %v4480_v13  ;;  %v3282_v13 = vld [vmem:[#allocation3 + $0x858] sm:$0xff]  ;;  %v3021_v33 = vld [vmem:[#allocation3 + $0x30] sm:$0xff] }
 0x8e9   :  { %4483 = vmatprep.subr.bf16.mxu1 %v4482_v24  ;;  %v3294_v24 = vld [vmem:[#allocation3 + $0x8b8] sm:$0xff]  ;;  %v3033_v9 = vld [vmem:[#allocation3 + $0x90] sm:$0xff] }
 0x8ea   :  { %v4506_v11 = vpack.c.bf16 %v3294_v24, %v3282_v13  ;;  %v3353_v16 = vld [vmem:[#allocation3 + $0xa90] sm:$0x7]  ;;  %v4576_v41 = vpack.c.bf16 %v3033_v9, %v3021_v33  ;;  %v4582_v24 = vpack.c.bf16 %v3082_v45, %v3070_v27  ;;  %v3094_v20 = vld [vmem:[#allocation3 + $0x278] sm:$0xff] }
 0x8eb   :  { %v3106_v23 = vld [vmem:[#allocation3 + $0x2d8] sm:$0xff]  ;;  %v3141_v15 = vld [vmem:[#allocation3 + $0x3f0] sm:$0xff] }
 0x8ec   :  { %4485 = vmatpush1.bf16.msra.mxu1 %v4484_v1  ;;  %v3306_v1 = vld [vmem:[#allocation3 + $0x918] sm:$0xff]  ;;  %v3153_v56 = vld [vmem:[#allocation3 + $0x450] sm:$0xff] }
 0x8ed   :  { %4487 = vmatprep.subr.bf16.mxu1 %v4486_v14  ;;  %v3318_v14 = vld [vmem:[#allocation3 + $0x978] sm:$0xff]  ;;  %v3189_v27 = vld [vmem:[#allocation3 + $0x570] sm:$0xff] }
 0x8ee   :  { %v4510_v7 = vpack.c.bf16 %v3318_v14, %v3306_v1  ;;  %v4586_v14 = vpack.c.bf16 %v3106_v23, %v3094_v20  ;;  %v3118_v32 = vld [vmem:[#allocation3 + $0x338] sm:$0xff]  ;;  %v3201_v45 = vld [vmem:[#allocation3 + $0x5d0] sm:$0xff] }
 0x8ef   :  { %v3130_v6 = vld [vmem:[#allocation3 + $0x398] sm:$0xff]  ;;  %v3213_v20 = vld [vmem:[#allocation3 + $0x630] sm:$0xff] }
 0x8f0   :  { %4489 = vmatpush1.bf16.msra.mxu1 %v4488_v36  ;;  %v3330_v36 = vld [vmem:[#allocation3 + $0x9d8] sm:$0xff]  ;;  %v3225_v23 = vld [vmem:[#allocation3 + $0x690] sm:$0xff] }
 0x8f1   :  { %4491 = vmatprep.subr.bf16.mxu1 %v4490_v29  ;;  %v3342_v29 = vld [vmem:[#allocation3 + $0xa38] sm:$0xff] }
 0x8f2   :  { %v4514_v4 = vpack.c.bf16 %v3342_v29, %v3330_v36  ;;  %v4590_v29 = vpack.c.bf16 %v3130_v6, %v3118_v32  ;;  %v3166_v33 = vld [vmem:[#allocation3 + $0x4b8] sm:$0xff] }
 0x8f3   :  { %v3178_v9 = vld [vmem:[#allocation3 + $0x518] sm:$0xff] }
 0x8f4   :  { %4493 = vmatpush1.bf16.msra.mxu1 %v4492_v2  ;;  %v4516_v2 = vpack.c.bf16 %v3341_v42, %v3329_v19  ;;  %v3142_v19 = vld [vmem:[#allocation3 + $0x3f8] sm:$0xff] }
 0x8f5   :  { %4495 = vmatprep.subr.bf16.mxu1 %v4494_v31  ;;  %v3354_v31 = vld [vmem:[#allocation3 + $0xa98] sm:$0x7] }
 0x8f6   :  { %v3154_v42 = vld [vmem:[#allocation3 + $0x458] sm:$0xff] }
 0x8f7   :  { %v3829_v32 = vld [vmem:[#allocation11 + $0x8] sm:$0xff] }
 0x8f8   :  { %4497 = vmatpush1.bf16.msra.mxu1 %v4496_v25  ;;  %v3046_v25 = vld [vmem:[#allocation3 + $0xf8] sm:$0xff] }
 0x8f9   :  { %4499 = vmatprep.subr.bf16.mxu1 %v4498_v5  ;;  %v3058_v5 = vld [vmem:[#allocation3 + $0x158] sm:$0xff] }
 0x8fa   :  { %v4578_v46 = vpack.c.bf16 %v3058_v5, %v3046_v25  ;;  %v4596_v25 = vpack.c.bf16 %v3153_v56, %v3141_v15  ;;  %v4598_v5 = vpack.c.bf16 %v3178_v9, %v3166_v33  ;;  %v3833_v6 = vld [vmem:[#allocation11 + $0x28] sm:$0xff]  ;;  %v3261_v9 = vld [vmem:[#allocation3 + $0x7b0] sm:$0xff] }
 0x8fb   :  { %v3837_v15 = vld [vmem:[#allocation11 + $0x48] sm:$0xff] }
 0x8fc   :  { %4501 = vmatpush1.bf16.msra.mxu1 %v4500_v44  ;;  %v3045_v44 = vld [vmem:[#allocation3 + $0xf0] sm:$0xff] }
 0x8fd   :  { %4503 = vmatprep.subr.bf16.mxu1 %v4502_v30  ;;  %v3057_v30 = vld [vmem:[#allocation3 + $0x150] sm:$0xff] }
 0x8fe   :  { %v4580_v13 = vpack.c.bf16 %v3057_v30, %v3045_v44 }
 0x900   :  { %4505 = vmatpush1.bf16.msra.mxu1 %v4504_v43  ;;  %v3069_v43 = vld [vmem:[#allocation3 + $0x1b0] sm:$0xff] }
 0x901   :  { %4507 = vmatprep.subr.bf16.mxu1 %v4506_v11  ;;  %v3081_v11 = vld [vmem:[#allocation3 + $0x210] sm:$0xff] }
 0x902   :  { %v4584_v1 = vpack.c.bf16 %v3081_v11, %v3069_v43  ;;  %v4604_v43 = vpack.c.bf16 %v3201_v45, %v3189_v27  ;;  %v3310_v27 = vld [vmem:[#allocation3 + $0x938] sm:$0xff] }
 0x903   :  { %v3322_v45 = vld [vmem:[#allocation3 + $0x998] sm:$0xff] }
 0x904   :  { %4509 = vmatpush1.bf16.msra.mxu1 %v4508_v8  ;;  %v3093_v8 = vld [vmem:[#allocation3 + $0x270] sm:$0xff] }
 0x905   :  { %4511 = vmatprep.subr.bf16.mxu1 %v4510_v7  ;;  %v3105_v7 = vld [vmem:[#allocation3 + $0x2d0] sm:$0xff] }
 0x906   :  { %v4588_v36 = vpack.c.bf16 %v3105_v7, %v3093_v8  ;;  %v4608_v8 = vpack.c.bf16 %v3225_v23, %v3213_v20  ;;  %v3237_v7 = vld [vmem:[#allocation3 + $0x6f0] sm:$0xff]  ;;  %v3334_v20 = vld [vmem:[#allocation3 + $0x9f8] sm:$0xff] }
 0x907   :  { %v3346_v23 = vld [vmem:[#allocation3 + $0xa58] sm:$0xff] }
 0x908   :  { %4513 = vmatpush1.bf16.msra.mxu1 %v4512_v57  ;;  %v3117_v57 = vld [vmem:[#allocation3 + $0x330] sm:$0xff] }
 0x909   :  { %4515 = vmatprep.subr.bf16.mxu1 %v4514_v4  ;;  %v3129_v4 = vld [vmem:[#allocation3 + $0x390] sm:$0xff] }
 0x90c   :  { %4517 = vmatpush1.bf16.msra.mxu1 %v4516_v2  ;;  %v4592_v2 = vpack.c.bf16 %v3129_v4, %v3117_v57  ;;  %v4742_v57 = vpack.c.bf16 %v3833_v6, %v3829_v32  ;;  %v3828_v4 = vld [vmem:[#allocation11] sm:$0xff]  ;;  %v3358_v6 = vld [vmem:[#allocation3 + $0xab8] sm:$0x7] }
 0x90d   :  { %4185 = vmatprep.subr.msk.mxu1 %vm380_vm0, %v3354_v31  ;;  %v4594_v31 = vpack.c.bf16 %v3154_v42, %v3142_v19  ;;  %v3832_v19 = vld [vmem:[#allocation11 + $0x20] sm:$0xff]  ;;  %v3262_v42 = vld [vmem:[#allocation3 + $0x7b8] sm:$0xff] }
 0x90e   :  { %4743 = vmatprep.subr.bf16.mxu0 %v4742_v57  ;;  %v3025_v57 = vld [vmem:[#allocation3 + $0x50] sm:$0xff] }
 0x910   :  { %4186 = vmatpush1.msk.msra.mxu1 %vm380_vm0, %v3353_v16  ;;  %v3165_v16 = vld [vmem:[#allocation3 + $0x4b0] sm:$0xff] }
 0x911   :  { %4575 = vmatprep.subr.bf16.mxu1 %v4574_v3  ;;  %3538 = vmatmul.mubr.f32.vlgmr.msra.gmra.mrb[12].mxu1 %v6010_v0  ;;  %v3177_v3 = vld [vmem:[#allocation3 + $0x510] sm:$0xff] }
 0x912   :  { %4577 = vmatpush1.bf16.msra.mxu1 %v4576_v41  ;;  %4193 = vmatprep.mubr.msk.f32.mxu1 %vm3363_vm5, %v6014_v12  ;;  %v3190_v41 = vld [vmem:[#allocation3 + $0x578] sm:$0xff]  ;;  %v4600_v44 = vpack.c.bf16 %v3177_v3, %v3165_v16 }
 0x913   :  { %4579 = vmatprep.subr.bf16.mxu1 %v4578_v46  ;;  %v3202_v46 = vld [vmem:[#allocation3 + $0x5d8] sm:$0xff] }
 0x914   :  { %v4602_v30 = vpack.c.bf16 %v3202_v46, %v3190_v41  ;;  %v3286_v16 = vld [vmem:[#allocation3 + $0x878] sm:$0xff] }
 0x915   :  { %v3298_v3 = vld [vmem:[#allocation3 + $0x8d8] sm:$0xff] }
 0x916   :  { %4581 = vmatpush1.bf16.msra.mxu1 %v4580_v13  ;;  %v3214_v13 = vld [vmem:[#allocation3 + $0x638] sm:$0xff]  ;;  %v4618_v46 = vpack.c.bf16 %v3298_v3, %v3286_v16 }
 0x917   :  { %4583 = vmatprep.subr.bf16.mxu1 %v4582_v24  ;;  %v3226_v24 = vld [vmem:[#allocation3 + $0x698] sm:$0xff] }
 0x918   :  { %v4606_v11 = vpack.c.bf16 %v3226_v24, %v3214_v13  ;;  %v4622_v24 = vpack.c.bf16 %v3322_v45, %v3310_v27 }
 0x91a   :  { %4585 = vmatpush1.bf16.msra.mxu1 %v4584_v1  ;;  %v3238_v1 = vld [vmem:[#allocation3 + $0x6f8] sm:$0xff] }
 0x91b   :  { %4587 = vmatprep.subr.bf16.mxu1 %v4586_v14  ;;  %v3250_v14 = vld [vmem:[#allocation3 + $0x758] sm:$0xff] }
 0x91e   :  { %4589 = vmatpush1.bf16.msra.mxu1 %v4588_v36  ;;  %v4610_v36 = vpack.c.bf16 %v3250_v14, %v3238_v1  ;;  %v4626_v14 = vpack.c.bf16 %v3346_v23, %v3334_v20 }
 0x91f   :  { %4591 = vmatprep.subr.bf16.mxu1 %v4590_v29  ;;  %v3249_v29 = vld [vmem:[#allocation3 + $0x750] sm:$0xff] }
 0x920   :  { %v4612_v56 = vpack.c.bf16 %v3249_v29, %v3237_v7  ;;  %v3345_v7 = vld [vmem:[#allocation3 + $0xa50] sm:$0xff]  ;;  %v3038_v29 = vld [vmem:[#allocation3 + $0xb8] sm:$0xff] }
 0x922   :  { %4593 = vmatpush1.bf16.msra.mxu1 %v4592_v2  ;;  %v3274_v2 = vld [vmem:[#allocation3 + $0x818] sm:$0xff] }
 0x923   :  { %4595 = vmatprep.subr.bf16.mxu1 %v4594_v31  ;;  %v4744_v31 = vpack.c.bf16 %v3832_v19, %v3828_v4  ;;  %v4614_v33 = vpack.c.bf16 %v3274_v2, %v3262_v42  ;;  %v3037_v4 = vld [vmem:[#allocation3 + $0xb0] sm:$0xff]  ;;  %v3050_v19 = vld [vmem:[#allocation3 + $0x118] sm:$0xff] }
 0x924   :  { %v3062_v42 = vld [vmem:[#allocation3 + $0x178] sm:$0xff]  ;;  %v3357_v2 = vld [vmem:[#allocation3 + $0xab0] sm:$0x7] }
 0x925   :  { %4745 = vmatpush1.bf16.msra.mxu0 %v4744_v31 }
 0x926   :  { %4597 = vmatpush1.bf16.msra.mxu1 %v4596_v25  ;;  %v3273_v25 = vld [vmem:[#allocation3 + $0x810] sm:$0xff]  ;;  %3850 = vmatprep.subr.mxu0 %v3837_v15  ;;  %v4688_v15 = vpack.c.bf16 %v3037_v4, %v3025_v57  ;;  %v3182_v57 = vld [vmem:[#allocation3 + $0x538] sm:$0xff] }
 0x927   :  { %4599 = vmatprep.subr.bf16.mxu1 %v4598_v5  ;;  %v3836_v5 = vld [vmem:[#allocation11 + $0x40] sm:$0xff]  ;;  %v4616_v41 = vpack.c.bf16 %v3273_v25, %v3261_v9  ;;  %v3074_v25 = vld [vmem:[#allocation3 + $0x1d8] sm:$0xff] }
 0x928   :  { %v3061_v9 = vld [vmem:[#allocation3 + $0x170] sm:$0xff] }
 0x929   :  { %3851 = vmatpush1.msra.mxu0 %v3836_v5  ;;  %v3086_v5 = vld [vmem:[#allocation3 + $0x238] sm:$0xff] }
 0x92a   :  { %4601 = vmatpush1.bf16.msra.mxu1 %v4600_v44  ;;  %v3285_v44 = vld [vmem:[#allocation3 + $0x870] sm:$0xff]  ;;  %v4694_v3 = vpack.c.bf16 %v3086_v5, %v3074_v25 }
 0x92b   :  { %4603 = vmatprep.subr.bf16.mxu1 %v4602_v30  ;;  %v3297_v30 = vld [vmem:[#allocation3 + $0x8d0] sm:$0xff] }
 0x92c   :  { %v4620_v13 = vpack.c.bf16 %v3297_v30, %v3285_v44  ;;  %v3098_v44 = vld [vmem:[#allocation3 + $0x298] sm:$0xff]  ;;  %v3193_v5 = vld [vmem:[#allocation3 + $0x590] sm:$0xff] }
 0x92d   :  { %v3110_v30 = vld [vmem:[#allocation3 + $0x2f8] sm:$0xff] }
 0x92e   :  { %4605 = vmatpush1.bf16.msra.mxu1 %v4604_v43  ;;  %v3309_v43 = vld [vmem:[#allocation3 + $0x930] sm:$0xff]  ;;  %v4698_v45 = vpack.c.bf16 %v3110_v30, %v3098_v44 }
 0x92f   :  { %4607 = vmatprep.subr.bf16.mxu1 %v4606_v11  ;;  %v3321_v11 = vld [vmem:[#allocation3 + $0x990] sm:$0xff] }
 0x930   :  { %v4624_v1 = vpack.c.bf16 %v3321_v11, %v3309_v43  ;;  %v3122_v43 = vld [vmem:[#allocation3 + $0x358] sm:$0xff] }
 0x931   :  { %v3134_v11 = vld [vmem:[#allocation3 + $0x3b8] sm:$0xff] }
 0x932   :  { %4609 = vmatpush1.bf16.msra.mxu1 %v4608_v8  ;;  %v3333_v8 = vld [vmem:[#allocation3 + $0x9f0] sm:$0xff]  ;;  %v4702_v23 = vpack.c.bf16 %v3134_v11, %v3122_v43  ;;  %v3254_v43 = vld [vmem:[#allocation3 + $0x778] sm:$0xff] }
 0x933   :  { %4611 = vmatprep.subr.bf16.mxu1 %v4610_v36  ;;  %v4628_v32 = vpack.c.bf16 %v3345_v7, %v3333_v8  ;;  %v3026_v36 = vld [vmem:[#allocation3 + $0x58] sm:$0xff] }
 0x934   :  { %v4686_v31 = vpack.c.bf16 %v3038_v29, %v3026_v36  ;;  %v3158_v8 = vld [vmem:[#allocation3 + $0x478] sm:$0xff]  ;;  %v3157_v36 = vld [vmem:[#allocation3 + $0x470] sm:$0xff] }
 0x935   :  { %v3170_v29 = vld [vmem:[#allocation3 + $0x4d8] sm:$0xff] }
 0x936   :  { %4613 = vmatpush1.bf16.msra.mxu1 %v4612_v56  ;;  %v4690_v56 = vpack.c.bf16 %v3062_v42, %v3050_v19  ;;  %v4710_v19 = vpack.c.bf16 %v3182_v57, %v3170_v29  ;;  %v3169_v42 = vld [vmem:[#allocation3 + $0x4d0] sm:$0xff]  ;;  %v3302_v29 = vld [vmem:[#allocation3 + $0x8f8] sm:$0xff] }
 0x937   :  { %4615 = vmatprep.subr.bf16.mxu1 %v4614_v33  ;;  %v3049_v33 = vld [vmem:[#allocation3 + $0x110] sm:$0xff] }
 0x938   :  { %v4692_v16 = vpack.c.bf16 %v3061_v9, %v3049_v33 }
 0x93a   :  { %4617 = vmatpush1.bf16.msra.mxu1 %v4616_v41  ;;  %v3073_v41 = vld [vmem:[#allocation3 + $0x1d0] sm:$0xff] }
 0x93b   :  { %4619 = vmatprep.subr.bf16.mxu1 %v4618_v46  ;;  %v3085_v46 = vld [vmem:[#allocation3 + $0x230] sm:$0xff] }
 0x93c   :  { %v4696_v27 = vpack.c.bf16 %v3085_v46, %v3073_v41  ;;  %v3230_v41 = vld [vmem:[#allocation3 + $0x6b8] sm:$0xff] }
 0x93e   :  { %4621 = vmatpush1.bf16.msra.mxu1 %v4620_v13  ;;  %v3097_v13 = vld [vmem:[#allocation3 + $0x290] sm:$0xff] }
 0x93f   :  { %4623 = vmatprep.subr.bf16.mxu1 %v4622_v24  ;;  %v3109_v24 = vld [vmem:[#allocation3 + $0x2f0] sm:$0xff] }
 0x940   :  { %v4700_v20 = vpack.c.bf16 %v3109_v24, %v3097_v13  ;;  %v3242_v24 = vld [vmem:[#allocation3 + $0x718] sm:$0xff] }
 0x942   :  { %4625 = vmatpush1.bf16.msra.mxu1 %v4624_v1  ;;  %v3133_v1 = vld [vmem:[#allocation3 + $0x3b0] sm:$0xff] }
 0x943   :  { %4627 = vmatprep.subr.bf16.mxu1 %v4626_v14  ;;  %v3146_v14 = vld [vmem:[#allocation3 + $0x418] sm:$0xff] }
 0x946   :  { %4629 = vmatpush1.bf16.msra.mxu1 %v4628_v32  ;;  %v4706_v32 = vpack.c.bf16 %v3158_v8, %v3146_v14  ;;  %v3278_v14 = vld [vmem:[#allocation3 + $0x838] sm:$0xff] }
 0x947   :  { %4191 = vmatprep.subr.msk.mxu1 %vm380_vm0, %v3358_v6  ;;  %v3145_v6 = vld [vmem:[#allocation3 + $0x410] sm:$0xff] }
 0x948   :  { %v4708_v4 = vpack.c.bf16 %v3157_v36, %v3145_v6  ;;  %v3277_v6 = vld [vmem:[#allocation3 + $0x830] sm:$0xff]  ;;  %v3290_v36 = vld [vmem:[#allocation3 + $0x898] sm:$0xff] }
 0x94a   :  { %4192 = vmatpush1.msk.msra.mxu1 %vm380_vm0, %v3357_v2  ;;  %v3181_v2 = vld [vmem:[#allocation3 + $0x530] sm:$0xff] }
 0x94b   :  { %3680 = vmatmul.mubr.f32.vlgmr.msra.gmra.mrb[14].mxu1 %v6010_v0  ;;  %4687 = vmatprep.subr.bf16.mxu1 %v4686_v31  ;;  %v3194_v31 = vld [vmem:[#allocation3 + $0x598] sm:$0xff]  ;;  %v4712_v33 = vpack.c.bf16 %v3181_v2, %v3169_v42  ;;  %v3301_v42 = vld [vmem:[#allocation3 + $0x8f0] sm:$0xff] }
 0x94c   :  { %4689 = vmatpush1.bf16.msra.mxu1 %v4688_v15  ;;  %4199 = vmatprep.mubr.msk.f32.mxu1 %vm3363_vm5, %v6014_v12  ;;  %v3121_v12 = vld [vmem:[#allocation3 + $0x350] sm:$0xff]  ;;  %v3206_v15 = vld [vmem:[#allocation3 + $0x5f8] sm:$0xff] }
 0x94d   :  { %4691 = vmatprep.subr.bf16.mxu1 %v4690_v56  ;;  %v4704_v7 = vpack.c.bf16 %v3133_v1, %v3121_v12  ;;  %v6152_v56 = vpop.f32.mrb[12].mxu0  ;;  %v4714_v25 = vpack.c.bf16 %v3206_v15, %v3194_v31  ;;  %v3253_v12 = vld [vmem:[#allocation3 + $0x770] sm:$0xff]  ;;  %v3266_v1 = vld [vmem:[#allocation3 + $0x7d8] sm:$0xff] }
 0x94e   :  { %v6154_v9 = vpop.f32.mrb[13].mxu0  ;;  %v3314_v2 = vld [vmem:[#allocation3 + $0x958] sm:$0xff] }
 0x94f   :  { %v3326_v31 = vld [vmem:[#allocation3 + $0x9b8] sm:$0xff] }
 0x950   :  { %4693 = vmatpush1.bf16.msra.mxu1 %v4692_v16  ;;  %v3205_v16 = vld [vmem:[#allocation3 + $0x5f0] sm:$0xff] }
 0x951   :  { %4695 = vmatprep.subr.bf16.mxu1 %v4694_v3  ;;  %v3218_v3 = vld [vmem:[#allocation3 + $0x658] sm:$0xff]  ;;  %v4716_v46 = vpack.c.bf16 %v3205_v16, %v3193_v5  ;;  %v3325_v5 = vld [vmem:[#allocation3 + $0x9b0] sm:$0xff] }
 0x952   :  { %v4718_v30 = vpack.c.bf16 %v3230_v41, %v3218_v3  ;;  %v3338_v16 = vld [vmem:[#allocation3 + $0xa18] sm:$0xff] }
 0x953   :  { %v3350_v3 = vld [vmem:[#allocation3 + $0xa78] sm:$0xff] }
 0x954   :  { %4697 = vmatpush1.bf16.msra.mxu1 %v4696_v27  ;;  %v3217_v27 = vld [vmem:[#allocation3 + $0x650] sm:$0xff] }
 0x955   :  { %4699 = vmatprep.subr.bf16.mxu1 %v4698_v45  ;;  %v3229_v45 = vld [vmem:[#allocation3 + $0x6b0] sm:$0xff] }
 0x956   :  { %v4720_v11 = vpack.c.bf16 %v3229_v45, %v3217_v27  ;;  %v3349_v27 = vld [vmem:[#allocation3 + $0xa70] sm:$0xff] }
 0x958   :  { %4701 = vmatpush1.bf16.msra.mxu1 %v4700_v20  ;;  %v4722_v20 = vpack.c.bf16 %v3254_v43, %v3242_v24  ;;  %v3362_v24 = vld [vmem:[#allocation3 + $0xad8] sm:$0x7]  ;;  %v3831_v43 = vld [vmem:[#allocation11 + $0x18] sm:$0xff] }
 0x959   :  { %4703 = vmatprep.subr.bf16.mxu1 %v4702_v23  ;;  %v3241_v23 = vld [vmem:[#allocation3 + $0x710] sm:$0xff] }
 0x95a   :  { %v6156_v44 = vpop.f32.mrb[14].mxu0  ;;  %v4724_v8 = vpack.c.bf16 %v3253_v12, %v3241_v23  ;;  %v3834_v23 = vld [vmem:[#allocation11 + $0x30] sm:$0xff]  ;;  %v3361_v12 = vld [vmem:[#allocation3 + $0xad0] sm:$0x7] }
 0x95b   :  { %v6158_v13 = vpop.f32.mrb[15].mxu0 }
 0x95c   :  { %4705 = vmatpush1.bf16.msra.mxu1 %v4704_v7  ;;  %v4726_v7 = vpack.c.bf16 %v3278_v14, %v3266_v1 }
 0x95d   :  { %4707 = vmatprep.subr.bf16.mxu1 %v4706_v32  ;;  %v3265_v32 = vld [vmem:[#allocation3 + $0x7d0] sm:$0xff] }
 0x95e   :  { %v4728_v57 = vpack.c.bf16 %v3277_v6, %v3265_v32  ;;  %v2856_v32 = vsub.s32 7, %v5255_v34  ;;  %v6480_v6 = vld [vmem:[#allocation17_spill] sm:$0xff] }
 0x960   :  { %4709 = vmatpush1.bf16.msra.mxu1 %v4708_v4  ;;  %v4730_v4 = vpack.c.bf16 %v3302_v29, %v3290_v36  ;;  %v2918_v36 = vrot.slane %v6480_v6, 2  ;;  %v6481_v29 = vld [vmem:[#allocation18_spill] sm:$0xff] }
 0x961   :  { %4711 = vmatprep.subr.bf16.mxu1 %v4710_v19  ;;  %v3289_v19 = vld [vmem:[#allocation3 + $0x890] sm:$0xff] }
 0x962   :  { %v4732_v15 = vpack.c.bf16 %v3301_v42, %v3289_v19  ;;  %v6482_v19 = vld [vmem:[#allocation19_spill] sm:$0xff] }
 0x963   :  { %v2907_v42 = vrot.slane %v6482_v19, 3 }
 0x964   :  { %4713 = vmatpush1.bf16.msra.mxu1 %v4712_v33  ;;  %v4734_v33 = vpack.c.bf16 %v3326_v31, %v3314_v2  ;;  %v6179_v31 = vrot.slane %v5296_v51, %v2856_v32  ;;  %v2865_v51 = vstv %s6164_s1 }
 0x965   :  { %4715 = vmatprep.subr.bf16.mxu1 %v4714_v25  ;;  %v3313_v25 = vld [vmem:[#allocation3 + $0x950] sm:$0xff] }
 0x966   :  { %v4736_v41 = vpack.c.bf16 %v3325_v5, %v3313_v25  ;;  %v6194_v25 = vstv %s6393_s8  ;;  %vm2858_vm6 = vcmp.eq.s32.totalorder %v6179_v31, 1 }
 0x968   :  { %4717 = vmatpush1.bf16.msra.mxu1 %v4716_v46  ;;  %v4738_v46 = vpack.c.bf16 %v3350_v3, %v3338_v16  ;;  %v2871_v16 = vstv %s6166_s14  ;;  %v2876_v3 = vstv %s6168_s19 }
 0x969   :  { %4719 = vmatprep.subr.bf16.mxu1 %v4718_v30  ;;  %v3337_v30 = vld [vmem:[#allocation3 + $0xa10] sm:$0xff] }
 0x96a   :  { %v4740_v45 = vpack.c.bf16 %v3349_v27, %v3337_v30 }
 0x96c   :  { %4721 = vmatpush1.bf16.msra.mxu1 %v4720_v11  ;;  %v3835_v11 = vld [vmem:[#allocation11 + $0x38] sm:$0xff] }
 0x96d   :  { %4723 = vmatprep.subr.bf16.mxu1 %v4722_v20  ;;  %v3830_v20 = vld [vmem:[#allocation11 + $0x10] sm:$0xff]  ;;  %v4746_v1 = vpack.c.bf16 %v3835_v11, %v3831_v43 }
 0x96e   :  { %v4748_v14 = vpack.c.bf16 %v3834_v23, %v3830_v20 }
 0x970   :  { %4725 = vmatpush1.bf16.msra.mxu1 %v4724_v8  ;;  %v3839_v8 = vld [vmem:[#allocation11 + $0x58] sm:$0xff] }
 0x971   :  { %4727 = vmatprep.subr.bf16.mxu1 %v4726_v7  ;;  %v3838_v7 = vld [vmem:[#allocation11 + $0x50] sm:$0xff] }
 0x974   :  { %4729 = vmatpush1.bf16.msra.mxu1 %v4728_v57  ;;  %v2900_v57 = vrot.slane %v6481_v29, 4 }
 0x975   :  { %4731 = vmatprep.subr.bf16.mxu1 %v4730_v4  ;;  %v2921_v4 = vrot.slane %v6481_v29, 1 }
 0x978   :  { %4733 = vmatpush1.bf16.msra.mxu1 %v4732_v15 }
 0x979   :  { %4735 = vmatprep.subr.bf16.mxu1 %v4734_v33 }
 0x97c   :  { %4737 = vmatpush1.bf16.msra.mxu1 %v4736_v41 }
 0x97d   :  { %4739 = vmatprep.subr.bf16.mxu1 %v4738_v46 }
 0x980   :  { %4741 = vmatpush1.bf16.msra.mxu1 %v4740_v45 }
 0x981   :  { %4197 = vmatprep.subr.msk.mxu1 %vm380_vm0, %v3362_v24 }
 0x984   :  { %4198 = vmatpush1.msk.msra.mxu1 %vm380_vm0, %v3361_v12 }
 0x985   :  { %3822 = vmatmul.mubr.f32.vlgmr.msra.gmra.mrb[16].mxu1 %v6010_v0  ;;  %4747 = vmatprep.subr.bf16.mxu1 %v4746_v1  ;;  %v2897_v0 = vrot.slane %v6480_v6, 5 }
 0x986   :  { %4749 = vmatpush1.bf16.msra.mxu1 %v4748_v14  ;;  %3987 = vmatprep.mubr.f32.mxu1 %v6479_v10 }
 0x987   :  { %3927 = vmatprep.subr.mxu1 %v3839_v8 }
 0x98a   :  { %3928 = vmatpush1.msra.mxu1 %v3838_v7 }
 0x9aa   :  { %v6176_v2 = vpop.f32.mrb[10].mxu1 }
 0x9ab   :  { %v6183_v15 = vmul.f32 %v6176_v2, %v6453_v39  ;;  %v6187_v34 = vmul.f32 %v6176_v2, %v6454_v28  ;;  %v6189_v33 = vpop.f32.mrb[11].mxu1  ;;  %v6198_v5 = vmul.f32 %v6176_v2, %v5240_v26  ;;  %v6206_v28 = vmul.f32 %v6176_v2, %v5276_v21 }
 0x9ac   :  { %v2682_v41 = vmul.f32 %v6189_v33, %v5201_v61  ;;  %v2683_v46 = vmul.f32 %v6189_v33, %v5258_v37  ;;  %v2688_v26 = vmul.f32 %v6189_v33, %v5288_v47  ;;  %v2693_v27 = vmul.f32 %v6189_v33, %v5203_v62 }
 0x9ad   :  { %v2756_v39 = vrot.slane %v6183_v15, 2  ;;  %v2767_v30 = vrot.slane %v6187_v34, 2  ;;  %v2694_v45 = vmul.f32 %v6189_v33, %v5261_v38  ;;  %v2699_v43 = vmul.f32 %v6189_v33, %v5291_v48 }
 0x9ae   :  { %v2685_v24 = vrot.slane %v2683_v46, 1  ;;  %v2704_v61 = vmul.f32 %v6189_v33, %v5205_v63  ;;  %v2705_v37 = vmul.f32 %v6189_v33, %v5264_v17  ;;  %v2690_v11 = vrot.slane %v2688_v26, 2 }
 0x9af   :  { %v2696_v20 = vrot.slane %v2694_v45, 1  ;;  %v2710_v47 = vmul.f32 %v6189_v33, %v5294_v49  ;;  %v2715_v62 = vmul.f32 %v6189_v33, %v5299_v52  ;;  %v2701_v38 = vrot.slane %v2699_v43, 2 }
 0x9b0   :  { %v2687_v23 = vadd.f32 %v2685_v24, %v2682_v41  ;;  %v2707_v12 = vrot.slane %v2705_v37, 1  ;;  %v2716_v48 = vmul.f32 %v6189_v33, %v5267_v40  ;;  %v2721_v63 = vmul.f32 %v6189_v33, %v5302_v53  ;;  %v6483_v37 = vld [vmem:[#allocation27_spill] sm:$0xff] }
 0x9b1   :  { %v2698_v1 = vadd.f32 %v2696_v20, %v2693_v27  ;;  %v2712_v14 = vrot.slane %v2710_v47, 2  ;;  %v2726_v17 = vmul.f32 %v6189_v33, %v5305_v54  ;;  %v2727_v52 = vmul.f32 %v6189_v33, %v6452_v22  ;;  %v6484_v47 = vld [vmem:[#allocation31_spill] sm:$0xff] }
 0x9b2   :  { %v2692_v8 = vadd.f32 %v2690_v11, %v2687_v23  ;;  %v2709_v7 = vadd.f32 %v2707_v12, %v2704_v61  ;;  %v2718_v49 = vrot.slane %v2716_v48, 1  ;;  %v6237_v32 = vpop.f32.mrb[16].mxu0  ;;  %v2723_v46 = vrot.slane %v2721_v63, 2  ;;  %v6485_v12 = vld [vmem:[#allocation32_spill] sm:$0xff]  ;;  %v6486_v63 = vld [vmem:[#allocation33_spill] sm:$0xff] }
 0x9b3   :  { %v2703_v41 = vadd.f32 %v2701_v38, %v2698_v1  ;;  %v2732_v40 = vmul.f32 %v6189_v33, %v5308_v55  ;;  %v2737_v26 = vmul.f32 %v6189_v33, %v5313_v58  ;;  %v6243_v53 = vpop.f32.mrb[17].mxu0  ;;  %v2729_v45 = vrot.slane %v2727_v52, 1  ;;  %v6487_v52 = vld [vmem:[#allocation28_spill] sm:$0xff] }
 0x9b4   :  { %v2714_v27 = vadd.f32 %v2712_v14, %v2709_v7  ;;  %v2720_v54 = vadd.f32 %v2718_v49, %v2715_v62  ;;  %v2738_v24 = vmul.f32 %v6189_v33, %v5270_v18  ;;  %v2743_v22 = vmul.f32 %v6189_v33, %v5316_v59 }
 0x9b5   :  { %v2734_v43 = vrot.slane %v2732_v40, 2  ;;  %v2748_v61 = vmul.f32 %v6189_v33, %v5319_v60  ;;  %v2749_v55 = vmul.f32 %v6189_v33, %v6483_v37  ;;  %v2731_v58 = vadd.f32 %v2729_v45, %v2726_v17 }
 0x9b6   :  { %v2725_v11 = vadd.f32 %v2723_v46, %v2720_v54  ;;  %v2740_v20 = vrot.slane %v2738_v24, 1  ;;  %v2759_v62 = vmul.f32 %v6189_v33, %v6484_v47  ;;  %v2745_v23 = vrot.slane %v2743_v22, 2  ;;  %v6489_v47 = vld [vmem:[#allocation30_spill] sm:$0xff] }
 0x9b7   :  { %v2751_v38 = vrot.slane %v2749_v55, 1  ;;  %v2760_v18 = vmul.f32 %v6189_v33, %v6485_v12  ;;  %v2818_v48 = vrot.slane %v2703_v41, 7  ;;  %v2736_v1 = vadd.f32 %v2734_v43, %v2731_v58  ;;  %v6488_v41 = vld [vmem:[#allocation26_spill] sm:$0xff] }
 0x9b8   :  { %v2742_v59 = vadd.f32 %v2740_v20, %v2737_v26  ;;  %v2821_v14 = vrot.slane %v2714_v27, 6  ;;  %v2770_v60 = vmul.f32 %v6189_v33, %v6486_v63  ;;  %v2771_v46 = vmul.f32 %v6189_v33, %v6487_v52 }
 0x9b9   :  { %v2753_v7 = vadd.f32 %v2751_v38, %v2748_v61  ;;  %v2762_v17 = vrot.slane %v2760_v18, 1  ;;  %v2844_v49 = vsel %vm615_vm7, %v2692_v8, %v2818_v48  ;;  %v2824_v54 = vrot.slane %v2736_v1, 7 }
 0x9ba   :  { %v2747_v40 = vadd.f32 %v2745_v23, %v2742_v59  ;;  %v2845_v45 = vsel %vm617_vm8, %v2844_v49, %v2821_v14  ;;  %v2781_v26 = vmul.f32 %v6189_v33, %v6488_v41  ;;  %v2773_v22 = vrot.slane %v2771_v46, 1 }
 0x9bb   :  { %v2758_v27 = vadd.f32 %v2756_v39, %v2753_v7  ;;  %v2764_v24 = vadd.f32 %v2762_v17, %v2759_v62  ;;  %v2846_v43 = vsel %vm380_vm0, %v2845_v45, %v2725_v11  ;;  %v2778_v61 = vrot.slane %v6198_v5, 2 }
 0x9bc   :  { %v2827_v8 = vrot.slane %v2747_v40, 6  ;;  %v2847_v37 = vsel %vm721_vm15, %v2846_v43, %v2824_v54  ;;  %v2783_v55 = vrot.slane %v2781_v26, 1  ;;  %v2775_v20 = vadd.f32 %v2773_v22, %v2770_v60 }
 0x9bd   :  { %v2769_v58 = vadd.f32 %v2767_v30, %v2764_v24  ;;  %v2793_v23 = vmul.f32 %v6189_v33, %v6489_v47  ;;  %v2804_v15 = vmul.f32 %v6189_v33, %v5276_v21  ;;  %v2790_v39 = vrot.slane %v6176_v2, 1 }
 0x9be   :  { %v2848_v11 = vsel %vm723_vm1, %v2847_v37, %v2827_v8  ;;  %v2785_v62 = vadd.f32 %v2783_v55, %v2781_v26  ;;  %v2786_v5 = vrot.slane %v2781_v26, 2  ;;  %v2780_v18 = vadd.f32 %v2778_v61, %v2775_v20 }
 0x9bf   :  { %v2830_v38 = vrot.slane %v2769_v58, 7  ;;  %v2849_v12 = vsel %vm725_vm2, %v2848_v11, %v2758_v27  ;;  %v2795_v48 = vrot.slane %v2793_v23, 1  ;;  %v2801_v34 = vrot.slane %v6176_v2, 7 }
 0x9c0   :  { %v2814_v30 = vrot.slane %v6176_v2, 5  ;;  %v2788_v1 = vadd.f32 %v2786_v5, %v2785_v62  ;;  %v2806_v59 = vrot.slane %v2804_v15, 1  ;;  %v2811_v14 = vrot.slane %v6206_v28, 2 }
 0x9c1   :  { %v2850_v21 = vsel %vm727_vm3, %v2849_v12, %v2830_v38  ;;  %v2797_v33 = vadd.f32 %v2795_v48, %v2793_v23  ;;  %v2798_v63 = vrot.slane %v2793_v23, 2  ;;  %v2833_v49 = vrot.slane %v2780_v18, 6 }
 0x9c2   :  { %v2859_v60 = vsel %vm2858_vm6, %v2850_v21, %v6117_v35  ;;  %v2792_v7 = vadd.f32 %v2790_v39, %v2788_v1  ;;  %v2808_v17 = vadd.f32 %v2806_v59, %v2804_v15  ;;  %v6490_v40 = vrot.slane %v6481_v29, 7 }
 0x9c3   :  { %v2937_v52 = vmul.f32 %v6194_v25, %v2859_v60  ;;  %v2800_v46 = vadd.f32 %v2798_v63, %v2797_v33  ;;  %v2881_v2 = vmul.f32 %v2859_v60, %v6480_v6  ;;  %v6491_v41 = vrot.slane %v6482_v19, 6 }
 0x9c4   :  { %v2882_v54 = vmul.f32 %v2859_v60, %v6490_v40  ;;  %v2813_v28 = vadd.f32 %v2811_v14, %v2808_v17  ;;  %v2836_v45 = vrot.slane %v2792_v7, 7  ;;  %v2899_v27 = vmul.f32 %v2897_v0, %v2859_v60 }
 0x9c5   :  { %v2887_v26 = vmul.f32 %v2859_v60, %v6491_v41  ;;  %v2946_v35 = vrot.slane %v2937_v52, 2  ;;  %v2948_v24 = vrot.slane %v2937_v52, 4  ;;  %v2950_v43 = vrot.slane %v2937_v52, 6 }
 0x9c6   :  { %v2803_v22 = vadd.f32 %v2801_v34, %v2800_v46  ;;  %v2816_v61 = vadd.f32 %v2814_v30, %v2813_v28  ;;  %v2851_v8 = vsel %vm615_vm7, %v2833_v49, %v2836_v45  ;;  %v2884_v37 = vrot.slane %v2882_v54, 1 }
 0x9c7   :  { %v2889_v55 = vrot.slane %v2887_v26, 2  ;;  %v2952_v58 = vsel %vm615_vm7, %v2937_v52, %v2946_v35  ;;  %v2902_v47 = vmul.f32 %v2900_v57, %v2859_v60  ;;  %v2909_v0 = vmul.f32 %v2907_v42, %v2859_v60 }
 0x9c8   :  { %v2839_v20 = vrot.slane %v2803_v22, 1  ;;  %v2953_v23 = vsel %vm617_vm8, %v2952_v58, %v2948_v24  ;;  %v2842_v15 = vrot.slane %v2816_v61, 3  ;;  %v2886_v39 = vadd.f32 %v2884_v37, %v2881_v2 }
 0x9c9   :  { %v2920_v11 = vmul.f32 %v2918_v36, %v2859_v60  ;;  %v2954_v62 = vsel %vm380_vm0, %v2953_v23, %v2950_v43  ;;  %v2904_v38 = vrot.slane %v2902_v47, 1  ;;  %v2923_v18 = vmul.f32 %v2921_v4, %v2859_v60 }
 0x9ca   :  { %v2852_v5 = vsel %vm617_vm8, %v2851_v8, %v2839_v20  ;;  %v2955_v57 = vsel %vm721_vm15, %v2954_v62, %v2937_v52  ;;  %v2891_v12 = vadd.f32 %v2889_v55, %v2886_v39  ;;  %v2911_v34 = vrot.slane %v2909_v0, 2  ;;  %v6492_v55 = vld [vmem:[#allocation29_spill] sm:$0xff] }
 0x9cb   :  { %v2853_v42 = vsel %vm380_vm0, %v2852_v5, %v2842_v15  ;;  %v2956_v48 = vsel %vm723_vm1, %v2955_v57, %v2946_v35  ;;  %v2906_v36 = vadd.f32 %v2904_v38, %v2899_v27  ;;  %v2925_v33 = vrot.slane %v2923_v18, 1 }
 0x9cc   :  { %v2860_v6 = vsel %vm2858_vm6, %v2853_v42, %v6132_v50  ;;  %v2957_v30 = vsel %vm725_vm2, %v2956_v48, %v2948_v24  ;;  %v2893_v29 = vrot.slane %v2891_v12, 7  ;;  %v4003_v58 = vrot.slane %v6152_v56, %v6492_v55 }
 0x9cd   :  { %v2866_v1 = vadd.f32 %v2865_v51, %v2860_v6  ;;  %v2872_v59 = vadd.f32 %v2871_v16, %v2860_v6  ;;  %v2877_v14 = vadd.f32 %v2876_v3, %v2860_v6  ;;  %v2958_v21 = vsel %vm727_vm3, %v2957_v30, %v2950_v43 }
 0x9ce   :  { %v2913_v4 = vadd.f32 %v2911_v34, %v2906_v36  ;;  %4200 = vmatmul.mubr.msk.f32.vlgmr.msra.gmra.mrb[18].mxu0 %vm619_vm9, %v2958_v21  ;;  %4202 = vmatmul.mubr.msk.f32.vlgmr.msra.gmra.mrb[18].mxu1 %vm619_vm9, %v2958_v21  ;;  %v2895_v60 = vsub.f32 %v2860_v6, %v2893_v29  ;;  %v2927_v17 = vadd.f32 %v2925_v33, %v2920_v11 }
 0x9cf   :  { %v2868_v50 = vmul.f32 %v6194_v25, %v2866_v1  ;;  %v2873_v31 = vmul.f32 %v2872_v59, %v6194_v25  ;;  %v2878_v63 = vmul.f32 %v2877_v14, %v6194_v25  ;;  %3916 = vmatprep.mubr.f32.mxu0 %v6479_v10  ;;  %3993 = vmatprep.mubr.f32.mxu1 %v6479_v10 }
 0x9d0   :  { %v2915_v7 = vrot.slane %v2913_v4, 1  ;;  %v2928_v49 = vmul.f32 %v2860_v6, %v6482_v19  ;;  %v2939_v19 = vadd.f32 %v2895_v60, %v2865_v51  ;;  %v2938_v2 = vmul.f32 %v6194_v25, %v2860_v6 }
 0x9d1   :  { %2870 = vst.msk [vmem:[%s6395_s10 - $0x1] sm:$0x2] %vm2869_vm10, %v2868_v50  ;;  %v4027_v20 = vrot.slane %v6158_v13, %v6492_v55  ;;  %v4059_v0 = vrot.slane %v6237_v32, %v6492_v55  ;;  %v4063_v23 = vrot.slane %v6243_v53, %v6492_v55 }
 0x9d2   :  { %2875 = vst.msk [vmem:[%s6395_s10 - $0x1] sm:$0x4] %vm2874_vm11, %v2873_v31  ;;  %v2917_v10 = vsub.f32 %v2860_v6, %v2915_v7  ;;  %v2930_v52 = vrot.slane %v2928_v49, 2  ;;  %v2940_v40 = vmul.f32 %v2939_v19, %v6194_v25 }
 0x9d3   :  { %2880 = vst.msk [vmem:[%s6395_s10 - $0x1] sm:$0x8] %vm2879_vm12, %v2878_v63 }
 0x9d4   :  { %v2932_v46 = vadd.f32 %v2930_v52, %v2927_v17  ;;  %v2941_v54 = vadd.f32 %v2917_v10, %v2871_v16  ;;  %v2959_v41 = vsel %vm615_vm7, %v2938_v2, %v2940_v40 }
 0x9d6   :  { %v2934_v28 = vrot.slane %v2932_v46, 3  ;;  %v2942_v45 = vmul.f32 %v2941_v54, %v6194_v25 }
 0x9d8   :  { %v2936_v26 = vsub.f32 %v2860_v6, %v2934_v28  ;;  %v2960_v27 = vsel %vm617_vm8, %v2959_v41, %v2942_v45 }
 0x9da   :  { %v2943_v35 = vadd.f32 %v2936_v26, %v2876_v3  ;;  %v4007_v3 = vrot.slane %v6154_v9, %v6492_v55 }
 0x9dc   :  { %v2944_v24 = vmul.f32 %v2943_v35, %v6194_v25  ;;  %v4023_v25 = vrot.slane %v6156_v44, %v6492_v55 }
 0x9de   :  { %v2961_v51 = vsel %vm380_vm0, %v2960_v27, %v2944_v24 }
 0x9df   :  { %4201 = vmatmul.mubr.msk.f32.gmra.mrb[20].mxu0 %vm619_vm9, %v2961_v51  ;;  %4203 = vmatmul.mubr.msk.f32.gmra.mrb[20].mxu1 %vm619_vm9, %v2961_v51 }
 0x9e4   :  { %v3539_v43 = vpop.f32.mrb[12].mxu1 }
 0x9e5   :  { %v3541_v16 = vpop.f32.mrb[13].mxu1  ;;  %v4011_v47 = vrot.slane %v3539_v43, %v6492_v55 }
 0x9e6   :  { %v4015_v15 = vrot.slane %v3541_v16, %v6492_v55 }
 0xa1e   :  { %v3681_v22 = vpop.f32.mrb[14].mxu1 }
 0xa1f   :  { %v3683_v61 = vpop.f32.mrb[15].mxu1  ;;  %v4031_v56 = vrot.slane %v3681_v22, %v6492_v55 }
 0xa20   :  { %v4035_v9 = vrot.slane %v3683_v61, %v6492_v55 }
 0xa58   :  { %v3823_v8 = vpop.f32.mrb[16].mxu1 }
 0xa59   :  { %v3825_v37 = vpop.f32.mrb[17].mxu1  ;;  %v4067_v39 = vrot.slane %v3823_v8, %v6492_v55 }
 0xa5a   :  { %v4071_v48 = vrot.slane %v3825_v37, %v6492_v55 }
 0xaa1   :  { %v3912_v44 = vpop.f32.mrb[18].mxu0  ;;  %v3989_v11 = vpop.f32.mrb[18].mxu1 }
 0xaa2   :  { %v4016_v62 = vmul.f32 %v4003_v58, %v3912_v44  ;;  %v4036_v13 = vmul.f32 %v4023_v25, %v3912_v44  ;;  %v4072_v5 = vmul.f32 %v4059_v0, %v3912_v44  ;;  %v4018_v38 = vmul.f32 %v4011_v47, %v3989_v11  ;;  %v3914_v57 = vpop.f32.mrb[19].mxu0  ;;  %v3991_v42 = vpop.f32.mrb[19].mxu1 }
 0xaa3   :  { %v4038_v32 = vmul.f32 %v4031_v56, %v3989_v11  ;;  %v4074_v12 = vmul.f32 %v4067_v39, %v3989_v11  ;;  %v4017_v18 = vmul.f32 %v4007_v3, %v3914_v57  ;;  %v4037_v53 = vmul.f32 %v4027_v20, %v3914_v57 }
 0xaa4   :  { %v4044_v6 = vrot.slane %v4036_v13, 3  ;;  %v4073_v36 = vmul.f32 %v4063_v23, %v3914_v57  ;;  %v4019_v34 = vmul.f32 %v4015_v15, %v3991_v42  ;;  %v4039_v59 = vmul.f32 %v4035_v9, %v3991_v42 }
 0xaa5   :  { %v4046_v30 = vrot.slane %v4038_v32, 3  ;;  %v4045_v1 = vrot.slane %v4037_v53, 3  ;;  %v4075_v21 = vmul.f32 %v4071_v48, %v3991_v42  ;;  %v4088_v19 = vrot.slane %v4072_v5, 6 }
 0xaa6   :  { %v4052_v14 = vadd.f32 %v4044_v6, %v4016_v62  ;;  %v4047_v33 = vrot.slane %v4039_v59, 3  ;;  %v4094_v46 = vrot.slane %v4074_v12, 6  ;;  %v4091_v54 = vrot.slane %v4073_v36, 6 }
 0xaa7   :  { %v4054_v29 = vadd.f32 %v4046_v30, %v4018_v38  ;;  %v4053_v4 = vadd.f32 %v4045_v1, %v4017_v18  ;;  %v4097_v28 = vrot.slane %v4075_v21, 6 }
 0xaa8   :  { %v4055_v50 = vadd.f32 %v4047_v33, %v4019_v34 }
 0xab2   :  { %v3918_v31 = vpop.f32.mrb[20].mxu0  ;;  %v3995_v63 = vpop.f32.mrb[20].mxu1 }
 0xab3   :  { %v4076_v60 = vmul.f32 %v4059_v0, %v3918_v31  ;;  %v4078_v7 = vmul.f32 %v4067_v39, %v3995_v63  ;;  %v3920_v17 = vpop.f32.mrb[21].mxu0  ;;  %v3997_v49 = vpop.f32.mrb[21].mxu1  ;;  %v4112_v27 = vrot.slane %v3918_v31, 1  ;;  %v4114_v24 = vrot.slane %v3995_v63, 1 }
 0xab4   :  { %v4077_v10 = vmul.f32 %v4063_v23, %v3920_v17  ;;  %v4079_v52 = vmul.f32 %v4071_v48, %v3997_v49  ;;  %v4113_v8 = vrot.slane %v3920_v17, 1  ;;  %v4115_v55 = vrot.slane %v3997_v49, 1 }
 0xab5   :  { %v4089_v2 = vrot.slane %v4076_v60, 6  ;;  %v4095_v40 = vrot.slane %v4078_v7, 6 }
 0xab6   :  { %v4092_v45 = vrot.slane %v4077_v10, 6  ;;  %v4098_v41 = vrot.slane %v4079_v52, 6 }
 0xab7   :  { %v4090_v26 = vsel %vm617_vm8, %v4088_v19, %v4089_v2  ;;  %v4096_v35 = vsel %vm617_vm8, %v4094_v46, %v4095_v40 }
 0xab8   :  { %v4104_v51 = vadd.f32 %v4090_v26, %v4052_v14  ;;  %v4106_v43 = vadd.f32 %v4096_v35, %v4054_v29  ;;  %v4093_v16 = vsel %vm617_vm8, %v4091_v54, %v4092_v45  ;;  %v4099_v22 = vsel %vm617_vm8, %v4097_v28, %v4098_v41 }
 0xab9   :  { %v4105_v61 = vadd.f32 %v4093_v16, %v4053_v4  ;;  %v4107_v37 = vadd.f32 %v4099_v22, %v4055_v50 }
 0xaba   :  { %v4120_v58 = vadd.f32 %v4112_v27, %v4104_v51  ;;  %v4122_v3 = vadd.f32 %v4114_v24, %v4106_v43 }
 0xabb   :  { %v4121_v25 = vadd.f32 %v4113_v8, %v4105_v61  ;;  %v4123_v20 = vadd.f32 %v4115_v55, %v4107_v37 }
 0xabd   :  { %v4128_v47 = vcombine.low %v4120_v58, %v4121_v25  ;;  %v4129_v0 = vcombine.low %v4122_v3, %v4123_v20 }
 0xabf   :  { %4132 = vst [vmem:[%s6394_s9] sm:$0x77] %v4128_v47  ;;  %4133 = vst [vmem:[%s6394_s9 + $0x8] sm:$0x77] %v4129_v0 }
 0xac0   :  { %4142 = vsyncpa [#allocation4], 1 }
 0xac1   :  { %4143 = vsyncpa [#allocation7], 1 }
 0xac2   :  { %4144 = vsyncpa [#allocation10], 1 }
 0xac3   :  { %4145 = vsyncpa [#allocation5], 1 }

</bundles_post_ra>
